<compile_context>
chip_gen: v7x
topology: tpu7x:2x2x1
jax: 0.10.0
libtpu: 0.0.40
codegen_flags: <defaults>
</compile_context>

<pallas_src>
import functools

import jax
import jax.numpy as jnp
from jax import lax
from jax.experimental import pallas as pl
from jax.experimental.pallas import tpu as pltpu

# ----------------------------- configuration --------------------------------
NUM_CLASSES = 8      # len(obj_classes)
EMBED_DIM   = 32     # MODEL.ROI_RELATION_HEAD.EMBED_DIM
OBJ_DIM     = 64     # in_channels
HIDDEN_DIM  = 32     # MODEL.ROI_RELATION_HEAD.CONTEXT_HIDDEN_DIM
N_OBJ       = 8      # objects per image (same for every image here)
B_IMG       = 2      # number of images
TOT         = N_OBJ * B_IMG
HD          = HIDDEN_DIM // 2          # per-direction hidden size of the Bi-LSTM
BN_EPS      = 1e-5

# Row permutations: image-major (b*N + t)  <->  time-major (t*B + b)
_PERM_TO_TM = tuple((r % B_IMG) * N_OBJ + (r // B_IMG) for r in range(TOT))
_PERM_TO_IM = tuple((r % N_OBJ) * B_IMG + (r // N_OBJ) for r in range(TOT))

# Packed slab lane layouts (prep <-> kernel must stay in sync):
#   feat [16,128] : [ x(0:64) | emb1(64:96) | box9(96:112) | ovl6(112:128) ]
#   rel  [16,128] : [ emb2(0:32) | x(32:96) | dist(96:104) | 0(104:128) ]
#   w128 [128,1152]: wpos(0:128) wA(128:160) wBoxOvl(256:512) preLo1(512:544)
#                    preLo2(640:672) woFeat(768:896) woPos(896:1024) weFeat(1024:1152)
#   w32  [32,480]  : sub(0:32) obj(32:64) wfreq(64:96) wrecO(96:224) wrecE(224:352)
#                    weCtx(352:480)
#   bias [1,1024]  : bpos(0:128) bBoxOvl(128:384) bGateO(384:512) bGateE(512:640)
#                    bPre(640:672) bSub(672:704) bObj(704:736) w1(768:800)
#                    w2(800:832) w3(832:864) w4(864) bvis(865)
#   out  [16,128]  : [ obj_ctx(0:32) | edge_ctx(32:64) | pred16x16(64:80) | 0 ]


# =============================================================================
#             batched bidirectional chain LSTM (in-kernel helper)
# =============================================================================

def _chain_bilstm(xi_scr, wrec, hs_scr, off, *, B, N, Hd):
    """Bidirectional chain LSTM batched over the B images, time-major rows.

    xi_scr : [B*N, 8*Hd] input-to-hidden gate pre-activations; lanes 0:4Hd are
             the forward gates (i,f,o,u) and 4Hd:8Hd the backward gates.
    wrec   : [2*Hd, 8*Hd] block-diagonal recurrent weights (rows 0:Hd -> fwd
             gate columns, rows Hd:2Hd -> bwd gate columns) -> ONE matmul/step.
    hs_scr : hidden-state scratch; fwd written at lanes [off:off+Hd], bwd at
             [off+Hd:off+2Hd].
    """
    G = 4 * Hd

    def step(t, carry):
        h_cat, c_f, c_b = carry                       # [B,2Hd], [B,Hd], [B,Hd]
        tb = N - 1 - t
        rec = jnp.dot(h_cat, wrec, preferred_element_type=jnp.float32)  # [B,8Hd]
        g_f = (xi_scr[pl.ds(t * B, B), :] + rec)[:, 0:G]
        g_b = (xi_scr[pl.ds(tb * B, B), :] + rec)[:, G:2 * G]
        s_f = jax.nn.sigmoid(g_f[:, 0:3 * Hd])        # (i,f,o) in one call
        u_f = jnp.tanh(g_f[:, 3 * Hd:G])
        s_b = jax.nn.sigmoid(g_b[:, 0:3 * Hd])
        u_b = jnp.tanh(g_b[:, 3 * Hd:G])
        c_f = s_f[:, Hd:2 * Hd] * c_f + s_f[:, 0:Hd] * u_f
        c_b = s_b[:, Hd:2 * Hd] * c_b + s_b[:, 0:Hd] * u_b
        h_f = s_f[:, 2 * Hd:3 * Hd] * jnp.tanh(c_f)
        h_b = s_b[:, 2 * Hd:3 * Hd] * jnp.tanh(c_b)
        hs_scr[pl.ds(t * B, B), off:off + Hd] = h_f
        hs_scr[pl.ds(tb * B, B), off + Hd:off + 2 * Hd] = h_b
        return jnp.concatenate([h_f, h_b], axis=-1), c_f, c_b

    z = jnp.zeros((B, Hd), jnp.float32)
    lax.fori_loop(0, N, step,
                  (jnp.zeros((B, 2 * Hd), jnp.float32), z, z), unroll=True)


# =============================================================================
#                              fused forward kernel
# =============================================================================

def _vctree_fused_kernel(feat_ref, rel_ref, w128_ref, w32_ref, bias_ref,
                         out_ref, xi_scr, hs_scr, *, B, N, Hd):
    f32 = jnp.float32
    tot = B * N

    feat = feat_ref[...]                                   # [16,128]
    rel = rel_ref[...]                                     # [16,128]

    # ---- pos_embed: Linear(9,32)+BN -> Linear(32,128) folded to ONE linear
    pos_embed = jnp.maximum(
        jnp.dot(feat, w128_ref[:, 0:128], preferred_element_type=f32)
        + bias_ref[:, 0:128], 0.0)                         # [16,128]

    # ---- vctree_score_net --------------------------------------------------
    # box_embed / overlap_embed (Linear+BN+ReLU), 256 lanes
    be = jnp.maximum(
        jnp.dot(feat, w128_ref[:, 256:512], preferred_element_type=f32)
        + bias_ref[:, 128:384], 0.0)                       # [16,256]
    # score_pre: obj_reduce/emb_reduce halves pre-folded (no nonlinearity in
    # between), box/ovl halves applied to the ReLU'd embeds.
    roi = jnp.maximum(
        jnp.dot(feat, w128_ref[:, 128:160], preferred_element_type=f32)
        + jnp.dot(be[:, 0:128], w128_ref[:, 512:544], preferred_element_type=f32)
        + jnp.dot(be[:, 128:256], w128_ref[:, 640:672], preferred_element_type=f32)
        + bias_ref[:, 640:672], 0.0)                       # [16,32]
    sub = jnp.maximum(jnp.dot(roi, w32_ref[:, 0:32], preferred_element_type=f32)
                      + bias_ref[:, 672:704], 0.0)
    obj = jnp.maximum(jnp.dot(roi, w32_ref[:, 32:64], preferred_element_type=f32)
                      + bias_ref[:, 704:736], 0.0)

    # co_prior / vision_prior over ALL 16x16 pairs (cross-image entries are
    # never read back; the wrapper extracts the per-image 8x8 blocks).
    dist = rel[:, 96:128]                                  # [16,32] softmax | 0
    dw = jnp.dot(dist, w32_ref[:, 64:96], preferred_element_type=f32)
    co = jnp.dot(dw, dist.T, preferred_element_type=f32)   # [16,16]
    w1 = bias_ref[:, 768:800]
    w2 = bias_ref[:, 800:832]
    w3 = bias_ref[:, 832:864]
    w4 = bias_ref[:, 864:865]
    bvis = bias_ref[:, 865:866]
    t12 = jnp.dot(obj * w1 + w2, sub.T, preferred_element_type=f32)   # [16,16]
    t3 = jnp.sum(obj * w3, axis=-1, keepdims=True)
    pred = jax.nn.sigmoid(t12 + t3 + w4 * co + bvis) * co  # joint_pred (bi_preds)

    # ---- object-context Bi-LSTM over [x | emb1 | pos_embed] -----------------
    # TODO(synk): generate_forest / arbForest_to_biForest (NMS + greedy
    # max-score tree construction) have no clean Pallas equivalent; both
    # context encoders run over the left-to-right chain instead of the VCTree.
    xi_scr[...] = (
        jnp.dot(feat, w128_ref[:, 768:896], preferred_element_type=f32)
        + jnp.dot(pos_embed, w128_ref[:, 896:1024], preferred_element_type=f32)
        + bias_ref[:, 384:512])
    _chain_bilstm(xi_scr, w32_ref[:, 96:224], hs_scr, 0, B=B, N=N, Hd=Hd)

    # ---- edge-context Bi-LSTM over [emb2 | x | obj_ctx] ----------------------
    xi_scr[...] = (
        jnp.dot(rel, w128_ref[:, 1024:1152], preferred_element_type=f32)
        + jnp.dot(hs_scr[:, 0:2 * Hd], w32_ref[:, 352:480],
                  preferred_element_type=f32)
        + bias_ref[:, 512:640])
    _chain_bilstm(xi_scr, w32_ref[:, 224:352], hs_scr, 2 * Hd, B=B, N=N, Hd=Hd)

    # ---- single lane-dense [16,128] output slab -----------------------------
    out_ref[:, 0:4 * Hd] = hs_scr[...]                     # obj_ctx | edge_ctx
    out_ref[:, 4 * Hd:4 * Hd + tot] = pred                 # 16x16 joint_pred
    out_ref[:, 4 * Hd + tot:128] = jnp.zeros((tot, 128 - 4 * Hd - tot), f32)


def vctree_fused(params, feat_tm, rel_tm):
    """Single pallas_call running the whole VCTree context forward.

    Inputs are time-major (row = t*B + b).  Returns a [TOT,128] slab:
    lanes 0:32 obj_ctx, 32:64 edge_ctx, 64:80 the 16x16 joint_pred matrix.
    """
    args = [feat_tm, rel_tm, params["w128"], params["w32"], params["bias"]]
    in_specs = [pl.BlockSpec(a.shape, lambda i: (0, 0)) for a in args]
    return pl.pallas_call(
        functools.partial(_vctree_fused_kernel, B=B_IMG, N=N_OBJ, Hd=HD),
        grid=(1,),
        out_shape=jax.ShapeDtypeStruct((TOT, 128), jnp.float32),
        in_specs=in_specs,
        out_specs=pl.BlockSpec((TOT, 128), lambda i: (0, 0)),
        scratch_shapes=[
            pltpu.VMEM((TOT, 8 * HD), jnp.float32),   # xi (reused by both LSTMs)
            pltpu.VMEM((TOT, 4 * HD), jnp.float32),   # hidden states (obj|edge)
        ],
    )(*args)


# =============================================================================
#                                glue (plain JAX)
# =============================================================================

def to_onehot(labels, num_classes, fill=1000.0):
    oh = jax.nn.one_hot(labels, num_classes, dtype=jnp.float32)
    return oh * fill + (1.0 - oh) * (-fill)


def encode_box_info(boxes, img_wh):
    """boxes: [TOT, 4] xyxy -> [TOT, 9] geometry features (motifs convention)."""
    wid, hei = img_wh
    x1, y1, x2, y2 = boxes[:, 0], boxes[:, 1], boxes[:, 2], boxes[:, 3]
    w = x2 - x1 + 1.0
    h = y2 - y1 + 1.0
    xc = x1 + 0.5 * w
    yc = y1 + 0.5 * h
    return jnp.stack([w / wid, h / hei, xc / wid, yc / hei,
                      x1 / wid, y1 / hei, x2 / wid, y2 / hei,
                      (w * h) / (wid * hei)], axis=-1).astype(jnp.float32)


def get_overlap_info(boxes_per_img, img_wh):
    """boxes_per_img: [B, N, 4] -> [B*N, 6] per-object overlap statistics.
    # TODO(synk): exact get_overlap_info from the VCTree repo is unavailable;
    # this is a faithful-in-spirit 6-dim overlap descriptor.
    """
    wid, hei = img_wh
    outs = []
    for b in range(boxes_per_img.shape[0]):
        bx = boxes_per_img[b]
        x1 = jnp.maximum(bx[:, None, 0], bx[None, :, 0])
        y1 = jnp.maximum(bx[:, None, 1], bx[None, :, 1])
        x2 = jnp.minimum(bx[:, None, 2], bx[None, :, 2])
        y2 = jnp.minimum(bx[:, None, 3], bx[None, :, 3])
        inter = jnp.clip(x2 - x1 + 1.0, 0.0) * jnp.clip(y2 - y1 + 1.0, 0.0)
        area = (bx[:, 2] - bx[:, 0] + 1.0) * (bx[:, 3] - bx[:, 1] + 1.0)
        eye = jnp.eye(bx.shape[0], dtype=jnp.float32)
        inter_off = inter * (1.0 - eye)
        n_ovl = jnp.sum((inter_off > 0).astype(jnp.float32), axis=-1)
        s_int = jnp.sum(inter_off, axis=-1)
        info = jnp.stack([n_ovl,
                          s_int / area,
                          s_int / (wid * hei),
                          area / (wid * hei),
                          (bx[:, 2] - bx[:, 0] + 1.0) / wid,
                          (bx[:, 3] - bx[:, 1] + 1.0) / hei], axis=-1)
        outs.append(info)
    return jnp.concatenate(outs, axis=0).astype(jnp.float32)


# =============================================================================
#                    VCTreeLSTMContext forward (predcls mode)
# =============================================================================

@functools.partial(jax.jit, static_argnums=(4,))
def vctree_lstm_context_forward(params, x, boxes, labels, img_wh):
    """Returns (obj_ctxs, obj_dists, obj_preds, edge_ctx, bi_preds)."""
    # ---- object label embedding (USE_GT_OBJECT_LABEL => predcls path) ----
    obj_logits = to_onehot(labels, NUM_CLASSES)                  # [TOT, C]
    roi_dist = jax.nn.softmax(obj_logits, axis=-1)
    obj_embed = params["embed1"][labels]                         # [TOT, E]
    # predcls: obj_preds == GT labels, so obj_embed2 can be gathered up front
    obj_embed2 = params["embed2"][labels]

    # ---- activation slabs (lane-packed, built once in the wrapper) ----
    box_info = encode_box_info(boxes.reshape(TOT, 4), img_wh)    # [TOT, 9]
    ovl_info = get_overlap_info(boxes, img_wh)                   # [TOT, 6]
    boxp = jnp.zeros((TOT, 16), jnp.float32).at[:, :9].set(box_info)
    ovlp = jnp.zeros((TOT, 16), jnp.float32).at[:, :6].set(ovl_info)
    distp = jnp.zeros((TOT, 32), jnp.float32).at[:, :NUM_CLASSES].set(roi_dist)
    feat = jnp.concatenate([x, obj_embed, boxp, ovlp], axis=-1)  # [TOT, 128]
    rel = jnp.concatenate([obj_embed2, x, distp], axis=-1)       # [TOT, 128]

    # ---- single fused Pallas kernel (time-major rows) ----
    perm_tm = jnp.array(_PERM_TO_TM, jnp.int32)
    perm_im = jnp.array(_PERM_TO_IM, jnp.int32)
    out = vctree_fused(params, feat[perm_tm], rel[perm_tm])      # [TOT, 128]

    out_im = out[perm_im]                                        # image-major rows
    obj_ctxs = out_im[:, 0:HIDDEN_DIM]
    edge_ctx = out_im[:, HIDDEN_DIM:2 * HIDDEN_DIM]
    pred_tm = out[:, 2 * HIDDEN_DIM:2 * HIDDEN_DIM + TOT]        # [16,16] time-major
    bi_preds = jnp.stack([pred_tm[b::B_IMG, b::B_IMG] for b in range(B_IMG)],
                         axis=0)                                 # [B, N, N]

    # predcls: predictions are the GT labels, dists are the one-hot logits
    # (DecoderTreeLSTM is not used in this mode).
    return obj_ctxs, obj_logits, labels, edge_ctx, bi_preds


# =============================================================================
#                         deterministic parameter init
# =============================================================================

def init_raw_params(key):
    ks = iter(jax.random.split(key, 40))
    f32 = jnp.float32

    def xavier(k, fin, fout):
        lim = (6.0 / (fin + fout)) ** 0.5
        return jax.random.uniform(k, (fin, fout), f32, -lim, lim)

    def nrm(k, shape):
        return 0.1 * jax.random.normal(k, shape, f32)

    def zeros(n):
        return jnp.zeros((n,), f32)

    def lstm(k, din, hd):
        k1, k2, k3, k4 = jax.random.split(k, 4)
        return {"wif": nrm(k1, (din, 4 * hd)), "whf": nrm(k2, (hd, 4 * hd)),
                "bf": jnp.zeros((1, 4 * hd), f32),
                "wib": nrm(k3, (din, 4 * hd)), "whb": nrm(k4, (hd, 4 * hd)),
                "bb": jnp.zeros((1, 4 * hd), f32)}

    co = jax.random.uniform(next(ks), (NUM_CLASSES, NUM_CLASSES), f32)
    bn_s = 1.0 / (1.0 + BN_EPS) ** 0.5      # fresh BN, inference mode
    return {
        "embed1": nrm(next(ks), (NUM_CLASSES, EMBED_DIM)),
        "embed2": nrm(next(ks), (NUM_CLASSES, EMBED_DIM)),   # distinct tables
        "pos_w1": xavier(next(ks), 9, 32), "pos_b1": zeros(32),
        "pos_bn_s": jnp.full((32,), bn_s, f32), "pos_bn_t": zeros(32),
        "pos_w2": xavier(next(ks), 32, 128), "pos_b2": zeros(128),
        "box_w": xavier(next(ks), 9, 128), "box_b": zeros(128),
        "box_bn_s": jnp.full((128,), bn_s, f32), "box_bn_t": zeros(128),
        "ovl_w": xavier(next(ks), 6, 128), "ovl_b": zeros(128),
        "ovl_bn_s": jnp.full((128,), bn_s, f32), "ovl_bn_t": zeros(128),
        "objr_w": xavier(next(ks), OBJ_DIM, 128), "objr_b": zeros(128),
        "embr_w": xavier(next(ks), EMBED_DIM, 128), "embr_b": zeros(128),
        "pre_w": xavier(next(ks), 4 * 128, HIDDEN_DIM), "pre_b": zeros(HIDDEN_DIM),
        "sub_w": xavier(next(ks), HIDDEN_DIM, HIDDEN_DIM), "sub_b": zeros(HIDDEN_DIM),
        "obj_w": xavier(next(ks), HIDDEN_DIM, HIDDEN_DIM), "obj_b": zeros(HIDDEN_DIM),
        "wfreq": co + co.T,                  # symmetrized co-occurrence prior
        "wvis": nrm(next(ks), (1, 3 * HIDDEN_DIM + 1)),
        "bvis": jnp.zeros((1, 1), f32),
        "objrnn": lstm(next(ks), OBJ_DIM + EMBED_DIM + 128, HD),
        "edgernn": lstm(next(ks), EMBED_DIM + OBJ_DIM + HIDDEN_DIM, HD),
    }


def prepare_params(raw):
    """Fold BNs + linear chains, pack gate columns, and fuse every parameter
    into three slabs (w128 / w32 / bias) so the kernel sees ~5 input DMAs."""
    f32 = jnp.float32

    def fold(w, b, s, t):        # (x@w + b)*s + t  ==  x@(w*s) + (b*s + t)
        return w * s[None, :], b * s + t

    def _reorder(w):             # raw gate order (i,f,u,o) -> packed (i,f,o,u)
        return jnp.concatenate([w[..., :2 * HD], w[..., 3 * HD:4 * HD],
                                w[..., 2 * HD:3 * HD]], axis=-1)

    p = {"embed1": raw["embed1"], "embed2": raw["embed2"]}

    # --- pos_embed chain folded to one Linear (no nonlinearity in between) ---
    w1f, b1f = fold(raw["pos_w1"], raw["pos_b1"], raw["pos_bn_s"], raw["pos_bn_t"])
    wpos9 = w1f @ raw["pos_w2"]                       # [9, 128]
    bpos = b1f @ raw["pos_w2"] + raw["pos_b2"]        # [128]
    wpos = jnp.zeros((128, 128), f32).at[96:105, :].set(wpos9)

    # --- box / overlap embeds (BN folded) ---
    boxw, boxb = fold(raw["box_w"], raw["box_b"], raw["box_bn_s"], raw["box_bn_t"])
    ovlw, ovlb = fold(raw["ovl_w"], raw["ovl_b"], raw["ovl_bn_s"], raw["ovl_bn_t"])
    w_boxovl = (jnp.zeros((128, 256), f32)
                .at[96:105, 0:128].set(boxw)
                .at[112:118, 128:256].set(ovlw))
    b_boxovl = jnp.concatenate([boxb, ovlb])

    # --- obj/emb reduce folded through score_pre's upper half (both linear) ---
    w_hi = (jnp.zeros((128, 256), f32)
            .at[0:64, 0:128].set(raw["objr_w"])
            .at[64:96, 128:256].set(raw["embr_w"]))
    b_hi = jnp.concatenate([raw["objr_b"], raw["embr_b"]])
    w_a = w_hi @ raw["pre_w"][0:256]                  # [128, 32]
    b_pre = raw["pre_b"] + b_hi @ raw["pre_w"][0:256]
    pre_lo1 = raw["pre_w"][256:384]
    pre_lo2 = raw["pre_w"][384:512]

    # --- Bi-LSTMs: pack gate columns, fwd|bwd blocks, block-diag recurrence ---
    o, e = raw["objrnn"], raw["edgernn"]
    o_wif, o_wib = _reorder(o["wif"]), _reorder(o["wib"])
    e_wif, e_wib = _reorder(e["wif"]), _reorder(e["wib"])
    wo_feat = (jnp.zeros((128, 128), f32)             # rows: x(0:64) emb1(64:96)
               .at[0:96, 0:64].set(o_wif[0:96])
               .at[0:96, 64:128].set(o_wib[0:96]))
    wo_pos = jnp.concatenate([o_wif[96:224], o_wib[96:224]], axis=1)   # [128,128]
    we_feat = (jnp.zeros((128, 128), f32)             # rows: emb2(0:32) x(32:96)
               .at[0:96, 0:64].set(e_wif[0:96])
               .at[0:96, 64:128].set(e_wib[0:96]))
    we_ctx = jnp.concatenate([e_wif[96:128], e_wib[96:128]], axis=1)   # [32,128]
    b_go = jnp.concatenate([_reorder(o["bf"]), _reorder(o["bb"])], axis=-1)[0]
    b_ge = jnp.concatenate([_reorder(e["bf"]), _reorder(e["bb"])], axis=-1)[0]
    wrec_o = (jnp.zeros((2 * HD, 128), f32)
              .at[0:HD, 0:64].set(_reorder(o["whf"]))
              .at[HD:2 * HD, 64:128].set(_reorder(o["whb"])))
    wrec_e = (jnp.zeros((2 * HD, 128), f32)
              .at[0:HD, 0:64].set(_reorder(e["whf"]))
              .at[HD:2 * HD, 64:128].set(_reorder(e["whb"])))

    # --- fused parameter slabs (3 DMAs instead of 20+) ---
    w128 = (jnp.zeros((128, 1152), f32)
            .at[:, 0:128].set(wpos)
            .at[:, 128:160].set(w_a)
            .at[:, 256:512].set(w_boxovl)
            .at[:, 512:544].set(pre_lo1)
            .at[:, 640:672].set(pre_lo2)
            .at[:, 768:896].set(wo_feat)
            .at[:, 896:1024].set(wo_pos)
            .at[:, 1024:1152].set(we_feat))
    w32 = (jnp.zeros((32, 480), f32)
           .at[:, 0:32].set(raw["sub_w"])
           .at[:, 32:64].set(raw["obj_w"])
           .at[0:8, 64:72].set(raw["wfreq"])
           .at[:, 96:224].set(wrec_o)
           .at[:, 224:352].set(wrec_e)
           .at[:, 352:480].set(we_ctx))
    bias = (jnp.zeros((1, 1024), f32)
            .at[0, 0:128].set(bpos)
            .at[0, 128:384].set(b_boxovl)
            .at[0, 384:512].set(b_go)
            .at[0, 512:640].set(b_ge)
            .at[0, 640:672].set(b_pre)
            .at[0, 672:704].set(raw["sub_b"])
            .at[0, 704:736].set(raw["obj_b"])
            .at[0, 768:800].set(raw["wvis"][0, 0:32])
            .at[0, 800:832].set(raw["wvis"][0, 32:64])
            .at[0, 832:864].set(raw["wvis"][0, 64:96])
            .at[0, 864].set(raw["wvis"][0, 96])
            .at[0, 865].set(raw["bvis"][0, 0]))
    p.update(w128=w128, w32=w32, bias=bias)
    return p


# =============================================================================
if __name__ == "__main__":
    key = jax.random.PRNGKey(0)
    k_param, k_x, k_box, k_lab = jax.random.split(key, 4)

    params = prepare_params(init_raw_params(k_param))

    # synthetic inputs
    x = jax.random.normal(k_x, (TOT, OBJ_DIM), jnp.float32)          # ROI features
    img_wh = (128.0, 96.0)
    kb1, kb2 = jax.random.split(k_box)
    xy1 = jax.random.uniform(kb1, (B_IMG, N_OBJ, 2), jnp.float32) * jnp.array([60.0, 40.0])
    wh = jax.random.uniform(kb2, (B_IMG, N_OBJ, 2), jnp.float32) * jnp.array([60.0, 40.0]) + 4.0
    boxes = jnp.concatenate([xy1, xy1 + wh], axis=-1)                # [B, N, 4] xyxy
    labels = jax.random.randint(k_lab, (TOT,), 0, NUM_CLASSES, jnp.int32)

    outs = vctree_lstm_context_forward(params, x, boxes, labels, img_wh)
    outs = jax.block_until_ready(outs)

    obj_ctxs, obj_dists, obj_preds, edge_ctx, bi_preds = outs
    assert obj_ctxs.shape == (TOT, HIDDEN_DIM)
    assert obj_dists.shape == (TOT, NUM_CLASSES)
    assert obj_preds.shape == (TOT,)
    assert edge_ctx.shape == (TOT, HIDDEN_DIM)
    assert bi_preds.shape == (B_IMG, N_OBJ, N_OBJ)
    for name, t in [("obj_ctxs", obj_ctxs), ("edge_ctx", edge_ctx),
                    ("bi_preds", bi_preds)]:
        assert bool(jnp.isfinite(t).all()), f"non-finite values in {name}"
    print("KERNEL_OK")
</pallas_src>

<mosaic_0001>
module attributes {stable_mosaic.version = 11 : i64} {
  func.func @_vctree_fused_kernel(%arg0: i32, %arg1: memref<16x128xf32, #tpu.memory_space<vmem>>, %arg2: memref<16x128xf32, #tpu.memory_space<vmem>>, %arg3: memref<128x1152xf32, #tpu.memory_space<vmem>>, %arg4: memref<32x480xf32, #tpu.memory_space<vmem>>, %arg5: memref<1x1024xf32, #tpu.memory_space<vmem>>, %arg6: memref<16x128xf32, #tpu.memory_space<vmem>>, %arg7: memref<16x128xf32, #tpu.memory_space<vmem>>, %arg8: memref<16x64xf32, #tpu.memory_space<vmem>>) attributes {dimension_semantics = [#tpu.dimension_semantics<arbitrary>], iteration_bounds = array<i64: 1>, scalar_prefetch = 0 : i64, scratch_operands = 2 : i64, tpu.core_type = #tpu.core_type<tc>, window_params = [{pipeline_mode = #tpu.pipeline_mode<synchronous>, transform_indices = @transform_0, window_bounds = array<i64: 16, 128>}, {pipeline_mode = #tpu.pipeline_mode<synchronous>, transform_indices = @transform_1, window_bounds = array<i64: 16, 128>}, {pipeline_mode = #tpu.pipeline_mode<synchronous>, transform_indices = @transform_2, window_bounds = array<i64: 128, 1152>}, {pipeline_mode = #tpu.pipeline_mode<synchronous>, transform_indices = @transform_3, window_bounds = array<i64: 32, 480>}, {pipeline_mode = #tpu.pipeline_mode<synchronous>, transform_indices = @transform_4, window_bounds = array<i64: 1, 1024>}, {pipeline_mode = #tpu.pipeline_mode<synchronous>, transform_indices = @transform_5, window_bounds = array<i64: 16, 128>}]} {
    %c0 = arith.constant 0 : index
    %c0_0 = arith.constant 0 : index
    %0 = vector.load %arg1[%c0, %c0_0] : memref<16x128xf32, #tpu.memory_space<vmem>>, vector<16x128xf32>
    %c0_1 = arith.constant 0 : index
    %c0_2 = arith.constant 0 : index
    %1 = vector.load %arg2[%c0_1, %c0_2] : memref<16x128xf32, #tpu.memory_space<vmem>>, vector<16x128xf32>
    %c0_3 = arith.constant 0 : index
    %c0_4 = arith.constant 0 : index
    %2 = vector.load %arg3[%c0_3, %c0_4] : memref<128x1152xf32, #tpu.memory_space<vmem>>, vector<128x128xf32>
    %cst = arith.constant dense<0.000000e+00> : vector<16x128xf32>
    %3 = tpu.matmul %0, %2, %cst {dimension_numbers = #tpu.dot_dimension_numbers<[1], [0], [0], [1], [0, 0, 1, 1], [], []>} : vector<16x128xf32>, vector<128x128xf32>, vector<16x128xf32> -> vector<16x128xf32>
    %c0_5 = arith.constant 0 : index
    %c0_6 = arith.constant 0 : index
    %4 = vector.load %arg5[%c0_5, %c0_6] : memref<1x1024xf32, #tpu.memory_space<vmem>>, vector<1x128xf32>
    %5 = vector.broadcast %4 : vector<1x128xf32> to vector<16x128xf32>
    %6 = arith.addf %3, %5 : vector<16x128xf32>
    %cst_7 = arith.constant 0.000000e+00 : f32
    %7 = vector.broadcast %cst_7 : f32 to vector<16x128xf32>
    %8 = arith.maximumf %6, %7 : vector<16x128xf32>
    %c0_8 = arith.constant 0 : index
    %c256 = arith.constant 256 : index
    %9 = vector.load %arg3[%c0_8, %c256] : memref<128x1152xf32, #tpu.memory_space<vmem>>, vector<128x256xf32>
    %cst_9 = arith.constant dense<0.000000e+00> : vector<16x256xf32>
    %10 = tpu.matmul %0, %9, %cst_9 {dimension_numbers = #tpu.dot_dimension_numbers<[1], [0], [0], [1], [0, 0, 1, 1], [], []>} : vector<16x128xf32>, vector<128x256xf32>, vector<16x256xf32> -> vector<16x256xf32>
    %c0_10 = arith.constant 0 : index
    %c128 = arith.constant 128 : index
    %11 = vector.load %arg5[%c0_10, %c128] : memref<1x1024xf32, #tpu.memory_space<vmem>>, vector<1x256xf32>
    %12 = vector.broadcast %11 : vector<1x256xf32> to vector<16x256xf32>
    %13 = arith.addf %10, %12 : vector<16x256xf32>
    %cst_11 = arith.constant 0.000000e+00 : f32
    %14 = vector.broadcast %cst_11 : f32 to vector<16x256xf32>
    %15 = arith.maximumf %13, %14 : vector<16x256xf32>
    %c0_12 = arith.constant 0 : index
    %c128_13 = arith.constant 128 : index
    %16 = vector.load %arg3[%c0_12, %c128_13] : memref<128x1152xf32, #tpu.memory_space<vmem>>, vector<128x32xf32>
    %cst_14 = arith.constant dense<0.000000e+00> : vector<16x32xf32>
    %17 = tpu.matmul %0, %16, %cst_14 {dimension_numbers = #tpu.dot_dimension_numbers<[1], [0], [0], [1], [0, 0, 1, 1], [], []>} : vector<16x128xf32>, vector<128x32xf32>, vector<16x32xf32> -> vector<16x32xf32>
    %18 = vector.extract_strided_slice %15 {offsets = [0, 0], sizes = [16, 128], strides = [1, 1]} : vector<16x256xf32> to vector<16x128xf32>
    %c0_15 = arith.constant 0 : index
    %c512 = arith.constant 512 : index
    %19 = vector.load %arg3[%c0_15, %c512] : memref<128x1152xf32, #tpu.memory_space<vmem>>, vector<128x32xf32>
    %cst_16 = arith.constant dense<0.000000e+00> : vector<16x32xf32>
    %20 = tpu.matmul %18, %19, %cst_16 {dimension_numbers = #tpu.dot_dimension_numbers<[1], [0], [0], [1], [0, 0, 1, 1], [], []>} : vector<16x128xf32>, vector<128x32xf32>, vector<16x32xf32> -> vector<16x32xf32>
    %21 = arith.addf %17, %20 : vector<16x32xf32>
    %22 = vector.extract_strided_slice %15 {offsets = [0, 128], sizes = [16, 128], strides = [1, 1]} : vector<16x256xf32> to vector<16x128xf32>
    %c0_17 = arith.constant 0 : index
    %c640 = arith.constant 640 : index
    %23 = vector.load %arg3[%c0_17, %c640] : memref<128x1152xf32, #tpu.memory_space<vmem>>, vector<128x32xf32>
    %cst_18 = arith.constant dense<0.000000e+00> : vector<16x32xf32>
    %24 = tpu.matmul %22, %23, %cst_18 {dimension_numbers = #tpu.dot_dimension_numbers<[1], [0], [0], [1], [0, 0, 1, 1], [], []>} : vector<16x128xf32>, vector<128x32xf32>, vector<16x32xf32> -> vector<16x32xf32>
    %25 = arith.addf %21, %24 : vector<16x32xf32>
    %c0_19 = arith.constant 0 : index
    %c640_20 = arith.constant 640 : index
    %26 = vector.load %arg5[%c0_19, %c640_20] : memref<1x1024xf32, #tpu.memory_space<vmem>>, vector<1x32xf32>
    %27 = vector.broadcast %26 : vector<1x32xf32> to vector<16x32xf32>
    %28 = arith.addf %25, %27 : vector<16x32xf32>
    %cst_21 = arith.constant 0.000000e+00 : f32
    %29 = vector.broadcast %cst_21 : f32 to vector<16x32xf32>
    %30 = arith.maximumf %28, %29 : vector<16x32xf32>
    %c0_22 = arith.constant 0 : index
    %c0_23 = arith.constant 0 : index
    %31 = vector.load %arg4[%c0_22, %c0_23] : memref<32x480xf32, #tpu.memory_space<vmem>>, vector<32x32xf32>
    %cst_24 = arith.constant dense<0.000000e+00> : vector<16x32xf32>
    %32 = tpu.matmul %30, %31, %cst_24 {dimension_numbers = #tpu.dot_dimension_numbers<[1], [0], [0], [1], [0, 0, 1, 1], [], []>} : vector<16x32xf32>, vector<32x32xf32>, vector<16x32xf32> -> vector<16x32xf32>
    %c0_25 = arith.constant 0 : index
    %c672 = arith.constant 672 : index
    %33 = vector.load %arg5[%c0_25, %c672] : memref<1x1024xf32, #tpu.memory_space<vmem>>, vector<1x32xf32>
    %34 = vector.broadcast %33 : vector<1x32xf32> to vector<16x32xf32>
    %35 = arith.addf %32, %34 : vector<16x32xf32>
    %cst_26 = arith.constant 0.000000e+00 : f32
    %36 = vector.broadcast %cst_26 : f32 to vector<16x32xf32>
    %37 = arith.maximumf %35, %36 : vector<16x32xf32>
    %c0_27 = arith.constant 0 : index
    %c32 = arith.constant 32 : index
    %38 = vector.load %arg4[%c0_27, %c32] : memref<32x480xf32, #tpu.memory_space<vmem>>, vector<32x32xf32>
    %cst_28 = arith.constant dense<0.000000e+00> : vector<16x32xf32>
    %39 = tpu.matmul %30, %38, %cst_28 {dimension_numbers = #tpu.dot_dimension_numbers<[1], [0], [0], [1], [0, 0, 1, 1], [], []>} : vector<16x32xf32>, vector<32x32xf32>, vector<16x32xf32> -> vector<16x32xf32>
    %c0_29 = arith.constant 0 : index
    %c704 = arith.constant 704 : index
    %40 = vector.load %arg5[%c0_29, %c704] : memref<1x1024xf32, #tpu.memory_space<vmem>>, vector<1x32xf32>
    %41 = vector.broadcast %40 : vector<1x32xf32> to vector<16x32xf32>
    %42 = arith.addf %39, %41 : vector<16x32xf32>
    %cst_30 = arith.constant 0.000000e+00 : f32
    %43 = vector.broadcast %cst_30 : f32 to vector<16x32xf32>
    %44 = arith.maximumf %42, %43 : vector<16x32xf32>
    %45 = vector.extract_strided_slice %1 {offsets = [0, 96], sizes = [16, 32], strides = [1, 1]} : vector<16x128xf32> to vector<16x32xf32>
    %c0_31 = arith.constant 0 : index
    %c64 = arith.constant 64 : index
    %46 = vector.load %arg4[%c0_31, %c64] : memref<32x480xf32, #tpu.memory_space<vmem>>, vector<32x32xf32>
    %cst_32 = arith.constant dense<0.000000e+00> : vector<16x32xf32>
    %47 = tpu.matmul %45, %46, %cst_32 {dimension_numbers = #tpu.dot_dimension_numbers<[1], [0], [0], [1], [0, 0, 1, 1], [], []>} : vector<16x32xf32>, vector<32x32xf32>, vector<16x32xf32> -> vector<16x32xf32>
    %48 = tpu.transpose %45, [1, 0] : vector<16x32xf32> -> vector<32x16xf32>
    %cst_33 = arith.constant dense<0.000000e+00> : vector<16x16xf32>
    %49 = tpu.matmul %47, %48, %cst_33 {dimension_numbers = #tpu.dot_dimension_numbers<[1], [0], [0], [1], [0, 0, 1, 1], [], []>} : vector<16x32xf32>, vector<32x16xf32>, vector<16x16xf32> -> vector<16x16xf32>
    %c0_34 = arith.constant 0 : index
    %c768 = arith.constant 768 : index
    %50 = vector.load %arg5[%c0_34, %c768] : memref<1x1024xf32, #tpu.memory_space<vmem>>, vector<1x32xf32>
    %c0_35 = arith.constant 0 : index
    %c800 = arith.constant 800 : index
    %51 = vector.load %arg5[%c0_35, %c800] : memref<1x1024xf32, #tpu.memory_space<vmem>>, vector<1x32xf32>
    %c0_36 = arith.constant 0 : index
    %c832 = arith.constant 832 : index
    %52 = vector.load %arg5[%c0_36, %c832] : memref<1x1024xf32, #tpu.memory_space<vmem>>, vector<1x32xf32>
    %c0_37 = arith.constant 0 : index
    %c864 = arith.constant 864 : index
    %53 = vector.load %arg5[%c0_37, %c864] : memref<1x1024xf32, #tpu.memory_space<vmem>>, vector<1x1xf32>
    %c0_38 = arith.constant 0 : index
    %c865 = arith.constant 865 : index
    %54 = vector.load %arg5[%c0_38, %c865] : memref<1x1024xf32, #tpu.memory_space<vmem>>, vector<1x1xf32>
    %55 = vector.broadcast %50 : vector<1x32xf32> to vector<16x32xf32>
    %56 = arith.mulf %44, %55 : vector<16x32xf32>
    %57 = vector.broadcast %51 : vector<1x32xf32> to vector<16x32xf32>
    %58 = arith.addf %56, %57 : vector<16x32xf32>
    %59 = tpu.transpose %37, [1, 0] : vector<16x32xf32> -> vector<32x16xf32>
    %cst_39 = arith.constant dense<0.000000e+00> : vector<16x16xf32>
    %60 = tpu.matmul %58, %59, %cst_39 {dimension_numbers = #tpu.dot_dimension_numbers<[1], [0], [0], [1], [0, 0, 1, 1], [], []>} : vector<16x32xf32>, vector<32x16xf32>, vector<16x16xf32> -> vector<16x16xf32>
    %61 = vector.broadcast %52 : vector<1x32xf32> to vector<16x32xf32>
    %62 = arith.mulf %44, %61 : vector<16x32xf32>
    %cst_40 = arith.constant dense<0.000000e+00> : vector<16xf32>
    %63 = vector.multi_reduction <add>, %62, %cst_40 [1] : vector<16x32xf32> to vector<16xf32>
    %64 = vector.shape_cast %63 : vector<16xf32> to vector<16x1xf32>
    %65 = vector.broadcast %64 : vector<16x1xf32> to vector<16x16xf32>
    %66 = arith.addf %60, %65 : vector<16x16xf32>
    %67 = vector.broadcast %53 : vector<1x1xf32> to vector<16x16xf32>
    %68 = arith.mulf %67, %49 : vector<16x16xf32>
    %69 = arith.addf %66, %68 : vector<16x16xf32>
    %70 = vector.broadcast %54 : vector<1x1xf32> to vector<16x16xf32>
    %71 = arith.addf %69, %70 : vector<16x16xf32>
    %72 = arith.negf %71 : vector<16x16xf32>
    %73 = math.exp %72 : vector<16x16xf32>
    %cst_41 = arith.constant 1.000000e+00 : f32
    %74 = vector.broadcast %cst_41 : f32 to vector<16x16xf32>
    %75 = arith.addf %74, %73 : vector<16x16xf32>
    %76 = arith.divf %74, %75 : vector<16x16xf32>
    %77 = arith.mulf %76, %49 : vector<16x16xf32>
    %c0_42 = arith.constant 0 : index
    %c768_43 = arith.constant 768 : index
    %78 = vector.load %arg3[%c0_42, %c768_43] : memref<128x1152xf32, #tpu.memory_space<vmem>>, vector<128x128xf32>
    %cst_44 = arith.constant dense<0.000000e+00> : vector<16x128xf32>
    %79 = tpu.matmul %0, %78, %cst_44 {dimension_numbers = #tpu.dot_dimension_numbers<[1], [0], [0], [1], [0, 0, 1, 1], [], []>} : vector<16x128xf32>, vector<128x128xf32>, vector<16x128xf32> -> vector<16x128xf32>
    %c0_45 = arith.constant 0 : index
    %c896 = arith.constant 896 : index
    %80 = vector.load %arg3[%c0_45, %c896] : memref<128x1152xf32, #tpu.memory_space<vmem>>, vector<128x128xf32>
    %cst_46 = arith.constant dense<0.000000e+00> : vector<16x128xf32>
    %81 = tpu.matmul %8, %80, %cst_46 {dimension_numbers = #tpu.dot_dimension_numbers<[1], [0], [0], [1], [0, 0, 1, 1], [], []>} : vector<16x128xf32>, vector<128x128xf32>, vector<16x128xf32> -> vector<16x128xf32>
    %82 = arith.addf %79, %81 : vector<16x128xf32>
    %c0_47 = arith.constant 0 : index
    %c384 = arith.constant 384 : index
    %83 = vector.load %arg5[%c0_47, %c384] : memref<1x1024xf32, #tpu.memory_space<vmem>>, vector<1x128xf32>
    %84 = vector.broadcast %83 : vector<1x128xf32> to vector<16x128xf32>
    %85 = arith.addf %82, %84 : vector<16x128xf32>
    %c0_48 = arith.constant 0 : index
    %c0_49 = arith.constant 0 : index
    %86 = vector.load %arg7[%c0_48, %c0_49] : memref<16x128xf32, #tpu.memory_space<vmem>>, vector<16x128xf32>
    tpu.vector_store %arg7[%c0_48, %c0_49], %85 {strides = array<i32>} : memref<16x128xf32, #tpu.memory_space<vmem>>, vector<16x128xf32>,
    %c0_50 = arith.constant 0 : index
    %c96 = arith.constant 96 : index
    %87 = vector.load %arg4[%c0_50, %c96] : memref<32x480xf32, #tpu.memory_space<vmem>>, vector<32x128xf32>
    %cst_51 = arith.constant 0.000000e+00 : f32
    %88 = vector.broadcast %cst_51 : f32 to vector<2x16xf32>
    %cst_52 = arith.constant 0.000000e+00 : f32
    %89 = vector.broadcast %cst_52 : f32 to vector<2x32xf32>
    %c0_i32 = arith.constant 0 : i32
    %c7_i32 = arith.constant 7 : i32
    %90 = arith.subi %c7_i32, %c0_i32 : i32
    %cst_53 = arith.constant dense<0.000000e+00> : vector<2x128xf32>
    %91 = tpu.matmul %89, %87, %cst_53 {dimension_numbers = #tpu.dot_dimension_numbers<[1], [0], [0], [1], [0, 0, 1, 1], [], []>} : vector<2x32xf32>, vector<32x128xf32>, vector<2x128xf32> -> vector<2x128xf32>
    %c2_i32 = arith.constant 2 : i32
    %92 = arith.muli %c0_i32, %c2_i32 : i32
    %93 = arith.index_cast %92 : i32 to index
    %c0_54 = arith.constant 0 : index
    %94 = vector.load %arg7[%93, %c0_54] : memref<16x128xf32, #tpu.memory_space<vmem>>, vector<2x128xf32>
    %95 = arith.addf %94, %91 : vector<2x128xf32>
    %96 = vector.extract_strided_slice %95 {offsets = [0, 0], sizes = [2, 64], strides = [1, 1]} : vector<2x128xf32> to vector<2x64xf32>
    %c2_i32_55 = arith.constant 2 : i32
    %97 = arith.muli %90, %c2_i32_55 : i32
    %98 = arith.index_cast %97 : i32 to index
    %c0_56 = arith.constant 0 : index
    %99 = vector.load %arg7[%98, %c0_56] : memref<16x128xf32, #tpu.memory_space<vmem>>, vector<2x128xf32>
    %100 = arith.addf %99, %91 : vector<2x128xf32>
    %101 = vector.extract_strided_slice %100 {offsets = [0, 64], sizes = [2, 64], strides = [1, 1]} : vector<2x128xf32> to vector<2x64xf32>
    %102 = vector.extract_strided_slice %96 {offsets = [0, 0], sizes = [2, 48], strides = [1, 1]} : vector<2x64xf32> to vector<2x48xf32>
    %103 = arith.negf %102 : vector<2x48xf32>
    %104 = math.exp %103 : vector<2x48xf32>
    %cst_57 = arith.constant 1.000000e+00 : f32
    %105 = vector.broadcast %cst_57 : f32 to vector<2x48xf32>
    %106 = arith.addf %105, %104 : vector<2x48xf32>
    %107 = arith.divf %105, %106 : vector<2x48xf32>
    %108 = vector.extract_strided_slice %96 {offsets = [0, 48], sizes = [2, 16], strides = [1, 1]} : vector<2x64xf32> to vector<2x16xf32>
    %109 = math.tanh %108 : vector<2x16xf32>
    %110 = vector.extract_strided_slice %101 {offsets = [0, 0], sizes = [2, 48], strides = [1, 1]} : vector<2x64xf32> to vector<2x48xf32>
    %111 = arith.negf %110 : vector<2x48xf32>
    %112 = math.exp %111 : vector<2x48xf32>
    %cst_58 = arith.constant 1.000000e+00 : f32
    %113 = vector.broadcast %cst_58 : f32 to vector<2x48xf32>
    %114 = arith.addf %113, %112 : vector<2x48xf32>
    %115 = arith.divf %113, %114 : vector<2x48xf32>
    %116 = vector.extract_strided_slice %101 {offsets = [0, 48], sizes = [2, 16], strides = [1, 1]} : vector<2x64xf32> to vector<2x16xf32>
    %117 = math.tanh %116 : vector<2x16xf32>
    %118 = vector.extract_strided_slice %107 {offsets = [0, 16], sizes = [2, 16], strides = [1, 1]} : vector<2x48xf32> to vector<2x16xf32>
    %119 = arith.mulf %118, %88 : vector<2x16xf32>
    %120 = vector.extract_strided_slice %107 {offsets = [0, 0], sizes = [2, 16], strides = [1, 1]} : vector<2x48xf32> to vector<2x16xf32>
    %121 = arith.mulf %120, %109 : vector<2x16xf32>
    %122 = arith.addf %119, %121 : vector<2x16xf32>
    %123 = vector.extract_strided_slice %115 {offsets = [0, 16], sizes = [2, 16], strides = [1, 1]} : vector<2x48xf32> to vector<2x16xf32>
    %124 = arith.mulf %123, %88 : vector<2x16xf32>
    %125 = vector.extract_strided_slice %115 {offsets = [0, 0], sizes = [2, 16], strides = [1, 1]} : vector<2x48xf32> to vector<2x16xf32>
    %126 = arith.mulf %125, %117 : vector<2x16xf32>
    %127 = arith.addf %124, %126 : vector<2x16xf32>
    %128 = vector.extract_strided_slice %107 {offsets = [0, 32], sizes = [2, 16], strides = [1, 1]} : vector<2x48xf32> to vector<2x16xf32>
    %129 = math.tanh %122 : vector<2x16xf32>
    %130 = arith.mulf %128, %129 : vector<2x16xf32>
    %131 = vector.extract_strided_slice %115 {offsets = [0, 32], sizes = [2, 16], strides = [1, 1]} : vector<2x48xf32> to vector<2x16xf32>
    %132 = math.tanh %127 : vector<2x16xf32>
    %133 = arith.mulf %131, %132 : vector<2x16xf32>
    %c2_i32_59 = arith.constant 2 : i32
    %134 = arith.muli %c0_i32, %c2_i32_59 : i32
    %135 = arith.index_cast %134 : i32 to index
    %c0_60 = arith.constant 0 : index
    %136 = vector.load %arg8[%135, %c0_60] : memref<16x64xf32, #tpu.memory_space<vmem>>, vector<2x16xf32>
    tpu.vector_store %arg8[%135, %c0_60], %130 {strides = array<i32>} : memref<16x64xf32, #tpu.memory_space<vmem>>, vector<2x16xf32>,
    %c2_i32_61 = arith.constant 2 : i32
    %137 = arith.muli %90, %c2_i32_61 : i32
    %138 = arith.index_cast %137 : i32 to index
    %c16 = arith.constant 16 : index
    %139 = vector.load %arg8[%138, %c16] : memref<16x64xf32, #tpu.memory_space<vmem>>, vector<2x16xf32>
    tpu.vector_store %arg8[%138, %c16], %133 {strides = array<i32>} : memref<16x64xf32, #tpu.memory_space<vmem>>, vector<2x16xf32>,
    %140 = tpu.concatenate %130, %133 in 1 : vector<2x16xf32>, vector<2x16xf32> -> vector<2x32xf32>
    %c1_i32 = arith.constant 1 : i32
    %c7_i32_62 = arith.constant 7 : i32
    %141 = arith.subi %c7_i32_62, %c1_i32 : i32
    %cst_63 = arith.constant dense<0.000000e+00> : vector<2x128xf32>
    %142 = tpu.matmul %140, %87, %cst_63 {dimension_numbers = #tpu.dot_dimension_numbers<[1], [0], [0], [1], [0, 0, 1, 1], [], []>} : vector<2x32xf32>, vector<32x128xf32>, vector<2x128xf32> -> vector<2x128xf32>
    %c2_i32_64 = arith.constant 2 : i32
    %143 = arith.muli %c1_i32, %c2_i32_64 : i32
    %144 = arith.index_cast %143 : i32 to index
    %c0_65 = arith.constant 0 : index
    %145 = vector.load %arg7[%144, %c0_65] : memref<16x128xf32, #tpu.memory_space<vmem>>, vector<2x128xf32>
    %146 = arith.addf %145, %142 : vector<2x128xf32>
    %147 = vector.extract_strided_slice %146 {offsets = [0, 0], sizes = [2, 64], strides = [1, 1]} : vector<2x128xf32> to vector<2x64xf32>
    %c2_i32_66 = arith.constant 2 : i32
    %148 = arith.muli %141, %c2_i32_66 : i32
    %149 = arith.index_cast %148 : i32 to index
    %c0_67 = arith.constant 0 : index
    %150 = vector.load %arg7[%149, %c0_67] : memref<16x128xf32, #tpu.memory_space<vmem>>, vector<2x128xf32>
    %151 = arith.addf %150, %142 : vector<2x128xf32>
    %152 = vector.extract_strided_slice %151 {offsets = [0, 64], sizes = [2, 64], strides = [1, 1]} : vector<2x128xf32> to vector<2x64xf32>
    %153 = vector.extract_strided_slice %147 {offsets = [0, 0], sizes = [2, 48], strides = [1, 1]} : vector<2x64xf32> to vector<2x48xf32>
    %154 = arith.negf %153 : vector<2x48xf32>
    %155 = math.exp %154 : vector<2x48xf32>
    %cst_68 = arith.constant 1.000000e+00 : f32
    %156 = vector.broadcast %cst_68 : f32 to vector<2x48xf32>
    %157 = arith.addf %156, %155 : vector<2x48xf32>
    %158 = arith.divf %156, %157 : vector<2x48xf32>
    %159 = vector.extract_strided_slice %147 {offsets = [0, 48], sizes = [2, 16], strides = [1, 1]} : vector<2x64xf32> to vector<2x16xf32>
    %160 = math.tanh %159 : vector<2x16xf32>
    %161 = vector.extract_strided_slice %152 {offsets = [0, 0], sizes = [2, 48], strides = [1, 1]} : vector<2x64xf32> to vector<2x48xf32>
    %162 = arith.negf %161 : vector<2x48xf32>
    %163 = math.exp %162 : vector<2x48xf32>
    %cst_69 = arith.constant 1.000000e+00 : f32
    %164 = vector.broadcast %cst_69 : f32 to vector<2x48xf32>
    %165 = arith.addf %164, %163 : vector<2x48xf32>
    %166 = arith.divf %164, %165 : vector<2x48xf32>
    %167 = vector.extract_strided_slice %152 {offsets = [0, 48], sizes = [2, 16], strides = [1, 1]} : vector<2x64xf32> to vector<2x16xf32>
    %168 = math.tanh %167 : vector<2x16xf32>
    %169 = vector.extract_strided_slice %158 {offsets = [0, 16], sizes = [2, 16], strides = [1, 1]} : vector<2x48xf32> to vector<2x16xf32>
    %170 = arith.mulf %169, %122 : vector<2x16xf32>
    %171 = vector.extract_strided_slice %158 {offsets = [0, 0], sizes = [2, 16], strides = [1, 1]} : vector<2x48xf32> to vector<2x16xf32>
    %172 = arith.mulf %171, %160 : vector<2x16xf32>
    %173 = arith.addf %170, %172 : vector<2x16xf32>
    %174 = vector.extract_strided_slice %166 {offsets = [0, 16], sizes = [2, 16], strides = [1, 1]} : vector<2x48xf32> to vector<2x16xf32>
    %175 = arith.mulf %174, %127 : vector<2x16xf32>
    %176 = vector.extract_strided_slice %166 {offsets = [0, 0], sizes = [2, 16], strides = [1, 1]} : vector<2x48xf32> to vector<2x16xf32>
    %177 = arith.mulf %176, %168 : vector<2x16xf32>
    %178 = arith.addf %175, %177 : vector<2x16xf32>
    %179 = vector.extract_strided_slice %158 {offsets = [0, 32], sizes = [2, 16], strides = [1, 1]} : vector<2x48xf32> to vector<2x16xf32>
    %180 = math.tanh %173 : vector<2x16xf32>
    %181 = arith.mulf %179, %180 : vector<2x16xf32>
    %182 = vector.extract_strided_slice %166 {offsets = [0, 32], sizes = [2, 16], strides = [1, 1]} : vector<2x48xf32> to vector<2x16xf32>
    %183 = math.tanh %178 : vector<2x16xf32>
    %184 = arith.mulf %182, %183 : vector<2x16xf32>
    %c2_i32_70 = arith.constant 2 : i32
    %185 = arith.muli %c1_i32, %c2_i32_70 : i32
    %186 = arith.index_cast %185 : i32 to index
    %c0_71 = arith.constant 0 : index
    %187 = vector.load %arg8[%186, %c0_71] : memref<16x64xf32, #tpu.memory_space<vmem>>, vector<2x16xf32>
    tpu.vector_store %arg8[%186, %c0_71], %181 {strides = array<i32>} : memref<16x64xf32, #tpu.memory_space<vmem>>, vector<2x16xf32>,
    %c2_i32_72 = arith.constant 2 : i32
    %188 = arith.muli %141, %c2_i32_72 : i32
    %189 = arith.index_cast %188 : i32 to index
    %c16_73 = arith.constant 16 : index
    %190 = vector.load %arg8[%189, %c16_73] : memref<16x64xf32, #tpu.memory_space<vmem>>, vector<2x16xf32>
    tpu.vector_store %arg8[%189, %c16_73], %184 {strides = array<i32>} : memref<16x64xf32, #tpu.memory_space<vmem>>, vector<2x16xf32>,
    %191 = tpu.concatenate %181, %184 in 1 : vector<2x16xf32>, vector<2x16xf32> -> vector<2x32xf32>
    %c2_i32_74 = arith.constant 2 : i32
    %c7_i32_75 = arith.constant 7 : i32
    %192 = arith.subi %c7_i32_75, %c2_i32_74 : i32
    %cst_76 = arith.constant dense<0.000000e+00> : vector<2x128xf32>
    %193 = tpu.matmul %191, %87, %cst_76 {dimension_numbers = #tpu.dot_dimension_numbers<[1], [0], [0], [1], [0, 0, 1, 1], [], []>} : vector<2x32xf32>, vector<32x128xf32>, vector<2x128xf32> -> vector<2x128xf32>
    %c2_i32_77 = arith.constant 2 : i32
    %194 = arith.muli %c2_i32_74, %c2_i32_77 : i32
    %195 = arith.index_cast %194 : i32 to index
    %c0_78 = arith.constant 0 : index
    %196 = vector.load %arg7[%195, %c0_78] : memref<16x128xf32, #tpu.memory_space<vmem>>, vector<2x128xf32>
    %197 = arith.addf %196, %193 : vector<2x128xf32>
    %198 = vector.extract_strided_slice %197 {offsets = [0, 0], sizes = [2, 64], strides = [1, 1]} : vector<2x128xf32> to vector<2x64xf32>
    %c2_i32_79 = arith.constant 2 : i32
    %199 = arith.muli %192, %c2_i32_79 : i32
    %200 = arith.index_cast %199 : i32 to index
    %c0_80 = arith.constant 0 : index
    %201 = vector.load %arg7[%200, %c0_80] : memref<16x128xf32, #tpu.memory_space<vmem>>, vector<2x128xf32>
    %202 = arith.addf %201, %193 : vector<2x128xf32>
    %203 = vector.extract_strided_slice %202 {offsets = [0, 64], sizes = [2, 64], strides = [1, 1]} : vector<2x128xf32> to vector<2x64xf32>
    %204 = vector.extract_strided_slice %198 {offsets = [0, 0], sizes = [2, 48], strides = [1, 1]} : vector<2x64xf32> to vector<2x48xf32>
    %205 = arith.negf %204 : vector<2x48xf32>
    %206 = math.exp %205 : vector<2x48xf32>
    %cst_81 = arith.constant 1.000000e+00 : f32
    %207 = vector.broadcast %cst_81 : f32 to vector<2x48xf32>
    %208 = arith.addf %207, %206 : vector<2x48xf32>
    %209 = arith.divf %207, %208 : vector<2x48xf32>
    %210 = vector.extract_strided_slice %198 {offsets = [0, 48], sizes = [2, 16], strides = [1, 1]} : vector<2x64xf32> to vector<2x16xf32>
    %211 = math.tanh %210 : vector<2x16xf32>
    %212 = vector.extract_strided_slice %203 {offsets = [0, 0], sizes = [2, 48], strides = [1, 1]} : vector<2x64xf32> to vector<2x48xf32>
    %213 = arith.negf %212 : vector<2x48xf32>
    %214 = math.exp %213 : vector<2x48xf32>
    %cst_82 = arith.constant 1.000000e+00 : f32
    %215 = vector.broadcast %cst_82 : f32 to vector<2x48xf32>
    %216 = arith.addf %215, %214 : vector<2x48xf32>
    %217 = arith.divf %215, %216 : vector<2x48xf32>
    %218 = vector.extract_strided_slice %203 {offsets = [0, 48], sizes = [2, 16], strides = [1, 1]} : vector<2x64xf32> to vector<2x16xf32>
    %219 = math.tanh %218 : vector<2x16xf32>
    %220 = vector.extract_strided_slice %209 {offsets = [0, 16], sizes = [2, 16], strides = [1, 1]} : vector<2x48xf32> to vector<2x16xf32>
    %221 = arith.mulf %220, %173 : vector<2x16xf32>
    %222 = vector.extract_strided_slice %209 {offsets = [0, 0], sizes = [2, 16], strides = [1, 1]} : vector<2x48xf32> to vector<2x16xf32>
    %223 = arith.mulf %222, %211 : vector<2x16xf32>
    %224 = arith.addf %221, %223 : vector<2x16xf32>
    %225 = vector.extract_strided_slice %217 {offsets = [0, 16], sizes = [2, 16], strides = [1, 1]} : vector<2x48xf32> to vector<2x16xf32>
    %226 = arith.mulf %225, %178 : vector<2x16xf32>
    %227 = vector.extract_strided_slice %217 {offsets = [0, 0], sizes = [2, 16], strides = [1, 1]} : vector<2x48xf32> to vector<2x16xf32>
    %228 = arith.mulf %227, %219 : vector<2x16xf32>
    %229 = arith.addf %226, %228 : vector<2x16xf32>
    %230 = vector.extract_strided_slice %209 {offsets = [0, 32], sizes = [2, 16], strides = [1, 1]} : vector<2x48xf32> to vector<2x16xf32>
    %231 = math.tanh %224 : vector<2x16xf32>
    %232 = arith.mulf %230, %231 : vector<2x16xf32>
    %233 = vector.extract_strided_slice %217 {offsets = [0, 32], sizes = [2, 16], strides = [1, 1]} : vector<2x48xf32> to vector<2x16xf32>
    %234 = math.tanh %229 : vector<2x16xf32>
    %235 = arith.mulf %233, %234 : vector<2x16xf32>
    %c2_i32_83 = arith.constant 2 : i32
    %236 = arith.muli %c2_i32_74, %c2_i32_83 : i32
    %237 = arith.index_cast %236 : i32 to index
    %c0_84 = arith.constant 0 : index
    %238 = vector.load %arg8[%237, %c0_84] : memref<16x64xf32, #tpu.memory_space<vmem>>, vector<2x16xf32>
    tpu.vector_store %arg8[%237, %c0_84], %232 {strides = array<i32>} : memref<16x64xf32, #tpu.memory_space<vmem>>, vector<2x16xf32>,
    %c2_i32_85 = arith.constant 2 : i32
    %239 = arith.muli %192, %c2_i32_85 : i32
    %240 = arith.index_cast %239 : i32 to index
    %c16_86 = arith.constant 16 : index
    %241 = vector.load %arg8[%240, %c16_86] : memref<16x64xf32, #tpu.memory_space<vmem>>, vector<2x16xf32>
    tpu.vector_store %arg8[%240, %c16_86], %235 {strides = array<i32>} : memref<16x64xf32, #tpu.memory_space<vmem>>, vector<2x16xf32>,
    %242 = tpu.concatenate %232, %235 in 1 : vector<2x16xf32>, vector<2x16xf32> -> vector<2x32xf32>
    %c3_i32 = arith.constant 3 : i32
    %c7_i32_87 = arith.constant 7 : i32
    %243 = arith.subi %c7_i32_87, %c3_i32 : i32
    %cst_88 = arith.constant dense<0.000000e+00> : vector<2x128xf32>
    %244 = tpu.matmul %242, %87, %cst_88 {dimension_numbers = #tpu.dot_dimension_numbers<[1], [0], [0], [1], [0, 0, 1, 1], [], []>} : vector<2x32xf32>, vector<32x128xf32>, vector<2x128xf32> -> vector<2x128xf32>
    %c2_i32_89 = arith.constant 2 : i32
    %245 = arith.muli %c3_i32, %c2_i32_89 : i32
    %246 = arith.index_cast %245 : i32 to index
    %c0_90 = arith.constant 0 : index
    %247 = vector.load %arg7[%246, %c0_90] : memref<16x128xf32, #tpu.memory_space<vmem>>, vector<2x128xf32>
    %248 = arith.addf %247, %244 : vector<2x128xf32>
    %249 = vector.extract_strided_slice %248 {offsets = [0, 0], sizes = [2, 64], strides = [1, 1]} : vector<2x128xf32> to vector<2x64xf32>
    %c2_i32_91 = arith.constant 2 : i32
    %250 = arith.muli %243, %c2_i32_91 : i32
    %251 = arith.index_cast %250 : i32 to index
    %c0_92 = arith.constant 0 : index
    %252 = vector.load %arg7[%251, %c0_92] : memref<16x128xf32, #tpu.memory_space<vmem>>, vector<2x128xf32>
    %253 = arith.addf %252, %244 : vector<2x128xf32>
    %254 = vector.extract_strided_slice %253 {offsets = [0, 64], sizes = [2, 64], strides = [1, 1]} : vector<2x128xf32> to vector<2x64xf32>
    %255 = vector.extract_strided_slice %249 {offsets = [0, 0], sizes = [2, 48], strides = [1, 1]} : vector<2x64xf32> to vector<2x48xf32>
    %256 = arith.negf %255 : vector<2x48xf32>
    %257 = math.exp %256 : vector<2x48xf32>
    %cst_93 = arith.constant 1.000000e+00 : f32
    %258 = vector.broadcast %cst_93 : f32 to vector<2x48xf32>
    %259 = arith.addf %258, %257 : vector<2x48xf32>
    %260 = arith.divf %258, %259 : vector<2x48xf32>
    %261 = vector.extract_strided_slice %249 {offsets = [0, 48], sizes = [2, 16], strides = [1, 1]} : vector<2x64xf32> to vector<2x16xf32>
    %262 = math.tanh %261 : vector<2x16xf32>
    %263 = vector.extract_strided_slice %254 {offsets = [0, 0], sizes = [2, 48], strides = [1, 1]} : vector<2x64xf32> to vector<2x48xf32>
    %264 = arith.negf %263 : vector<2x48xf32>
    %265 = math.exp %264 : vector<2x48xf32>
    %cst_94 = arith.constant 1.000000e+00 : f32
    %266 = vector.broadcast %cst_94 : f32 to vector<2x48xf32>
    %267 = arith.addf %266, %265 : vector<2x48xf32>
    %268 = arith.divf %266, %267 : vector<2x48xf32>
    %269 = vector.extract_strided_slice %254 {offsets = [0, 48], sizes = [2, 16], strides = [1, 1]} : vector<2x64xf32> to vector<2x16xf32>
    %270 = math.tanh %269 : vector<2x16xf32>
    %271 = vector.extract_strided_slice %260 {offsets = [0, 16], sizes = [2, 16], strides = [1, 1]} : vector<2x48xf32> to vector<2x16xf32>
    %272 = arith.mulf %271, %224 : vector<2x16xf32>
    %273 = vector.extract_strided_slice %260 {offsets = [0, 0], sizes = [2, 16], strides = [1, 1]} : vector<2x48xf32> to vector<2x16xf32>
    %274 = arith.mulf %273, %262 : vector<2x16xf32>
    %275 = arith.addf %272, %274 : vector<2x16xf32>
    %276 = vector.extract_strided_slice %268 {offsets = [0, 16], sizes = [2, 16], strides = [1, 1]} : vector<2x48xf32> to vector<2x16xf32>
    %277 = arith.mulf %276, %229 : vector<2x16xf32>
    %278 = vector.extract_strided_slice %268 {offsets = [0, 0], sizes = [2, 16], strides = [1, 1]} : vector<2x48xf32> to vector<2x16xf32>
    %279 = arith.mulf %278, %270 : vector<2x16xf32>
    %280 = arith.addf %277, %279 : vector<2x16xf32>
    %281 = vector.extract_strided_slice %260 {offsets = [0, 32], sizes = [2, 16], strides = [1, 1]} : vector<2x48xf32> to vector<2x16xf32>
    %282 = math.tanh %275 : vector<2x16xf32>
    %283 = arith.mulf %281, %282 : vector<2x16xf32>
    %284 = vector.extract_strided_slice %268 {offsets = [0, 32], sizes = [2, 16], strides = [1, 1]} : vector<2x48xf32> to vector<2x16xf32>
    %285 = math.tanh %280 : vector<2x16xf32>
    %286 = arith.mulf %284, %285 : vector<2x16xf32>
    %c2_i32_95 = arith.constant 2 : i32
    %287 = arith.muli %c3_i32, %c2_i32_95 : i32
    %288 = arith.index_cast %287 : i32 to index
    %c0_96 = arith.constant 0 : index
    %289 = vector.load %arg8[%288, %c0_96] : memref<16x64xf32, #tpu.memory_space<vmem>>, vector<2x16xf32>
    tpu.vector_store %arg8[%288, %c0_96], %283 {strides = array<i32>} : memref<16x64xf32, #tpu.memory_space<vmem>>, vector<2x16xf32>,
    %c2_i32_97 = arith.constant 2 : i32
    %290 = arith.muli %243, %c2_i32_97 : i32
    %291 = arith.index_cast %290 : i32 to index
    %c16_98 = arith.constant 16 : index
    %292 = vector.load %arg8[%291, %c16_98] : memref<16x64xf32, #tpu.memory_space<vmem>>, vector<2x16xf32>
    tpu.vector_store %arg8[%291, %c16_98], %286 {strides = array<i32>} : memref<16x64xf32, #tpu.memory_space<vmem>>, vector<2x16xf32>,
    %293 = tpu.concatenate %283, %286 in 1 : vector<2x16xf32>, vector<2x16xf32> -> vector<2x32xf32>
    %c4_i32 = arith.constant 4 : i32
    %c7_i32_99 = arith.constant 7 : i32
    %294 = arith.subi %c7_i32_99, %c4_i32 : i32
    %cst_100 = arith.constant dense<0.000000e+00> : vector<2x128xf32>
    %295 = tpu.matmul %293, %87, %cst_100 {dimension_numbers = #tpu.dot_dimension_numbers<[1], [0], [0], [1], [0, 0, 1, 1], [], []>} : vector<2x32xf32>, vector<32x128xf32>, vector<2x128xf32> -> vector<2x128xf32>
    %c2_i32_101 = arith.constant 2 : i32
    %296 = arith.muli %c4_i32, %c2_i32_101 : i32
    %297 = arith.index_cast %296 : i32 to index
    %c0_102 = arith.constant 0 : index
    %298 = vector.load %arg7[%297, %c0_102] : memref<16x128xf32, #tpu.memory_space<vmem>>, vector<2x128xf32>
    %299 = arith.addf %298, %295 : vector<2x128xf32>
    %300 = vector.extract_strided_slice %299 {offsets = [0, 0], sizes = [2, 64], strides = [1, 1]} : vector<2x128xf32> to vector<2x64xf32>
    %c2_i32_103 = arith.constant 2 : i32
    %301 = arith.muli %294, %c2_i32_103 : i32
    %302 = arith.index_cast %301 : i32 to index
    %c0_104 = arith.constant 0 : index
    %303 = vector.load %arg7[%302, %c0_104] : memref<16x128xf32, #tpu.memory_space<vmem>>, vector<2x128xf32>
    %304 = arith.addf %303, %295 : vector<2x128xf32>
    %305 = vector.extract_strided_slice %304 {offsets = [0, 64], sizes = [2, 64], strides = [1, 1]} : vector<2x128xf32> to vector<2x64xf32>
    %306 = vector.extract_strided_slice %300 {offsets = [0, 0], sizes = [2, 48], strides = [1, 1]} : vector<2x64xf32> to vector<2x48xf32>
    %307 = arith.negf %306 : vector<2x48xf32>
    %308 = math.exp %307 : vector<2x48xf32>
    %cst_105 = arith.constant 1.000000e+00 : f32
    %309 = vector.broadcast %cst_105 : f32 to vector<2x48xf32>
    %310 = arith.addf %309, %308 : vector<2x48xf32>
    %311 = arith.divf %309, %310 : vector<2x48xf32>
    %312 = vector.extract_strided_slice %300 {offsets = [0, 48], sizes = [2, 16], strides = [1, 1]} : vector<2x64xf32> to vector<2x16xf32>
    %313 = math.tanh %312 : vector<2x16xf32>
    %314 = vector.extract_strided_slice %305 {offsets = [0, 0], sizes = [2, 48], strides = [1, 1]} : vector<2x64xf32> to vector<2x48xf32>
    %315 = arith.negf %314 : vector<2x48xf32>
    %316 = math.exp %315 : vector<2x48xf32>
    %cst_106 = arith.constant 1.000000e+00 : f32
    %317 = vector.broadcast %cst_106 : f32 to vector<2x48xf32>
    %318 = arith.addf %317, %316 : vector<2x48xf32>
    %319 = arith.divf %317, %318 : vector<2x48xf32>
    %320 = vector.extract_strided_slice %305 {offsets = [0, 48], sizes = [2, 16], strides = [1, 1]} : vector<2x64xf32> to vector<2x16xf32>
    %321 = math.tanh %320 : vector<2x16xf32>
    %322 = vector.extract_strided_slice %311 {offsets = [0, 16], sizes = [2, 16], strides = [1, 1]} : vector<2x48xf32> to vector<2x16xf32>
    %323 = arith.mulf %322, %275 : vector<2x16xf32>
    %324 = vector.extract_strided_slice %311 {offsets = [0, 0], sizes = [2, 16], strides = [1, 1]} : vector<2x48xf32> to vector<2x16xf32>
    %325 = arith.mulf %324, %313 : vector<2x16xf32>
    %326 = arith.addf %323, %325 : vector<2x16xf32>
    %327 = vector.extract_strided_slice %319 {offsets = [0, 16], sizes = [2, 16], strides = [1, 1]} : vector<2x48xf32> to vector<2x16xf32>
    %328 = arith.mulf %327, %280 : vector<2x16xf32>
    %329 = vector.extract_strided_slice %319 {offsets = [0, 0], sizes = [2, 16], strides = [1, 1]} : vector<2x48xf32> to vector<2x16xf32>
    %330 = arith.mulf %329, %321 : vector<2x16xf32>
    %331 = arith.addf %328, %330 : vector<2x16xf32>
    %332 = vector.extract_strided_slice %311 {offsets = [0, 32], sizes = [2, 16], strides = [1, 1]} : vector<2x48xf32> to vector<2x16xf32>
    %333 = math.tanh %326 : vector<2x16xf32>
    %334 = arith.mulf %332, %333 : vector<2x16xf32>
    %335 = vector.extract_strided_slice %319 {offsets = [0, 32], sizes = [2, 16], strides = [1, 1]} : vector<2x48xf32> to vector<2x16xf32>
    %336 = math.tanh %331 : vector<2x16xf32>
    %337 = arith.mulf %335, %336 : vector<2x16xf32>
    %c2_i32_107 = arith.constant 2 : i32
    %338 = arith.muli %c4_i32, %c2_i32_107 : i32
    %339 = arith.index_cast %338 : i32 to index
    %c0_108 = arith.constant 0 : index
    %340 = vector.load %arg8[%339, %c0_108] : memref<16x64xf32, #tpu.memory_space<vmem>>, vector<2x16xf32>
    tpu.vector_store %arg8[%339, %c0_108], %334 {strides = array<i32>} : memref<16x64xf32, #tpu.memory_space<vmem>>, vector<2x16xf32>,
    %c2_i32_109 = arith.constant 2 : i32
    %341 = arith.muli %294, %c2_i32_109 : i32
    %342 = arith.index_cast %341 : i32 to index
    %c16_110 = arith.constant 16 : index
    %343 = vector.load %arg8[%342, %c16_110] : memref<16x64xf32, #tpu.memory_space<vmem>>, vector<2x16xf32>
    tpu.vector_store %arg8[%342, %c16_110], %337 {strides = array<i32>} : memref<16x64xf32, #tpu.memory_space<vmem>>, vector<2x16xf32>,
    %344 = tpu.concatenate %334, %337 in 1 : vector<2x16xf32>, vector<2x16xf32> -> vector<2x32xf32>
    %c5_i32 = arith.constant 5 : i32
    %c7_i32_111 = arith.constant 7 : i32
    %345 = arith.subi %c7_i32_111, %c5_i32 : i32
    %cst_112 = arith.constant dense<0.000000e+00> : vector<2x128xf32>
    %346 = tpu.matmul %344, %87, %cst_112 {dimension_numbers = #tpu.dot_dimension_numbers<[1], [0], [0], [1], [0, 0, 1, 1], [], []>} : vector<2x32xf32>, vector<32x128xf32>, vector<2x128xf32> -> vector<2x128xf32>
    %c2_i32_113 = arith.constant 2 : i32
    %347 = arith.muli %c5_i32, %c2_i32_113 : i32
    %348 = arith.index_cast %347 : i32 to index
    %c0_114 = arith.constant 0 : index
    %349 = vector.load %arg7[%348, %c0_114] : memref<16x128xf32, #tpu.memory_space<vmem>>, vector<2x128xf32>
    %350 = arith.addf %349, %346 : vector<2x128xf32>
    %351 = vector.extract_strided_slice %350 {offsets = [0, 0], sizes = [2, 64], strides = [1, 1]} : vector<2x128xf32> to vector<2x64xf32>
    %c2_i32_115 = arith.constant 2 : i32
    %352 = arith.muli %345, %c2_i32_115 : i32
    %353 = arith.index_cast %352 : i32 to index
    %c0_116 = arith.constant 0 : index
    %354 = vector.load %arg7[%353, %c0_116] : memref<16x128xf32, #tpu.memory_space<vmem>>, vector<2x128xf32>
    %355 = arith.addf %354, %346 : vector<2x128xf32>
    %356 = vector.extract_strided_slice %355 {offsets = [0, 64], sizes = [2, 64], strides = [1, 1]} : vector<2x128xf32> to vector<2x64xf32>
    %357 = vector.extract_strided_slice %351 {offsets = [0, 0], sizes = [2, 48], strides = [1, 1]} : vector<2x64xf32> to vector<2x48xf32>
    %358 = arith.negf %357 : vector<2x48xf32>
    %359 = math.exp %358 : vector<2x48xf32>
    %cst_117 = arith.constant 1.000000e+00 : f32
    %360 = vector.broadcast %cst_117 : f32 to vector<2x48xf32>
    %361 = arith.addf %360, %359 : vector<2x48xf32>
    %362 = arith.divf %360, %361 : vector<2x48xf32>
    %363 = vector.extract_strided_slice %351 {offsets = [0, 48], sizes = [2, 16], strides = [1, 1]} : vector<2x64xf32> to vector<2x16xf32>
    %364 = math.tanh %363 : vector<2x16xf32>
    %365 = vector.extract_strided_slice %356 {offsets = [0, 0], sizes = [2, 48], strides = [1, 1]} : vector<2x64xf32> to vector<2x48xf32>
    %366 = arith.negf %365 : vector<2x48xf32>
    %367 = math.exp %366 : vector<2x48xf32>
    %cst_118 = arith.constant 1.000000e+00 : f32
    %368 = vector.broadcast %cst_118 : f32 to vector<2x48xf32>
    %369 = arith.addf %368, %367 : vector<2x48xf32>
    %370 = arith.divf %368, %369 : vector<2x48xf32>
    %371 = vector.extract_strided_slice %356 {offsets = [0, 48], sizes = [2, 16], strides = [1, 1]} : vector<2x64xf32> to vector<2x16xf32>
    %372 = math.tanh %371 : vector<2x16xf32>
    %373 = vector.extract_strided_slice %362 {offsets = [0, 16], sizes = [2, 16], strides = [1, 1]} : vector<2x48xf32> to vector<2x16xf32>
    %374 = arith.mulf %373, %326 : vector<2x16xf32>
    %375 = vector.extract_strided_slice %362 {offsets = [0, 0], sizes = [2, 16], strides = [1, 1]} : vector<2x48xf32> to vector<2x16xf32>
    %376 = arith.mulf %375, %364 : vector<2x16xf32>
    %377 = arith.addf %374, %376 : vector<2x16xf32>
    %378 = vector.extract_strided_slice %370 {offsets = [0, 16], sizes = [2, 16], strides = [1, 1]} : vector<2x48xf32> to vector<2x16xf32>
    %379 = arith.mulf %378, %331 : vector<2x16xf32>
    %380 = vector.extract_strided_slice %370 {offsets = [0, 0], sizes = [2, 16], strides = [1, 1]} : vector<2x48xf32> to vector<2x16xf32>
    %381 = arith.mulf %380, %372 : vector<2x16xf32>
    %382 = arith.addf %379, %381 : vector<2x16xf32>
    %383 = vector.extract_strided_slice %362 {offsets = [0, 32], sizes = [2, 16], strides = [1, 1]} : vector<2x48xf32> to vector<2x16xf32>
    %384 = math.tanh %377 : vector<2x16xf32>
    %385 = arith.mulf %383, %384 : vector<2x16xf32>
    %386 = vector.extract_strided_slice %370 {offsets = [0, 32], sizes = [2, 16], strides = [1, 1]} : vector<2x48xf32> to vector<2x16xf32>
    %387 = math.tanh %382 : vector<2x16xf32>
    %388 = arith.mulf %386, %387 : vector<2x16xf32>
    %c2_i32_119 = arith.constant 2 : i32
    %389 = arith.muli %c5_i32, %c2_i32_119 : i32
    %390 = arith.index_cast %389 : i32 to index
    %c0_120 = arith.constant 0 : index
    %391 = vector.load %arg8[%390, %c0_120] : memref<16x64xf32, #tpu.memory_space<vmem>>, vector<2x16xf32>
    tpu.vector_store %arg8[%390, %c0_120], %385 {strides = array<i32>} : memref<16x64xf32, #tpu.memory_space<vmem>>, vector<2x16xf32>,
    %c2_i32_121 = arith.constant 2 : i32
    %392 = arith.muli %345, %c2_i32_121 : i32
    %393 = arith.index_cast %392 : i32 to index
    %c16_122 = arith.constant 16 : index
    %394 = vector.load %arg8[%393, %c16_122] : memref<16x64xf32, #tpu.memory_space<vmem>>, vector<2x16xf32>
    tpu.vector_store %arg8[%393, %c16_122], %388 {strides = array<i32>} : memref<16x64xf32, #tpu.memory_space<vmem>>, vector<2x16xf32>,
    %395 = tpu.concatenate %385, %388 in 1 : vector<2x16xf32>, vector<2x16xf32> -> vector<2x32xf32>
    %c6_i32 = arith.constant 6 : i32
    %c7_i32_123 = arith.constant 7 : i32
    %396 = arith.subi %c7_i32_123, %c6_i32 : i32
    %cst_124 = arith.constant dense<0.000000e+00> : vector<2x128xf32>
    %397 = tpu.matmul %395, %87, %cst_124 {dimension_numbers = #tpu.dot_dimension_numbers<[1], [0], [0], [1], [0, 0, 1, 1], [], []>} : vector<2x32xf32>, vector<32x128xf32>, vector<2x128xf32> -> vector<2x128xf32>
    %c2_i32_125 = arith.constant 2 : i32
    %398 = arith.muli %c6_i32, %c2_i32_125 : i32
    %399 = arith.index_cast %398 : i32 to index
    %c0_126 = arith.constant 0 : index
    %400 = vector.load %arg7[%399, %c0_126] : memref<16x128xf32, #tpu.memory_space<vmem>>, vector<2x128xf32>
    %401 = arith.addf %400, %397 : vector<2x128xf32>
    %402 = vector.extract_strided_slice %401 {offsets = [0, 0], sizes = [2, 64], strides = [1, 1]} : vector<2x128xf32> to vector<2x64xf32>
    %c2_i32_127 = arith.constant 2 : i32
    %403 = arith.muli %396, %c2_i32_127 : i32
    %404 = arith.index_cast %403 : i32 to index
    %c0_128 = arith.constant 0 : index
    %405 = vector.load %arg7[%404, %c0_128] : memref<16x128xf32, #tpu.memory_space<vmem>>, vector<2x128xf32>
    %406 = arith.addf %405, %397 : vector<2x128xf32>
    %407 = vector.extract_strided_slice %406 {offsets = [0, 64], sizes = [2, 64], strides = [1, 1]} : vector<2x128xf32> to vector<2x64xf32>
    %408 = vector.extract_strided_slice %402 {offsets = [0, 0], sizes = [2, 48], strides = [1, 1]} : vector<2x64xf32> to vector<2x48xf32>
    %409 = arith.negf %408 : vector<2x48xf32>
    %410 = math.exp %409 : vector<2x48xf32>
    %cst_129 = arith.constant 1.000000e+00 : f32
    %411 = vector.broadcast %cst_129 : f32 to vector<2x48xf32>
    %412 = arith.addf %411, %410 : vector<2x48xf32>
    %413 = arith.divf %411, %412 : vector<2x48xf32>
    %414 = vector.extract_strided_slice %402 {offsets = [0, 48], sizes = [2, 16], strides = [1, 1]} : vector<2x64xf32> to vector<2x16xf32>
    %415 = math.tanh %414 : vector<2x16xf32>
    %416 = vector.extract_strided_slice %407 {offsets = [0, 0], sizes = [2, 48], strides = [1, 1]} : vector<2x64xf32> to vector<2x48xf32>
    %417 = arith.negf %416 : vector<2x48xf32>
    %418 = math.exp %417 : vector<2x48xf32>
    %cst_130 = arith.constant 1.000000e+00 : f32
    %419 = vector.broadcast %cst_130 : f32 to vector<2x48xf32>
    %420 = arith.addf %419, %418 : vector<2x48xf32>
    %421 = arith.divf %419, %420 : vector<2x48xf32>
    %422 = vector.extract_strided_slice %407 {offsets = [0, 48], sizes = [2, 16], strides = [1, 1]} : vector<2x64xf32> to vector<2x16xf32>
    %423 = math.tanh %422 : vector<2x16xf32>
    %424 = vector.extract_strided_slice %413 {offsets = [0, 16], sizes = [2, 16], strides = [1, 1]} : vector<2x48xf32> to vector<2x16xf32>
    %425 = arith.mulf %424, %377 : vector<2x16xf32>
    %426 = vector.extract_strided_slice %413 {offsets = [0, 0], sizes = [2, 16], strides = [1, 1]} : vector<2x48xf32> to vector<2x16xf32>
    %427 = arith.mulf %426, %415 : vector<2x16xf32>
    %428 = arith.addf %425, %427 : vector<2x16xf32>
    %429 = vector.extract_strided_slice %421 {offsets = [0, 16], sizes = [2, 16], strides = [1, 1]} : vector<2x48xf32> to vector<2x16xf32>
    %430 = arith.mulf %429, %382 : vector<2x16xf32>
    %431 = vector.extract_strided_slice %421 {offsets = [0, 0], sizes = [2, 16], strides = [1, 1]} : vector<2x48xf32> to vector<2x16xf32>
    %432 = arith.mulf %431, %423 : vector<2x16xf32>
    %433 = arith.addf %430, %432 : vector<2x16xf32>
    %434 = vector.extract_strided_slice %413 {offsets = [0, 32], sizes = [2, 16], strides = [1, 1]} : vector<2x48xf32> to vector<2x16xf32>
    %435 = math.tanh %428 : vector<2x16xf32>
    %436 = arith.mulf %434, %435 : vector<2x16xf32>
    %437 = vector.extract_strided_slice %421 {offsets = [0, 32], sizes = [2, 16], strides = [1, 1]} : vector<2x48xf32> to vector<2x16xf32>
    %438 = math.tanh %433 : vector<2x16xf32>
    %439 = arith.mulf %437, %438 : vector<2x16xf32>
    %c2_i32_131 = arith.constant 2 : i32
    %440 = arith.muli %c6_i32, %c2_i32_131 : i32
    %441 = arith.index_cast %440 : i32 to index
    %c0_132 = arith.constant 0 : index
    %442 = vector.load %arg8[%441, %c0_132] : memref<16x64xf32, #tpu.memory_space<vmem>>, vector<2x16xf32>
    tpu.vector_store %arg8[%441, %c0_132], %436 {strides = array<i32>} : memref<16x64xf32, #tpu.memory_space<vmem>>, vector<2x16xf32>,
    %c2_i32_133 = arith.constant 2 : i32
    %443 = arith.muli %396, %c2_i32_133 : i32
    %444 = arith.index_cast %443 : i32 to index
    %c16_134 = arith.constant 16 : index
    %445 = vector.load %arg8[%444, %c16_134] : memref<16x64xf32, #tpu.memory_space<vmem>>, vector<2x16xf32>
    tpu.vector_store %arg8[%444, %c16_134], %439 {strides = array<i32>} : memref<16x64xf32, #tpu.memory_space<vmem>>, vector<2x16xf32>,
    %446 = tpu.concatenate %436, %439 in 1 : vector<2x16xf32>, vector<2x16xf32> -> vector<2x32xf32>
    %c7_i32_135 = arith.constant 7 : i32
    %c7_i32_136 = arith.constant 7 : i32
    %447 = arith.subi %c7_i32_136, %c7_i32_135 : i32
    %cst_137 = arith.constant dense<0.000000e+00> : vector<2x128xf32>
    %448 = tpu.matmul %446, %87, %cst_137 {dimension_numbers = #tpu.dot_dimension_numbers<[1], [0], [0], [1], [0, 0, 1, 1], [], []>} : vector<2x32xf32>, vector<32x128xf32>, vector<2x128xf32> -> vector<2x128xf32>
    %c2_i32_138 = arith.constant 2 : i32
    %449 = arith.muli %c7_i32_135, %c2_i32_138 : i32
    %450 = arith.index_cast %449 : i32 to index
    %c0_139 = arith.constant 0 : index
    %451 = vector.load %arg7[%450, %c0_139] : memref<16x128xf32, #tpu.memory_space<vmem>>, vector<2x128xf32>
    %452 = arith.addf %451, %448 : vector<2x128xf32>
    %453 = vector.extract_strided_slice %452 {offsets = [0, 0], sizes = [2, 64], strides = [1, 1]} : vector<2x128xf32> to vector<2x64xf32>
    %c2_i32_140 = arith.constant 2 : i32
    %454 = arith.muli %447, %c2_i32_140 : i32
    %455 = arith.index_cast %454 : i32 to index
    %c0_141 = arith.constant 0 : index
    %456 = vector.load %arg7[%455, %c0_141] : memref<16x128xf32, #tpu.memory_space<vmem>>, vector<2x128xf32>
    %457 = arith.addf %456, %448 : vector<2x128xf32>
    %458 = vector.extract_strided_slice %457 {offsets = [0, 64], sizes = [2, 64], strides = [1, 1]} : vector<2x128xf32> to vector<2x64xf32>
    %459 = vector.extract_strided_slice %453 {offsets = [0, 0], sizes = [2, 48], strides = [1, 1]} : vector<2x64xf32> to vector<2x48xf32>
    %460 = arith.negf %459 : vector<2x48xf32>
    %461 = math.exp %460 : vector<2x48xf32>
    %cst_142 = arith.constant 1.000000e+00 : f32
    %462 = vector.broadcast %cst_142 : f32 to vector<2x48xf32>
    %463 = arith.addf %462, %461 : vector<2x48xf32>
    %464 = arith.divf %462, %463 : vector<2x48xf32>
    %465 = vector.extract_strided_slice %453 {offsets = [0, 48], sizes = [2, 16], strides = [1, 1]} : vector<2x64xf32> to vector<2x16xf32>
    %466 = math.tanh %465 : vector<2x16xf32>
    %467 = vector.extract_strided_slice %458 {offsets = [0, 0], sizes = [2, 48], strides = [1, 1]} : vector<2x64xf32> to vector<2x48xf32>
    %468 = arith.negf %467 : vector<2x48xf32>
    %469 = math.exp %468 : vector<2x48xf32>
    %cst_143 = arith.constant 1.000000e+00 : f32
    %470 = vector.broadcast %cst_143 : f32 to vector<2x48xf32>
    %471 = arith.addf %470, %469 : vector<2x48xf32>
    %472 = arith.divf %470, %471 : vector<2x48xf32>
    %473 = vector.extract_strided_slice %458 {offsets = [0, 48], sizes = [2, 16], strides = [1, 1]} : vector<2x64xf32> to vector<2x16xf32>
    %474 = math.tanh %473 : vector<2x16xf32>
    %475 = vector.extract_strided_slice %464 {offsets = [0, 16], sizes = [2, 16], strides = [1, 1]} : vector<2x48xf32> to vector<2x16xf32>
    %476 = arith.mulf %475, %428 : vector<2x16xf32>
    %477 = vector.extract_strided_slice %464 {offsets = [0, 0], sizes = [2, 16], strides = [1, 1]} : vector<2x48xf32> to vector<2x16xf32>
    %478 = arith.mulf %477, %466 : vector<2x16xf32>
    %479 = arith.addf %476, %478 : vector<2x16xf32>
    %480 = vector.extract_strided_slice %472 {offsets = [0, 16], sizes = [2, 16], strides = [1, 1]} : vector<2x48xf32> to vector<2x16xf32>
    %481 = arith.mulf %480, %433 : vector<2x16xf32>
    %482 = vector.extract_strided_slice %472 {offsets = [0, 0], sizes = [2, 16], strides = [1, 1]} : vector<2x48xf32> to vector<2x16xf32>
    %483 = arith.mulf %482, %474 : vector<2x16xf32>
    %484 = arith.addf %481, %483 : vector<2x16xf32>
    %485 = vector.extract_strided_slice %464 {offsets = [0, 32], sizes = [2, 16], strides = [1, 1]} : vector<2x48xf32> to vector<2x16xf32>
    %486 = math.tanh %479 : vector<2x16xf32>
    %487 = arith.mulf %485, %486 : vector<2x16xf32>
    %488 = vector.extract_strided_slice %472 {offsets = [0, 32], sizes = [2, 16], strides = [1, 1]} : vector<2x48xf32> to vector<2x16xf32>
    %489 = math.tanh %484 : vector<2x16xf32>
    %490 = arith.mulf %488, %489 : vector<2x16xf32>
    %c2_i32_144 = arith.constant 2 : i32
    %491 = arith.muli %c7_i32_135, %c2_i32_144 : i32
    %492 = arith.index_cast %491 : i32 to index
    %c0_145 = arith.constant 0 : index
    %493 = vector.load %arg8[%492, %c0_145] : memref<16x64xf32, #tpu.memory_space<vmem>>, vector<2x16xf32>
    tpu.vector_store %arg8[%492, %c0_145], %487 {strides = array<i32>} : memref<16x64xf32, #tpu.memory_space<vmem>>, vector<2x16xf32>,
    %c2_i32_146 = arith.constant 2 : i32
    %494 = arith.muli %447, %c2_i32_146 : i32
    %495 = arith.index_cast %494 : i32 to index
    %c16_147 = arith.constant 16 : index
    %496 = vector.load %arg8[%495, %c16_147] : memref<16x64xf32, #tpu.memory_space<vmem>>, vector<2x16xf32>
    tpu.vector_store %arg8[%495, %c16_147], %490 {strides = array<i32>} : memref<16x64xf32, #tpu.memory_space<vmem>>, vector<2x16xf32>,
    %497 = tpu.concatenate %487, %490 in 1 : vector<2x16xf32>, vector<2x16xf32> -> vector<2x32xf32>
    %c8_i32 = arith.constant 8 : i32
    %c0_148 = arith.constant 0 : index
    %c1024 = arith.constant 1024 : index
    %498 = vector.load %arg3[%c0_148, %c1024] : memref<128x1152xf32, #tpu.memory_space<vmem>>, vector<128x128xf32>
    %cst_149 = arith.constant dense<0.000000e+00> : vector<16x128xf32>
    %499 = tpu.matmul %1, %498, %cst_149 {dimension_numbers = #tpu.dot_dimension_numbers<[1], [0], [0], [1], [0, 0, 1, 1], [], []>} : vector<16x128xf32>, vector<128x128xf32>, vector<16x128xf32> -> vector<16x128xf32>
    %c0_150 = arith.constant 0 : index
    %c0_151 = arith.constant 0 : index
    %500 = vector.load %arg8[%c0_150, %c0_151] : memref<16x64xf32, #tpu.memory_space<vmem>>, vector<16x32xf32>
    %c0_152 = arith.constant 0 : index
    %c352 = arith.constant 352 : index
    %501 = vector.load %arg4[%c0_152, %c352] : memref<32x480xf32, #tpu.memory_space<vmem>>, vector<32x128xf32>
    %cst_153 = arith.constant dense<0.000000e+00> : vector<16x128xf32>
    %502 = tpu.matmul %500, %501, %cst_153 {dimension_numbers = #tpu.dot_dimension_numbers<[1], [0], [0], [1], [0, 0, 1, 1], [], []>} : vector<16x32xf32>, vector<32x128xf32>, vector<16x128xf32> -> vector<16x128xf32>
    %503 = arith.addf %499, %502 : vector<16x128xf32>
    %c0_154 = arith.constant 0 : index
    %c512_155 = arith.constant 512 : index
    %504 = vector.load %arg5[%c0_154, %c512_155] : memref<1x1024xf32, #tpu.memory_space<vmem>>, vector<1x128xf32>
    %505 = vector.broadcast %504 : vector<1x128xf32> to vector<16x128xf32>
    %506 = arith.addf %503, %505 : vector<16x128xf32>
    %c0_156 = arith.constant 0 : index
    %c0_157 = arith.constant 0 : index
    %507 = vector.load %arg7[%c0_156, %c0_157] : memref<16x128xf32, #tpu.memory_space<vmem>>, vector<16x128xf32>
    tpu.vector_store %arg7[%c0_156, %c0_157], %506 {strides = array<i32>} : memref<16x128xf32, #tpu.memory_space<vmem>>, vector<16x128xf32>,
    %c0_158 = arith.constant 0 : index
    %c224 = arith.constant 224 : index
    %508 = vector.load %arg4[%c0_158, %c224] : memref<32x480xf32, #tpu.memory_space<vmem>>, vector<32x128xf32>
    %cst_159 = arith.constant 0.000000e+00 : f32
    %509 = vector.broadcast %cst_159 : f32 to vector<2x16xf32>
    %cst_160 = arith.constant 0.000000e+00 : f32
    %510 = vector.broadcast %cst_160 : f32 to vector<2x32xf32>
    %c0_i32_161 = arith.constant 0 : i32
    %c7_i32_162 = arith.constant 7 : i32
    %511 = arith.subi %c7_i32_162, %c0_i32_161 : i32
    %cst_163 = arith.constant dense<0.000000e+00> : vector<2x128xf32>
    %512 = tpu.matmul %510, %508, %cst_163 {dimension_numbers = #tpu.dot_dimension_numbers<[1], [0], [0], [1], [0, 0, 1, 1], [], []>} : vector<2x32xf32>, vector<32x128xf32>, vector<2x128xf32> -> vector<2x128xf32>
    %c2_i32_164 = arith.constant 2 : i32
    %513 = arith.muli %c0_i32_161, %c2_i32_164 : i32
    %514 = arith.index_cast %513 : i32 to index
    %c0_165 = arith.constant 0 : index
    %515 = vector.load %arg7[%514, %c0_165] : memref<16x128xf32, #tpu.memory_space<vmem>>, vector<2x128xf32>
    %516 = arith.addf %515, %512 : vector<2x128xf32>
    %517 = vector.extract_strided_slice %516 {offsets = [0, 0], sizes = [2, 64], strides = [1, 1]} : vector<2x128xf32> to vector<2x64xf32>
    %c2_i32_166 = arith.constant 2 : i32
    %518 = arith.muli %511, %c2_i32_166 : i32
    %519 = arith.index_cast %518 : i32 to index
    %c0_167 = arith.constant 0 : index
    %520 = vector.load %arg7[%519, %c0_167] : memref<16x128xf32, #tpu.memory_space<vmem>>, vector<2x128xf32>
    %521 = arith.addf %520, %512 : vector<2x128xf32>
    %522 = vector.extract_strided_slice %521 {offsets = [0, 64], sizes = [2, 64], strides = [1, 1]} : vector<2x128xf32> to vector<2x64xf32>
    %523 = vector.extract_strided_slice %517 {offsets = [0, 0], sizes = [2, 48], strides = [1, 1]} : vector<2x64xf32> to vector<2x48xf32>
    %524 = arith.negf %523 : vector<2x48xf32>
    %525 = math.exp %524 : vector<2x48xf32>
    %cst_168 = arith.constant 1.000000e+00 : f32
    %526 = vector.broadcast %cst_168 : f32 to vector<2x48xf32>
    %527 = arith.addf %526, %525 : vector<2x48xf32>
    %528 = arith.divf %526, %527 : vector<2x48xf32>
    %529 = vector.extract_strided_slice %517 {offsets = [0, 48], sizes = [2, 16], strides = [1, 1]} : vector<2x64xf32> to vector<2x16xf32>
    %530 = math.tanh %529 : vector<2x16xf32>
    %531 = vector.extract_strided_slice %522 {offsets = [0, 0], sizes = [2, 48], strides = [1, 1]} : vector<2x64xf32> to vector<2x48xf32>
    %532 = arith.negf %531 : vector<2x48xf32>
    %533 = math.exp %532 : vector<2x48xf32>
    %cst_169 = arith.constant 1.000000e+00 : f32
    %534 = vector.broadcast %cst_169 : f32 to vector<2x48xf32>
    %535 = arith.addf %534, %533 : vector<2x48xf32>
    %536 = arith.divf %534, %535 : vector<2x48xf32>
    %537 = vector.extract_strided_slice %522 {offsets = [0, 48], sizes = [2, 16], strides = [1, 1]} : vector<2x64xf32> to vector<2x16xf32>
    %538 = math.tanh %537 : vector<2x16xf32>
    %539 = vector.extract_strided_slice %528 {offsets = [0, 16], sizes = [2, 16], strides = [1, 1]} : vector<2x48xf32> to vector<2x16xf32>
    %540 = arith.mulf %539, %509 : vector<2x16xf32>
    %541 = vector.extract_strided_slice %528 {offsets = [0, 0], sizes = [2, 16], strides = [1, 1]} : vector<2x48xf32> to vector<2x16xf32>
    %542 = arith.mulf %541, %530 : vector<2x16xf32>
    %543 = arith.addf %540, %542 : vector<2x16xf32>
    %544 = vector.extract_strided_slice %536 {offsets = [0, 16], sizes = [2, 16], strides = [1, 1]} : vector<2x48xf32> to vector<2x16xf32>
    %545 = arith.mulf %544, %509 : vector<2x16xf32>
    %546 = vector.extract_strided_slice %536 {offsets = [0, 0], sizes = [2, 16], strides = [1, 1]} : vector<2x48xf32> to vector<2x16xf32>
    %547 = arith.mulf %546, %538 : vector<2x16xf32>
    %548 = arith.addf %545, %547 : vector<2x16xf32>
    %549 = vector.extract_strided_slice %528 {offsets = [0, 32], sizes = [2, 16], strides = [1, 1]} : vector<2x48xf32> to vector<2x16xf32>
    %550 = math.tanh %543 : vector<2x16xf32>
    %551 = arith.mulf %549, %550 : vector<2x16xf32>
    %552 = vector.extract_strided_slice %536 {offsets = [0, 32], sizes = [2, 16], strides = [1, 1]} : vector<2x48xf32> to vector<2x16xf32>
    %553 = math.tanh %548 : vector<2x16xf32>
    %554 = arith.mulf %552, %553 : vector<2x16xf32>
    %c2_i32_170 = arith.constant 2 : i32
    %555 = arith.muli %c0_i32_161, %c2_i32_170 : i32
    %556 = arith.index_cast %555 : i32 to index
    %c32_171 = arith.constant 32 : index
    %557 = vector.load %arg8[%556, %c32_171] : memref<16x64xf32, #tpu.memory_space<vmem>>, vector<2x16xf32>
    tpu.vector_store %arg8[%556, %c32_171], %551 {strides = array<i32>} : memref<16x64xf32, #tpu.memory_space<vmem>>, vector<2x16xf32>,
    %c2_i32_172 = arith.constant 2 : i32
    %558 = arith.muli %511, %c2_i32_172 : i32
    %559 = arith.index_cast %558 : i32 to index
    %c48 = arith.constant 48 : index
    %560 = vector.load %arg8[%559, %c48] : memref<16x64xf32, #tpu.memory_space<vmem>>, vector<2x16xf32>
    tpu.vector_store %arg8[%559, %c48], %554 {strides = array<i32>} : memref<16x64xf32, #tpu.memory_space<vmem>>, vector<2x16xf32>,
    %561 = tpu.concatenate %551, %554 in 1 : vector<2x16xf32>, vector<2x16xf32> -> vector<2x32xf32>
    %c1_i32_173 = arith.constant 1 : i32
    %c7_i32_174 = arith.constant 7 : i32
    %562 = arith.subi %c7_i32_174, %c1_i32_173 : i32
    %cst_175 = arith.constant dense<0.000000e+00> : vector<2x128xf32>
    %563 = tpu.matmul %561, %508, %cst_175 {dimension_numbers = #tpu.dot_dimension_numbers<[1], [0], [0], [1], [0, 0, 1, 1], [], []>} : vector<2x32xf32>, vector<32x128xf32>, vector<2x128xf32> -> vector<2x128xf32>
    %c2_i32_176 = arith.constant 2 : i32
    %564 = arith.muli %c1_i32_173, %c2_i32_176 : i32
    %565 = arith.index_cast %564 : i32 to index
    %c0_177 = arith.constant 0 : index
    %566 = vector.load %arg7[%565, %c0_177] : memref<16x128xf32, #tpu.memory_space<vmem>>, vector<2x128xf32>
    %567 = arith.addf %566, %563 : vector<2x128xf32>
    %568 = vector.extract_strided_slice %567 {offsets = [0, 0], sizes = [2, 64], strides = [1, 1]} : vector<2x128xf32> to vector<2x64xf32>
    %c2_i32_178 = arith.constant 2 : i32
    %569 = arith.muli %562, %c2_i32_178 : i32
    %570 = arith.index_cast %569 : i32 to index
    %c0_179 = arith.constant 0 : index
    %571 = vector.load %arg7[%570, %c0_179] : memref<16x128xf32, #tpu.memory_space<vmem>>, vector<2x128xf32>
    %572 = arith.addf %571, %563 : vector<2x128xf32>
    %573 = vector.extract_strided_slice %572 {offsets = [0, 64], sizes = [2, 64], strides = [1, 1]} : vector<2x128xf32> to vector<2x64xf32>
    %574 = vector.extract_strided_slice %568 {offsets = [0, 0], sizes = [2, 48], strides = [1, 1]} : vector<2x64xf32> to vector<2x48xf32>
    %575 = arith.negf %574 : vector<2x48xf32>
    %576 = math.exp %575 : vector<2x48xf32>
    %cst_180 = arith.constant 1.000000e+00 : f32
    %577 = vector.broadcast %cst_180 : f32 to vector<2x48xf32>
    %578 = arith.addf %577, %576 : vector<2x48xf32>
    %579 = arith.divf %577, %578 : vector<2x48xf32>
    %580 = vector.extract_strided_slice %568 {offsets = [0, 48], sizes = [2, 16], strides = [1, 1]} : vector<2x64xf32> to vector<2x16xf32>
    %581 = math.tanh %580 : vector<2x16xf32>
    %582 = vector.extract_strided_slice %573 {offsets = [0, 0], sizes = [2, 48], strides = [1, 1]} : vector<2x64xf32> to vector<2x48xf32>
    %583 = arith.negf %582 : vector<2x48xf32>
    %584 = math.exp %583 : vector<2x48xf32>
    %cst_181 = arith.constant 1.000000e+00 : f32
    %585 = vector.broadcast %cst_181 : f32 to vector<2x48xf32>
    %586 = arith.addf %585, %584 : vector<2x48xf32>
    %587 = arith.divf %585, %586 : vector<2x48xf32>
    %588 = vector.extract_strided_slice %573 {offsets = [0, 48], sizes = [2, 16], strides = [1, 1]} : vector<2x64xf32> to vector<2x16xf32>
    %589 = math.tanh %588 : vector<2x16xf32>
    %590 = vector.extract_strided_slice %579 {offsets = [0, 16], sizes = [2, 16], strides = [1, 1]} : vector<2x48xf32> to vector<2x16xf32>
    %591 = arith.mulf %590, %543 : vector<2x16xf32>
    %592 = vector.extract_strided_slice %579 {offsets = [0, 0], sizes = [2, 16], strides = [1, 1]} : vector<2x48xf32> to vector<2x16xf32>
    %593 = arith.mulf %592, %581 : vector<2x16xf32>
    %594 = arith.addf %591, %593 : vector<2x16xf32>
    %595 = vector.extract_strided_slice %587 {offsets = [0, 16], sizes = [2, 16], strides = [1, 1]} : vector<2x48xf32> to vector<2x16xf32>
    %596 = arith.mulf %595, %548 : vector<2x16xf32>
    %597 = vector.extract_strided_slice %587 {offsets = [0, 0], sizes = [2, 16], strides = [1, 1]} : vector<2x48xf32> to vector<2x16xf32>
    %598 = arith.mulf %597, %589 : vector<2x16xf32>
    %599 = arith.addf %596, %598 : vector<2x16xf32>
    %600 = vector.extract_strided_slice %579 {offsets = [0, 32], sizes = [2, 16], strides = [1, 1]} : vector<2x48xf32> to vector<2x16xf32>
    %601 = math.tanh %594 : vector<2x16xf32>
    %602 = arith.mulf %600, %601 : vector<2x16xf32>
    %603 = vector.extract_strided_slice %587 {offsets = [0, 32], sizes = [2, 16], strides = [1, 1]} : vector<2x48xf32> to vector<2x16xf32>
    %604 = math.tanh %599 : vector<2x16xf32>
    %605 = arith.mulf %603, %604 : vector<2x16xf32>
    %c2_i32_182 = arith.constant 2 : i32
    %606 = arith.muli %c1_i32_173, %c2_i32_182 : i32
    %607 = arith.index_cast %606 : i32 to index
    %c32_183 = arith.constant 32 : index
    %608 = vector.load %arg8[%607, %c32_183] : memref<16x64xf32, #tpu.memory_space<vmem>>, vector<2x16xf32>
    tpu.vector_store %arg8[%607, %c32_183], %602 {strides = array<i32>} : memref<16x64xf32, #tpu.memory_space<vmem>>, vector<2x16xf32>,
    %c2_i32_184 = arith.constant 2 : i32
    %609 = arith.muli %562, %c2_i32_184 : i32
    %610 = arith.index_cast %609 : i32 to index
    %c48_185 = arith.constant 48 : index
    %611 = vector.load %arg8[%610, %c48_185] : memref<16x64xf32, #tpu.memory_space<vmem>>, vector<2x16xf32>
    tpu.vector_store %arg8[%610, %c48_185], %605 {strides = array<i32>} : memref<16x64xf32, #tpu.memory_space<vmem>>, vector<2x16xf32>,
    %612 = tpu.concatenate %602, %605 in 1 : vector<2x16xf32>, vector<2x16xf32> -> vector<2x32xf32>
    %c2_i32_186 = arith.constant 2 : i32
    %c7_i32_187 = arith.constant 7 : i32
    %613 = arith.subi %c7_i32_187, %c2_i32_186 : i32
    %cst_188 = arith.constant dense<0.000000e+00> : vector<2x128xf32>
    %614 = tpu.matmul %612, %508, %cst_188 {dimension_numbers = #tpu.dot_dimension_numbers<[1], [0], [0], [1], [0, 0, 1, 1], [], []>} : vector<2x32xf32>, vector<32x128xf32>, vector<2x128xf32> -> vector<2x128xf32>
    %c2_i32_189 = arith.constant 2 : i32
    %615 = arith.muli %c2_i32_186, %c2_i32_189 : i32
    %616 = arith.index_cast %615 : i32 to index
    %c0_190 = arith.constant 0 : index
    %617 = vector.load %arg7[%616, %c0_190] : memref<16x128xf32, #tpu.memory_space<vmem>>, vector<2x128xf32>
    %618 = arith.addf %617, %614 : vector<2x128xf32>
    %619 = vector.extract_strided_slice %618 {offsets = [0, 0], sizes = [2, 64], strides = [1, 1]} : vector<2x128xf32> to vector<2x64xf32>
    %c2_i32_191 = arith.constant 2 : i32
    %620 = arith.muli %613, %c2_i32_191 : i32
    %621 = arith.index_cast %620 : i32 to index
    %c0_192 = arith.constant 0 : index
    %622 = vector.load %arg7[%621, %c0_192] : memref<16x128xf32, #tpu.memory_space<vmem>>, vector<2x128xf32>
    %623 = arith.addf %622, %614 : vector<2x128xf32>
    %624 = vector.extract_strided_slice %623 {offsets = [0, 64], sizes = [2, 64], strides = [1, 1]} : vector<2x128xf32> to vector<2x64xf32>
    %625 = vector.extract_strided_slice %619 {offsets = [0, 0], sizes = [2, 48], strides = [1, 1]} : vector<2x64xf32> to vector<2x48xf32>
    %626 = arith.negf %625 : vector<2x48xf32>
    %627 = math.exp %626 : vector<2x48xf32>
    %cst_193 = arith.constant 1.000000e+00 : f32
    %628 = vector.broadcast %cst_193 : f32 to vector<2x48xf32>
    %629 = arith.addf %628, %627 : vector<2x48xf32>
    %630 = arith.divf %628, %629 : vector<2x48xf32>
    %631 = vector.extract_strided_slice %619 {offsets = [0, 48], sizes = [2, 16], strides = [1, 1]} : vector<2x64xf32> to vector<2x16xf32>
    %632 = math.tanh %631 : vector<2x16xf32>
    %633 = vector.extract_strided_slice %624 {offsets = [0, 0], sizes = [2, 48], strides = [1, 1]} : vector<2x64xf32> to vector<2x48xf32>
    %634 = arith.negf %633 : vector<2x48xf32>
    %635 = math.exp %634 : vector<2x48xf32>
    %cst_194 = arith.constant 1.000000e+00 : f32
    %636 = vector.broadcast %cst_194 : f32 to vector<2x48xf32>
    %637 = arith.addf %636, %635 : vector<2x48xf32>
    %638 = arith.divf %636, %637 : vector<2x48xf32>
    %639 = vector.extract_strided_slice %624 {offsets = [0, 48], sizes = [2, 16], strides = [1, 1]} : vector<2x64xf32> to vector<2x16xf32>
    %640 = math.tanh %639 : vector<2x16xf32>
    %641 = vector.extract_strided_slice %630 {offsets = [0, 16], sizes = [2, 16], strides = [1, 1]} : vector<2x48xf32> to vector<2x16xf32>
    %642 = arith.mulf %641, %594 : vector<2x16xf32>
    %643 = vector.extract_strided_slice %630 {offsets = [0, 0], sizes = [2, 16], strides = [1, 1]} : vector<2x48xf32> to vector<2x16xf32>
    %644 = arith.mulf %643, %632 : vector<2x16xf32>
    %645 = arith.addf %642, %644 : vector<2x16xf32>
    %646 = vector.extract_strided_slice %638 {offsets = [0, 16], sizes = [2, 16], strides = [1, 1]} : vector<2x48xf32> to vector<2x16xf32>
    %647 = arith.mulf %646, %599 : vector<2x16xf32>
    %648 = vector.extract_strided_slice %638 {offsets = [0, 0], sizes = [2, 16], strides = [1, 1]} : vector<2x48xf32> to vector<2x16xf32>
    %649 = arith.mulf %648, %640 : vector<2x16xf32>
    %650 = arith.addf %647, %649 : vector<2x16xf32>
    %651 = vector.extract_strided_slice %630 {offsets = [0, 32], sizes = [2, 16], strides = [1, 1]} : vector<2x48xf32> to vector<2x16xf32>
    %652 = math.tanh %645 : vector<2x16xf32>
    %653 = arith.mulf %651, %652 : vector<2x16xf32>
    %654 = vector.extract_strided_slice %638 {offsets = [0, 32], sizes = [2, 16], strides = [1, 1]} : vector<2x48xf32> to vector<2x16xf32>
    %655 = math.tanh %650 : vector<2x16xf32>
    %656 = arith.mulf %654, %655 : vector<2x16xf32>
    %c2_i32_195 = arith.constant 2 : i32
    %657 = arith.muli %c2_i32_186, %c2_i32_195 : i32
    %658 = arith.index_cast %657 : i32 to index
    %c32_196 = arith.constant 32 : index
    %659 = vector.load %arg8[%658, %c32_196] : memref<16x64xf32, #tpu.memory_space<vmem>>, vector<2x16xf32>
    tpu.vector_store %arg8[%658, %c32_196], %653 {strides = array<i32>} : memref<16x64xf32, #tpu.memory_space<vmem>>, vector<2x16xf32>,
    %c2_i32_197 = arith.constant 2 : i32
    %660 = arith.muli %613, %c2_i32_197 : i32
    %661 = arith.index_cast %660 : i32 to index
    %c48_198 = arith.constant 48 : index
    %662 = vector.load %arg8[%661, %c48_198] : memref<16x64xf32, #tpu.memory_space<vmem>>, vector<2x16xf32>
    tpu.vector_store %arg8[%661, %c48_198], %656 {strides = array<i32>} : memref<16x64xf32, #tpu.memory_space<vmem>>, vector<2x16xf32>,
    %663 = tpu.concatenate %653, %656 in 1 : vector<2x16xf32>, vector<2x16xf32> -> vector<2x32xf32>
    %c3_i32_199 = arith.constant 3 : i32
    %c7_i32_200 = arith.constant 7 : i32
    %664 = arith.subi %c7_i32_200, %c3_i32_199 : i32
    %cst_201 = arith.constant dense<0.000000e+00> : vector<2x128xf32>
    %665 = tpu.matmul %663, %508, %cst_201 {dimension_numbers = #tpu.dot_dimension_numbers<[1], [0], [0], [1], [0, 0, 1, 1], [], []>} : vector<2x32xf32>, vector<32x128xf32>, vector<2x128xf32> -> vector<2x128xf32>
    %c2_i32_202 = arith.constant 2 : i32
    %666 = arith.muli %c3_i32_199, %c2_i32_202 : i32
    %667 = arith.index_cast %666 : i32 to index
    %c0_203 = arith.constant 0 : index
    %668 = vector.load %arg7[%667, %c0_203] : memref<16x128xf32, #tpu.memory_space<vmem>>, vector<2x128xf32>
    %669 = arith.addf %668, %665 : vector<2x128xf32>
    %670 = vector.extract_strided_slice %669 {offsets = [0, 0], sizes = [2, 64], strides = [1, 1]} : vector<2x128xf32> to vector<2x64xf32>
    %c2_i32_204 = arith.constant 2 : i32
    %671 = arith.muli %664, %c2_i32_204 : i32
    %672 = arith.index_cast %671 : i32 to index
    %c0_205 = arith.constant 0 : index
    %673 = vector.load %arg7[%672, %c0_205] : memref<16x128xf32, #tpu.memory_space<vmem>>, vector<2x128xf32>
    %674 = arith.addf %673, %665 : vector<2x128xf32>
    %675 = vector.extract_strided_slice %674 {offsets = [0, 64], sizes = [2, 64], strides = [1, 1]} : vector<2x128xf32> to vector<2x64xf32>
    %676 = vector.extract_strided_slice %670 {offsets = [0, 0], sizes = [2, 48], strides = [1, 1]} : vector<2x64xf32> to vector<2x48xf32>
    %677 = arith.negf %676 : vector<2x48xf32>
    %678 = math.exp %677 : vector<2x48xf32>
    %cst_206 = arith.constant 1.000000e+00 : f32
    %679 = vector.broadcast %cst_206 : f32 to vector<2x48xf32>
    %680 = arith.addf %679, %678 : vector<2x48xf32>
    %681 = arith.divf %679, %680 : vector<2x48xf32>
    %682 = vector.extract_strided_slice %670 {offsets = [0, 48], sizes = [2, 16], strides = [1, 1]} : vector<2x64xf32> to vector<2x16xf32>
    %683 = math.tanh %682 : vector<2x16xf32>
    %684 = vector.extract_strided_slice %675 {offsets = [0, 0], sizes = [2, 48], strides = [1, 1]} : vector<2x64xf32> to vector<2x48xf32>
    %685 = arith.negf %684 : vector<2x48xf32>
    %686 = math.exp %685 : vector<2x48xf32>
    %cst_207 = arith.constant 1.000000e+00 : f32
    %687 = vector.broadcast %cst_207 : f32 to vector<2x48xf32>
    %688 = arith.addf %687, %686 : vector<2x48xf32>
    %689 = arith.divf %687, %688 : vector<2x48xf32>
    %690 = vector.extract_strided_slice %675 {offsets = [0, 48], sizes = [2, 16], strides = [1, 1]} : vector<2x64xf32> to vector<2x16xf32>
    %691 = math.tanh %690 : vector<2x16xf32>
    %692 = vector.extract_strided_slice %681 {offsets = [0, 16], sizes = [2, 16], strides = [1, 1]} : vector<2x48xf32> to vector<2x16xf32>
    %693 = arith.mulf %692, %645 : vector<2x16xf32>
    %694 = vector.extract_strided_slice %681 {offsets = [0, 0], sizes = [2, 16], strides = [1, 1]} : vector<2x48xf32> to vector<2x16xf32>
    %695 = arith.mulf %694, %683 : vector<2x16xf32>
    %696 = arith.addf %693, %695 : vector<2x16xf32>
    %697 = vector.extract_strided_slice %689 {offsets = [0, 16], sizes = [2, 16], strides = [1, 1]} : vector<2x48xf32> to vector<2x16xf32>
    %698 = arith.mulf %697, %650 : vector<2x16xf32>
    %699 = vector.extract_strided_slice %689 {offsets = [0, 0], sizes = [2, 16], strides = [1, 1]} : vector<2x48xf32> to vector<2x16xf32>
    %700 = arith.mulf %699, %691 : vector<2x16xf32>
    %701 = arith.addf %698, %700 : vector<2x16xf32>
    %702 = vector.extract_strided_slice %681 {offsets = [0, 32], sizes = [2, 16], strides = [1, 1]} : vector<2x48xf32> to vector<2x16xf32>
    %703 = math.tanh %696 : vector<2x16xf32>
    %704 = arith.mulf %702, %703 : vector<2x16xf32>
    %705 = vector.extract_strided_slice %689 {offsets = [0, 32], sizes = [2, 16], strides = [1, 1]} : vector<2x48xf32> to vector<2x16xf32>
    %706 = math.tanh %701 : vector<2x16xf32>
    %707 = arith.mulf %705, %706 : vector<2x16xf32>
    %c2_i32_208 = arith.constant 2 : i32
    %708 = arith.muli %c3_i32_199, %c2_i32_208 : i32
    %709 = arith.index_cast %708 : i32 to index
    %c32_209 = arith.constant 32 : index
    %710 = vector.load %arg8[%709, %c32_209] : memref<16x64xf32, #tpu.memory_space<vmem>>, vector<2x16xf32>
    tpu.vector_store %arg8[%709, %c32_209], %704 {strides = array<i32>} : memref<16x64xf32, #tpu.memory_space<vmem>>, vector<2x16xf32>,
    %c2_i32_210 = arith.constant 2 : i32
    %711 = arith.muli %664, %c2_i32_210 : i32
    %712 = arith.index_cast %711 : i32 to index
    %c48_211 = arith.constant 48 : index
    %713 = vector.load %arg8[%712, %c48_211] : memref<16x64xf32, #tpu.memory_space<vmem>>, vector<2x16xf32>
    tpu.vector_store %arg8[%712, %c48_211], %707 {strides = array<i32>} : memref<16x64xf32, #tpu.memory_space<vmem>>, vector<2x16xf32>,
    %714 = tpu.concatenate %704, %707 in 1 : vector<2x16xf32>, vector<2x16xf32> -> vector<2x32xf32>
    %c4_i32_212 = arith.constant 4 : i32
    %c7_i32_213 = arith.constant 7 : i32
    %715 = arith.subi %c7_i32_213, %c4_i32_212 : i32
    %cst_214 = arith.constant dense<0.000000e+00> : vector<2x128xf32>
    %716 = tpu.matmul %714, %508, %cst_214 {dimension_numbers = #tpu.dot_dimension_numbers<[1], [0], [0], [1], [0, 0, 1, 1], [], []>} : vector<2x32xf32>, vector<32x128xf32>, vector<2x128xf32> -> vector<2x128xf32>
    %c2_i32_215 = arith.constant 2 : i32
    %717 = arith.muli %c4_i32_212, %c2_i32_215 : i32
    %718 = arith.index_cast %717 : i32 to index
    %c0_216 = arith.constant 0 : index
    %719 = vector.load %arg7[%718, %c0_216] : memref<16x128xf32, #tpu.memory_space<vmem>>, vector<2x128xf32>
    %720 = arith.addf %719, %716 : vector<2x128xf32>
    %721 = vector.extract_strided_slice %720 {offsets = [0, 0], sizes = [2, 64], strides = [1, 1]} : vector<2x128xf32> to vector<2x64xf32>
    %c2_i32_217 = arith.constant 2 : i32
    %722 = arith.muli %715, %c2_i32_217 : i32
    %723 = arith.index_cast %722 : i32 to index
    %c0_218 = arith.constant 0 : index
    %724 = vector.load %arg7[%723, %c0_218] : memref<16x128xf32, #tpu.memory_space<vmem>>, vector<2x128xf32>
    %725 = arith.addf %724, %716 : vector<2x128xf32>
    %726 = vector.extract_strided_slice %725 {offsets = [0, 64], sizes = [2, 64], strides = [1, 1]} : vector<2x128xf32> to vector<2x64xf32>
    %727 = vector.extract_strided_slice %721 {offsets = [0, 0], sizes = [2, 48], strides = [1, 1]} : vector<2x64xf32> to vector<2x48xf32>
    %728 = arith.negf %727 : vector<2x48xf32>
    %729 = math.exp %728 : vector<2x48xf32>
    %cst_219 = arith.constant 1.000000e+00 : f32
    %730 = vector.broadcast %cst_219 : f32 to vector<2x48xf32>
    %731 = arith.addf %730, %729 : vector<2x48xf32>
    %732 = arith.divf %730, %731 : vector<2x48xf32>
    %733 = vector.extract_strided_slice %721 {offsets = [0, 48], sizes = [2, 16], strides = [1, 1]} : vector<2x64xf32> to vector<2x16xf32>
    %734 = math.tanh %733 : vector<2x16xf32>
    %735 = vector.extract_strided_slice %726 {offsets = [0, 0], sizes = [2, 48], strides = [1, 1]} : vector<2x64xf32> to vector<2x48xf32>
    %736 = arith.negf %735 : vector<2x48xf32>
    %737 = math.exp %736 : vector<2x48xf32>
    %cst_220 = arith.constant 1.000000e+00 : f32
    %738 = vector.broadcast %cst_220 : f32 to vector<2x48xf32>
    %739 = arith.addf %738, %737 : vector<2x48xf32>
    %740 = arith.divf %738, %739 : vector<2x48xf32>
    %741 = vector.extract_strided_slice %726 {offsets = [0, 48], sizes = [2, 16], strides = [1, 1]} : vector<2x64xf32> to vector<2x16xf32>
    %742 = math.tanh %741 : vector<2x16xf32>
    %743 = vector.extract_strided_slice %732 {offsets = [0, 16], sizes = [2, 16], strides = [1, 1]} : vector<2x48xf32> to vector<2x16xf32>
    %744 = arith.mulf %743, %696 : vector<2x16xf32>
    %745 = vector.extract_strided_slice %732 {offsets = [0, 0], sizes = [2, 16], strides = [1, 1]} : vector<2x48xf32> to vector<2x16xf32>
    %746 = arith.mulf %745, %734 : vector<2x16xf32>
    %747 = arith.addf %744, %746 : vector<2x16xf32>
    %748 = vector.extract_strided_slice %740 {offsets = [0, 16], sizes = [2, 16], strides = [1, 1]} : vector<2x48xf32> to vector<2x16xf32>
    %749 = arith.mulf %748, %701 : vector<2x16xf32>
    %750 = vector.extract_strided_slice %740 {offsets = [0, 0], sizes = [2, 16], strides = [1, 1]} : vector<2x48xf32> to vector<2x16xf32>
    %751 = arith.mulf %750, %742 : vector<2x16xf32>
    %752 = arith.addf %749, %751 : vector<2x16xf32>
    %753 = vector.extract_strided_slice %732 {offsets = [0, 32], sizes = [2, 16], strides = [1, 1]} : vector<2x48xf32> to vector<2x16xf32>
    %754 = math.tanh %747 : vector<2x16xf32>
    %755 = arith.mulf %753, %754 : vector<2x16xf32>
    %756 = vector.extract_strided_slice %740 {offsets = [0, 32], sizes = [2, 16], strides = [1, 1]} : vector<2x48xf32> to vector<2x16xf32>
    %757 = math.tanh %752 : vector<2x16xf32>
    %758 = arith.mulf %756, %757 : vector<2x16xf32>
    %c2_i32_221 = arith.constant 2 : i32
    %759 = arith.muli %c4_i32_212, %c2_i32_221 : i32
    %760 = arith.index_cast %759 : i32 to index
    %c32_222 = arith.constant 32 : index
    %761 = vector.load %arg8[%760, %c32_222] : memref<16x64xf32, #tpu.memory_space<vmem>>, vector<2x16xf32>
    tpu.vector_store %arg8[%760, %c32_222], %755 {strides = array<i32>} : memref<16x64xf32, #tpu.memory_space<vmem>>, vector<2x16xf32>,
    %c2_i32_223 = arith.constant 2 : i32
    %762 = arith.muli %715, %c2_i32_223 : i32
    %763 = arith.index_cast %762 : i32 to index
    %c48_224 = arith.constant 48 : index
    %764 = vector.load %arg8[%763, %c48_224] : memref<16x64xf32, #tpu.memory_space<vmem>>, vector<2x16xf32>
    tpu.vector_store %arg8[%763, %c48_224], %758 {strides = array<i32>} : memref<16x64xf32, #tpu.memory_space<vmem>>, vector<2x16xf32>,
    %765 = tpu.concatenate %755, %758 in 1 : vector<2x16xf32>, vector<2x16xf32> -> vector<2x32xf32>
    %c5_i32_225 = arith.constant 5 : i32
    %c7_i32_226 = arith.constant 7 : i32
    %766 = arith.subi %c7_i32_226, %c5_i32_225 : i32
    %cst_227 = arith.constant dense<0.000000e+00> : vector<2x128xf32>
    %767 = tpu.matmul %765, %508, %cst_227 {dimension_numbers = #tpu.dot_dimension_numbers<[1], [0], [0], [1], [0, 0, 1, 1], [], []>} : vector<2x32xf32>, vector<32x128xf32>, vector<2x128xf32> -> vector<2x128xf32>
    %c2_i32_228 = arith.constant 2 : i32
    %768 = arith.muli %c5_i32_225, %c2_i32_228 : i32
    %769 = arith.index_cast %768 : i32 to index
    %c0_229 = arith.constant 0 : index
    %770 = vector.load %arg7[%769, %c0_229] : memref<16x128xf32, #tpu.memory_space<vmem>>, vector<2x128xf32>
    %771 = arith.addf %770, %767 : vector<2x128xf32>
    %772 = vector.extract_strided_slice %771 {offsets = [0, 0], sizes = [2, 64], strides = [1, 1]} : vector<2x128xf32> to vector<2x64xf32>
    %c2_i32_230 = arith.constant 2 : i32
    %773 = arith.muli %766, %c2_i32_230 : i32
    %774 = arith.index_cast %773 : i32 to index
    %c0_231 = arith.constant 0 : index
    %775 = vector.load %arg7[%774, %c0_231] : memref<16x128xf32, #tpu.memory_space<vmem>>, vector<2x128xf32>
    %776 = arith.addf %775, %767 : vector<2x128xf32>
    %777 = vector.extract_strided_slice %776 {offsets = [0, 64], sizes = [2, 64], strides = [1, 1]} : vector<2x128xf32> to vector<2x64xf32>
    %778 = vector.extract_strided_slice %772 {offsets = [0, 0], sizes = [2, 48], strides = [1, 1]} : vector<2x64xf32> to vector<2x48xf32>
    %779 = arith.negf %778 : vector<2x48xf32>
    %780 = math.exp %779 : vector<2x48xf32>
    %cst_232 = arith.constant 1.000000e+00 : f32
    %781 = vector.broadcast %cst_232 : f32 to vector<2x48xf32>
    %782 = arith.addf %781, %780 : vector<2x48xf32>
    %783 = arith.divf %781, %782 : vector<2x48xf32>
    %784 = vector.extract_strided_slice %772 {offsets = [0, 48], sizes = [2, 16], strides = [1, 1]} : vector<2x64xf32> to vector<2x16xf32>
    %785 = math.tanh %784 : vector<2x16xf32>
    %786 = vector.extract_strided_slice %777 {offsets = [0, 0], sizes = [2, 48], strides = [1, 1]} : vector<2x64xf32> to vector<2x48xf32>
    %787 = arith.negf %786 : vector<2x48xf32>
    %788 = math.exp %787 : vector<2x48xf32>
    %cst_233 = arith.constant 1.000000e+00 : f32
    %789 = vector.broadcast %cst_233 : f32 to vector<2x48xf32>
    %790 = arith.addf %789, %788 : vector<2x48xf32>
    %791 = arith.divf %789, %790 : vector<2x48xf32>
    %792 = vector.extract_strided_slice %777 {offsets = [0, 48], sizes = [2, 16], strides = [1, 1]} : vector<2x64xf32> to vector<2x16xf32>
    %793 = math.tanh %792 : vector<2x16xf32>
    %794 = vector.extract_strided_slice %783 {offsets = [0, 16], sizes = [2, 16], strides = [1, 1]} : vector<2x48xf32> to vector<2x16xf32>
    %795 = arith.mulf %794, %747 : vector<2x16xf32>
    %796 = vector.extract_strided_slice %783 {offsets = [0, 0], sizes = [2, 16], strides = [1, 1]} : vector<2x48xf32> to vector<2x16xf32>
    %797 = arith.mulf %796, %785 : vector<2x16xf32>
    %798 = arith.addf %795, %797 : vector<2x16xf32>
    %799 = vector.extract_strided_slice %791 {offsets = [0, 16], sizes = [2, 16], strides = [1, 1]} : vector<2x48xf32> to vector<2x16xf32>
    %800 = arith.mulf %799, %752 : vector<2x16xf32>
    %801 = vector.extract_strided_slice %791 {offsets = [0, 0], sizes = [2, 16], strides = [1, 1]} : vector<2x48xf32> to vector<2x16xf32>
    %802 = arith.mulf %801, %793 : vector<2x16xf32>
    %803 = arith.addf %800, %802 : vector<2x16xf32>
    %804 = vector.extract_strided_slice %783 {offsets = [0, 32], sizes = [2, 16], strides = [1, 1]} : vector<2x48xf32> to vector<2x16xf32>
    %805 = math.tanh %798 : vector<2x16xf32>
    %806 = arith.mulf %804, %805 : vector<2x16xf32>
    %807 = vector.extract_strided_slice %791 {offsets = [0, 32], sizes = [2, 16], strides = [1, 1]} : vector<2x48xf32> to vector<2x16xf32>
    %808 = math.tanh %803 : vector<2x16xf32>
    %809 = arith.mulf %807, %808 : vector<2x16xf32>
    %c2_i32_234 = arith.constant 2 : i32
    %810 = arith.muli %c5_i32_225, %c2_i32_234 : i32
    %811 = arith.index_cast %810 : i32 to index
    %c32_235 = arith.constant 32 : index
    %812 = vector.load %arg8[%811, %c32_235] : memref<16x64xf32, #tpu.memory_space<vmem>>, vector<2x16xf32>
    tpu.vector_store %arg8[%811, %c32_235], %806 {strides = array<i32>} : memref<16x64xf32, #tpu.memory_space<vmem>>, vector<2x16xf32>,
    %c2_i32_236 = arith.constant 2 : i32
    %813 = arith.muli %766, %c2_i32_236 : i32
    %814 = arith.index_cast %813 : i32 to index
    %c48_237 = arith.constant 48 : index
    %815 = vector.load %arg8[%814, %c48_237] : memref<16x64xf32, #tpu.memory_space<vmem>>, vector<2x16xf32>
    tpu.vector_store %arg8[%814, %c48_237], %809 {strides = array<i32>} : memref<16x64xf32, #tpu.memory_space<vmem>>, vector<2x16xf32>,
    %816 = tpu.concatenate %806, %809 in 1 : vector<2x16xf32>, vector<2x16xf32> -> vector<2x32xf32>
    %c6_i32_238 = arith.constant 6 : i32
    %c7_i32_239 = arith.constant 7 : i32
    %817 = arith.subi %c7_i32_239, %c6_i32_238 : i32
    %cst_240 = arith.constant dense<0.000000e+00> : vector<2x128xf32>
    %818 = tpu.matmul %816, %508, %cst_240 {dimension_numbers = #tpu.dot_dimension_numbers<[1], [0], [0], [1], [0, 0, 1, 1], [], []>} : vector<2x32xf32>, vector<32x128xf32>, vector<2x128xf32> -> vector<2x128xf32>
    %c2_i32_241 = arith.constant 2 : i32
    %819 = arith.muli %c6_i32_238, %c2_i32_241 : i32
    %820 = arith.index_cast %819 : i32 to index
    %c0_242 = arith.constant 0 : index
    %821 = vector.load %arg7[%820, %c0_242] : memref<16x128xf32, #tpu.memory_space<vmem>>, vector<2x128xf32>
    %822 = arith.addf %821, %818 : vector<2x128xf32>
    %823 = vector.extract_strided_slice %822 {offsets = [0, 0], sizes = [2, 64], strides = [1, 1]} : vector<2x128xf32> to vector<2x64xf32>
    %c2_i32_243 = arith.constant 2 : i32
    %824 = arith.muli %817, %c2_i32_243 : i32
    %825 = arith.index_cast %824 : i32 to index
    %c0_244 = arith.constant 0 : index
    %826 = vector.load %arg7[%825, %c0_244] : memref<16x128xf32, #tpu.memory_space<vmem>>, vector<2x128xf32>
    %827 = arith.addf %826, %818 : vector<2x128xf32>
    %828 = vector.extract_strided_slice %827 {offsets = [0, 64], sizes = [2, 64], strides = [1, 1]} : vector<2x128xf32> to vector<2x64xf32>
    %829 = vector.extract_strided_slice %823 {offsets = [0, 0], sizes = [2, 48], strides = [1, 1]} : vector<2x64xf32> to vector<2x48xf32>
    %830 = arith.negf %829 : vector<2x48xf32>
    %831 = math.exp %830 : vector<2x48xf32>
    %cst_245 = arith.constant 1.000000e+00 : f32
    %832 = vector.broadcast %cst_245 : f32 to vector<2x48xf32>
    %833 = arith.addf %832, %831 : vector<2x48xf32>
    %834 = arith.divf %832, %833 : vector<2x48xf32>
    %835 = vector.extract_strided_slice %823 {offsets = [0, 48], sizes = [2, 16], strides = [1, 1]} : vector<2x64xf32> to vector<2x16xf32>
    %836 = math.tanh %835 : vector<2x16xf32>
    %837 = vector.extract_strided_slice %828 {offsets = [0, 0], sizes = [2, 48], strides = [1, 1]} : vector<2x64xf32> to vector<2x48xf32>
    %838 = arith.negf %837 : vector<2x48xf32>
    %839 = math.exp %838 : vector<2x48xf32>
    %cst_246 = arith.constant 1.000000e+00 : f32
    %840 = vector.broadcast %cst_246 : f32 to vector<2x48xf32>
    %841 = arith.addf %840, %839 : vector<2x48xf32>
    %842 = arith.divf %840, %841 : vector<2x48xf32>
    %843 = vector.extract_strided_slice %828 {offsets = [0, 48], sizes = [2, 16], strides = [1, 1]} : vector<2x64xf32> to vector<2x16xf32>
    %844 = math.tanh %843 : vector<2x16xf32>
    %845 = vector.extract_strided_slice %834 {offsets = [0, 16], sizes = [2, 16], strides = [1, 1]} : vector<2x48xf32> to vector<2x16xf32>
    %846 = arith.mulf %845, %798 : vector<2x16xf32>
    %847 = vector.extract_strided_slice %834 {offsets = [0, 0], sizes = [2, 16], strides = [1, 1]} : vector<2x48xf32> to vector<2x16xf32>
    %848 = arith.mulf %847, %836 : vector<2x16xf32>
    %849 = arith.addf %846, %848 : vector<2x16xf32>
    %850 = vector.extract_strided_slice %842 {offsets = [0, 16], sizes = [2, 16], strides = [1, 1]} : vector<2x48xf32> to vector<2x16xf32>
    %851 = arith.mulf %850, %803 : vector<2x16xf32>
    %852 = vector.extract_strided_slice %842 {offsets = [0, 0], sizes = [2, 16], strides = [1, 1]} : vector<2x48xf32> to vector<2x16xf32>
    %853 = arith.mulf %852, %844 : vector<2x16xf32>
    %854 = arith.addf %851, %853 : vector<2x16xf32>
    %855 = vector.extract_strided_slice %834 {offsets = [0, 32], sizes = [2, 16], strides = [1, 1]} : vector<2x48xf32> to vector<2x16xf32>
    %856 = math.tanh %849 : vector<2x16xf32>
    %857 = arith.mulf %855, %856 : vector<2x16xf32>
    %858 = vector.extract_strided_slice %842 {offsets = [0, 32], sizes = [2, 16], strides = [1, 1]} : vector<2x48xf32> to vector<2x16xf32>
    %859 = math.tanh %854 : vector<2x16xf32>
    %860 = arith.mulf %858, %859 : vector<2x16xf32>
    %c2_i32_247 = arith.constant 2 : i32
    %861 = arith.muli %c6_i32_238, %c2_i32_247 : i32
    %862 = arith.index_cast %861 : i32 to index
    %c32_248 = arith.constant 32 : index
    %863 = vector.load %arg8[%862, %c32_248] : memref<16x64xf32, #tpu.memory_space<vmem>>, vector<2x16xf32>
    tpu.vector_store %arg8[%862, %c32_248], %857 {strides = array<i32>} : memref<16x64xf32, #tpu.memory_space<vmem>>, vector<2x16xf32>,
    %c2_i32_249 = arith.constant 2 : i32
    %864 = arith.muli %817, %c2_i32_249 : i32
    %865 = arith.index_cast %864 : i32 to index
    %c48_250 = arith.constant 48 : index
    %866 = vector.load %arg8[%865, %c48_250] : memref<16x64xf32, #tpu.memory_space<vmem>>, vector<2x16xf32>
    tpu.vector_store %arg8[%865, %c48_250], %860 {strides = array<i32>} : memref<16x64xf32, #tpu.memory_space<vmem>>, vector<2x16xf32>,
    %867 = tpu.concatenate %857, %860 in 1 : vector<2x16xf32>, vector<2x16xf32> -> vector<2x32xf32>
    %c7_i32_251 = arith.constant 7 : i32
    %c7_i32_252 = arith.constant 7 : i32
    %868 = arith.subi %c7_i32_252, %c7_i32_251 : i32
    %cst_253 = arith.constant dense<0.000000e+00> : vector<2x128xf32>
    %869 = tpu.matmul %867, %508, %cst_253 {dimension_numbers = #tpu.dot_dimension_numbers<[1], [0], [0], [1], [0, 0, 1, 1], [], []>} : vector<2x32xf32>, vector<32x128xf32>, vector<2x128xf32> -> vector<2x128xf32>
    %c2_i32_254 = arith.constant 2 : i32
    %870 = arith.muli %c7_i32_251, %c2_i32_254 : i32
    %871 = arith.index_cast %870 : i32 to index
    %c0_255 = arith.constant 0 : index
    %872 = vector.load %arg7[%871, %c0_255] : memref<16x128xf32, #tpu.memory_space<vmem>>, vector<2x128xf32>
    %873 = arith.addf %872, %869 : vector<2x128xf32>
    %874 = vector.extract_strided_slice %873 {offsets = [0, 0], sizes = [2, 64], strides = [1, 1]} : vector<2x128xf32> to vector<2x64xf32>
    %c2_i32_256 = arith.constant 2 : i32
    %875 = arith.muli %868, %c2_i32_256 : i32
    %876 = arith.index_cast %875 : i32 to index
    %c0_257 = arith.constant 0 : index
    %877 = vector.load %arg7[%876, %c0_257] : memref<16x128xf32, #tpu.memory_space<vmem>>, vector<2x128xf32>
    %878 = arith.addf %877, %869 : vector<2x128xf32>
    %879 = vector.extract_strided_slice %878 {offsets = [0, 64], sizes = [2, 64], strides = [1, 1]} : vector<2x128xf32> to vector<2x64xf32>
    %880 = vector.extract_strided_slice %874 {offsets = [0, 0], sizes = [2, 48], strides = [1, 1]} : vector<2x64xf32> to vector<2x48xf32>
    %881 = arith.negf %880 : vector<2x48xf32>
    %882 = math.exp %881 : vector<2x48xf32>
    %cst_258 = arith.constant 1.000000e+00 : f32
    %883 = vector.broadcast %cst_258 : f32 to vector<2x48xf32>
    %884 = arith.addf %883, %882 : vector<2x48xf32>
    %885 = arith.divf %883, %884 : vector<2x48xf32>
    %886 = vector.extract_strided_slice %874 {offsets = [0, 48], sizes = [2, 16], strides = [1, 1]} : vector<2x64xf32> to vector<2x16xf32>
    %887 = math.tanh %886 : vector<2x16xf32>
    %888 = vector.extract_strided_slice %879 {offsets = [0, 0], sizes = [2, 48], strides = [1, 1]} : vector<2x64xf32> to vector<2x48xf32>
    %889 = arith.negf %888 : vector<2x48xf32>
    %890 = math.exp %889 : vector<2x48xf32>
    %cst_259 = arith.constant 1.000000e+00 : f32
    %891 = vector.broadcast %cst_259 : f32 to vector<2x48xf32>
    %892 = arith.addf %891, %890 : vector<2x48xf32>
    %893 = arith.divf %891, %892 : vector<2x48xf32>
    %894 = vector.extract_strided_slice %879 {offsets = [0, 48], sizes = [2, 16], strides = [1, 1]} : vector<2x64xf32> to vector<2x16xf32>
    %895 = math.tanh %894 : vector<2x16xf32>
    %896 = vector.extract_strided_slice %885 {offsets = [0, 16], sizes = [2, 16], strides = [1, 1]} : vector<2x48xf32> to vector<2x16xf32>
    %897 = arith.mulf %896, %849 : vector<2x16xf32>
    %898 = vector.extract_strided_slice %885 {offsets = [0, 0], sizes = [2, 16], strides = [1, 1]} : vector<2x48xf32> to vector<2x16xf32>
    %899 = arith.mulf %898, %887 : vector<2x16xf32>
    %900 = arith.addf %897, %899 : vector<2x16xf32>
    %901 = vector.extract_strided_slice %893 {offsets = [0, 16], sizes = [2, 16], strides = [1, 1]} : vector<2x48xf32> to vector<2x16xf32>
    %902 = arith.mulf %901, %854 : vector<2x16xf32>
    %903 = vector.extract_strided_slice %893 {offsets = [0, 0], sizes = [2, 16], strides = [1, 1]} : vector<2x48xf32> to vector<2x16xf32>
    %904 = arith.mulf %903, %895 : vector<2x16xf32>
    %905 = arith.addf %902, %904 : vector<2x16xf32>
    %906 = vector.extract_strided_slice %885 {offsets = [0, 32], sizes = [2, 16], strides = [1, 1]} : vector<2x48xf32> to vector<2x16xf32>
    %907 = math.tanh %900 : vector<2x16xf32>
    %908 = arith.mulf %906, %907 : vector<2x16xf32>
    %909 = vector.extract_strided_slice %893 {offsets = [0, 32], sizes = [2, 16], strides = [1, 1]} : vector<2x48xf32> to vector<2x16xf32>
    %910 = math.tanh %905 : vector<2x16xf32>
    %911 = arith.mulf %909, %910 : vector<2x16xf32>
    %c2_i32_260 = arith.constant 2 : i32
    %912 = arith.muli %c7_i32_251, %c2_i32_260 : i32
    %913 = arith.index_cast %912 : i32 to index
    %c32_261 = arith.constant 32 : index
    %914 = vector.load %arg8[%913, %c32_261] : memref<16x64xf32, #tpu.memory_space<vmem>>, vector<2x16xf32>
    tpu.vector_store %arg8[%913, %c32_261], %908 {strides = array<i32>} : memref<16x64xf32, #tpu.memory_space<vmem>>, vector<2x16xf32>,
    %c2_i32_262 = arith.constant 2 : i32
    %915 = arith.muli %868, %c2_i32_262 : i32
    %916 = arith.index_cast %915 : i32 to index
    %c48_263 = arith.constant 48 : index
    %917 = vector.load %arg8[%916, %c48_263] : memref<16x64xf32, #tpu.memory_space<vmem>>, vector<2x16xf32>
    tpu.vector_store %arg8[%916, %c48_263], %911 {strides = array<i32>} : memref<16x64xf32, #tpu.memory_space<vmem>>, vector<2x16xf32>,
    %918 = tpu.concatenate %908, %911 in 1 : vector<2x16xf32>, vector<2x16xf32> -> vector<2x32xf32>
    %c8_i32_264 = arith.constant 8 : i32
    %c0_265 = arith.constant 0 : index
    %c0_266 = arith.constant 0 : index
    %919 = vector.load %arg8[%c0_265, %c0_266] : memref<16x64xf32, #tpu.memory_space<vmem>>, vector<16x64xf32>
    %c0_267 = arith.constant 0 : index
    %c0_268 = arith.constant 0 : index
    %920 = vector.load %arg6[%c0_267, %c0_268] : memref<16x128xf32, #tpu.memory_space<vmem>>, vector<16x64xf32>
    tpu.vector_store %arg6[%c0_267, %c0_268], %919 {strides = array<i32>} : memref<16x128xf32, #tpu.memory_space<vmem>>, vector<16x64xf32>,
    %c0_269 = arith.constant 0 : index
    %c64_270 = arith.constant 64 : index
    %921 = vector.load %arg6[%c0_269, %c64_270] : memref<16x128xf32, #tpu.memory_space<vmem>>, vector<16x16xf32>
    tpu.vector_store %arg6[%c0_269, %c64_270], %77 {strides = array<i32>} : memref<16x128xf32, #tpu.memory_space<vmem>>, vector<16x16xf32>,
    %cst_271 = arith.constant 0.000000e+00 : f32
    %922 = vector.broadcast %cst_271 : f32 to vector<16x48xf32>
    %c0_272 = arith.constant 0 : index
    %c80 = arith.constant 80 : index
    %923 = vector.load %arg6[%c0_272, %c80] : memref<16x128xf32, #tpu.memory_space<vmem>>, vector<16x48xf32>
    tpu.vector_store %arg6[%c0_272, %c80], %922 {strides = array<i32>} : memref<16x128xf32, #tpu.memory_space<vmem>>, vector<16x48xf32>,
    return
  }
  func.func @transform_0(%arg0: i32) -> (i32, i32) {
    %c0_i32 = arith.constant 0 : i32
    %c0_i32_0 = arith.constant 0 : i32
    %c0_i32_1 = arith.constant 0 : i32
    return %c0_i32, %c0_i32_0 : i32, i32
  }
  func.func @transform_1(%arg0: i32) -> (i32, i32) {
    %c0_i32 = arith.constant 0 : i32
    %c0_i32_0 = arith.constant 0 : i32
    %c0_i32_1 = arith.constant 0 : i32
    return %c0_i32, %c0_i32_0 : i32, i32
  }
  func.func @transform_2(%arg0: i32) -> (i32, i32) {
    %c0_i32 = arith.constant 0 : i32
    %c0_i32_0 = arith.constant 0 : i32
    %c0_i32_1 = arith.constant 0 : i32
    return %c0_i32, %c0_i32_0 : i32, i32
  }
  func.func @transform_3(%arg0: i32) -> (i32, i32) {
    %c0_i32 = arith.constant 0 : i32
    %c0_i32_0 = arith.constant 0 : i32
    %c0_i32_1 = arith.constant 0 : i32
    return %c0_i32, %c0_i32_0 : i32, i32
  }
  func.func @transform_4(%arg0: i32) -> (i32, i32) {
    %c0_i32 = arith.constant 0 : i32
    %c0_i32_0 = arith.constant 0 : i32
    %c0_i32_1 = arith.constant 0 : i32
    return %c0_i32, %c0_i32_0 : i32, i32
  }
  func.func @transform_5(%arg0: i32) -> (i32, i32) {
    %c0_i32 = arith.constant 0 : i32
    %c0_i32_0 = arith.constant 0 : i32
    %c0_i32_1 = arith.constant 0 : i32
    return %c0_i32, %c0_i32_0 : i32, i32
  }
}

</mosaic_0001>

<bundles_post_ra>
// kernel: vctree_lstm_context_forward.1
= control target key start
LH: loop header
LB: loop body
LE: loop exit
PB: predicated region body
PF: predicated region fallthrough
CT: control target
= control target key end

     0   :  { %v5305_v3 = vmov 0.0   ;;  %s5306_s10 = smov 96   ;;  %s5307_s11 = smov 64   ;;  %vm542_vm0 = vcmask 261120   ;;  %vm5310_vm2 = vmmov 0   ;;  %vm1408_vm3 = vcmask 255104   ;;  %s6395_s2 = inlined_call_operand.vmem [shape: f32[128,1152], index: 2, kind: input, shape index: {}]   ;;  %s6396_s0 = inlined_call_operand.vmem [shape: f32[16,128], index: 0, kind: input, shape index: {}]   ;;  %s6397_s3 = inlined_call_operand.vmem [shape: f32[32,480], index: 3, kind: input, shape index: {}]   ;;  %s6398_s1 = inlined_call_operand.vmem [shape: f32[16,128], index: 1, kind: input, shape index: {}]   ;;  %s6399_s4 = inlined_call_operand.vmem [shape: f32[1,1024], index: 4, kind: input, shape index: {}]   ;;  %s6400_s5 = inlined_call_operand.vmem [shape: f32[16,128], index: 5, kind: output, shape index: {}]  }
   0x1   :  { %v125_v0 = vld [vmem:[%s6395_s2 + $0x18] sm:$0xff]  ;;  %v127_v1 = vld [vmem:[%s6395_s2 + $0x60] sm:$0xff]  ;;  %v124_v2 = vld [vmem:[%s6395_s2 + $0x10] sm:$0xff]  ;;  %232 = vmatprep.mubr.f32.mxu1 %v5305_v3  ;;  %s5308_s16 = smov 32   ;;  %s5311_s21 = smov 80   ;;  %vm1402_vm4 = vcmask 123904  }
   0x2   :  { %v4572_v4 = vpack.c.bf16 %v127_v1, %v125_v0  ;;  %v126_v5 = vld [vmem:[%s6395_s2 + $0x58] sm:$0xff]  ;;  %v129_v6 = vld [vmem:[%s6395_s2 + $0xa8] sm:$0xff]  ;;  %v131_v7 = vld [vmem:[%s6395_s2 + $0xf0] sm:$0xff]  ;;  %s5312_s22 = smov 16   ;;  %s5313_s23 = smov 48   ;;  %vm1410_vm5 = vcmask 130048  }
   0x3   :  { %v4574_v8 = vpack.c.bf16 %v126_v5, %v124_v2  ;;  %v4576_v9 = vpack.c.bf16 %v131_v7, %v129_v6  ;;  %v128_v10 = vld [vmem:[%s6395_s2 + $0xa0] sm:$0xff]  ;;  %v130_v11 = vld [vmem:[%s6395_s2 + $0xe8] sm:$0xff]  ;;  %v133_v12 = vld [vmem:[%s6395_s2 + $0x138] sm:$0xff]  ;;  %vm2750_vm6 = vcmask 386304   ;;  %vm2756_vm7 = vcmask 517504  }
   0x4   :  { %4573 = vmatprep.subr.bf16.mxu1 %v4572_v4  ;;  %v135_v13 = vld [vmem:[%s6395_s2 + $0x180] sm:$0xff]  ;;  %v4578_v14 = vpack.c.bf16 %v130_v11, %v128_v10  ;;  %v132_v16 = vld [vmem:[%s6395_s2 + $0x130] sm:$0xff]  ;;  %v134_v17 = vld [vmem:[%s6395_s2 + $0x178] sm:$0xff]  ;;  %vm3733_vm8 = vcmask 523264   ;;  %vm3744_vm9 = vcmask 654848   ;;  %vm3747_vm10 = vcmask 1048192  }
   0x5   :  { %4575 = vmatpush1.bf16.msra.mxu1 %v4574_v8  ;;  %v4580_v15 = vpack.c.bf16 %v135_v13, %v133_v12  ;;  %v137_v18 = vld [vmem:[%s6395_s2 + $0x1c8] sm:$0xff]  ;;  %v139_v19 = vld [vmem:[%s6395_s2 + $0x210] sm:$0xff]  ;;  %v4582_v20 = vpack.c.bf16 %v134_v17, %v132_v16  ;;  %v136_v22 = vld [vmem:[%s6395_s2 + $0x1c0] sm:$0xff] }
   0x6   :  { %4577 = vmatprep.subr.bf16.mxu1 %v4576_v9  ;;  %v4584_v21 = vpack.c.bf16 %v139_v19, %v137_v18  ;;  %v138_v23 = vld [vmem:[%s6395_s2 + $0x208] sm:$0xff]  ;;  %v141_v24 = vld [vmem:[%s6395_s2 + $0x258] sm:$0xff]  ;;  %v143_v25 = vld [vmem:[%s6395_s2 + $0x2a0] sm:$0xff] }
   0x7   :  { %v5404_v26 = vld [vmem:[%s6396_s0] sm:$0xff]  ;;  %v25_v28 = vld [vmem:[%s6395_s2 + $0x48] sm:$0xff]  ;;  %v4586_v29 = vpack.c.bf16 %v138_v23, %v136_v22  ;;  %v140_v30 = vld [vmem:[%s6395_s2 + $0x250] sm:$0xff]  ;;  %v4588_v34 = vpack.c.bf16 %v143_v25, %v141_v24 }
   0x8   :  { %v24_v27 = vld [vmem:[%s6395_s2] sm:$0xff]  ;;  %4093 = vmatprep.mubr.f32.mxu0 %v5404_v26  ;;  %v26_v32 = vld [vmem:[%s6395_s2 + $0x90] sm:$0xff]  ;;  %v27_v33 = vld [vmem:[%s6395_s2 + $0xd8] sm:$0xff] }
   0x9   :  { %4579 = vmatpush1.bf16.msra.mxu1 %v4578_v14  ;;  %v4540_v31 = vpack.c.bf16 %v25_v28, %v24_v27  ;;  %v142_v35 = vld [vmem:[%s6395_s2 + $0x298] sm:$0xff]  ;;  %v4544_v36 = vpack.c.bf16 %v27_v33, %v26_v32  ;;  %v28_v37 = vld [vmem:[%s6395_s2 + $0x120] sm:$0xff]  ;;  %v29_v38 = vld [vmem:[%s6395_s2 + $0x168] sm:$0xff] }
   0xa   :  { %4581 = vmatprep.subr.bf16.mxu1 %v4580_v15  ;;  %v145_v39 = vld [vmem:[%s6395_s2 + $0x2e8] sm:$0xff]  ;;  %v147_v40 = vld [vmem:[%s6395_s2 + $0x330] sm:$0xff]  ;;  %v4590_v41 = vpack.c.bf16 %v142_v35, %v140_v30  ;;  %v144_v42 = vld [vmem:[%s6395_s2 + $0x2e0] sm:$0xff]  ;;  %v4548_v43 = vpack.c.bf16 %v29_v38, %v28_v37 }
   0xb   :  { %4541 = vmatprep.subr.bf16.mxu0 %v4540_v31  ;;  %v4592_v44 = vpack.c.bf16 %v147_v40, %v145_v39  ;;  %v146_v45 = vld [vmem:[%s6395_s2 + $0x328] sm:$0xff]  ;;  %v30_v46 = vld [vmem:[%s6395_s2 + $0x1b0] sm:$0xff]  ;;  %v31_v47 = vld [vmem:[%s6395_s2 + $0x1f8] sm:$0xff] }
   0xc   :  { %4543 = vmatpush3.bf16.msra.mxu0 %v4540_v31  ;;  %v149_v48 = vld [vmem:[%s6395_s2 + $0x378] sm:$0xff]  ;;  %v151_v49 = vld [vmem:[%s6395_s2 + $0x3c0] sm:$0xff]  ;;  %v4594_v50 = vpack.c.bf16 %v146_v45, %v144_v42  ;;  %v148_v51 = vld [vmem:[%s6395_s2 + $0x370] sm:$0xff]  ;;  %v4552_v52 = vpack.c.bf16 %v31_v47, %v30_v46 }
   0xd   :  { %4583 = vmatpush1.bf16.msra.mxu1 %v4582_v20  ;;  %4545 = vmatprep.subr.bf16.mxu0 %v4544_v36  ;;  %v4596_v53 = vpack.c.bf16 %v151_v49, %v149_v48  ;;  %v150_v54 = vld [vmem:[%s6395_s2 + $0x3b8] sm:$0xff]  ;;  %v32_v55 = vld [vmem:[%s6395_s2 + $0x240] sm:$0xff]  ;;  %v33_v56 = vld [vmem:[%s6395_s2 + $0x288] sm:$0xff]  ;;  %v158_v49 = vlaneseq }
   0xe   :  { %4585 = vmatprep.subr.bf16.mxu1 %v4584_v21  ;;  %v153_v57 = vld [vmem:[%s6395_s2 + $0x408] sm:$0xff]  ;;  %v155_v58 = vld [vmem:[%s6395_s2 + $0x450] sm:$0xff]  ;;  %v4598_v59 = vpack.c.bf16 %v150_v54, %v148_v51  ;;  %v152_v60 = vld [vmem:[%s6395_s2 + $0x400] sm:$0xff]  ;;  %v4556_v61 = vpack.c.bf16 %v33_v56, %v32_v55 }
   0xf   :  { %v4600_v62 = vpack.c.bf16 %v155_v58, %v153_v57  ;;  %v154_v63 = vld [vmem:[%s6395_s2 + $0x448] sm:$0xff]  ;;  %v34_v0 = vld [vmem:[%s6395_s2 + $0x2d0] sm:$0xff]  ;;  %v35_v1 = vld [vmem:[%s6395_s2 + $0x318] sm:$0xff] }
  0x10   :  { %4547 = vmatpush3.bf16.msra.mxu0 %v4544_v36  ;;  %v4602_v2 = vpack.c.bf16 %v154_v63, %v152_v60  ;;  %v4560_v4 = vpack.c.bf16 %v35_v1, %v34_v0  ;;  %v36_v5 = vld [vmem:[%s6395_s2 + $0x360] sm:$0xff]  ;;  %v37_v6 = vld [vmem:[%s6395_s2 + $0x3a8] sm:$0xff]  ;;  %v38_v8 = vld [vmem:[%s6395_s2 + $0x3f0] sm:$0xff] }
  0x11   :  { %4587 = vmatpush1.bf16.msra.mxu1 %v4586_v29  ;;  %4549 = vmatprep.subr.bf16.mxu0 %v4548_v43  ;;  %v4564_v7 = vpack.c.bf16 %v37_v6, %v36_v5  ;;  %v39_v9 = vld [vmem:[%s6395_s2 + $0x438] sm:$0xff]  ;;  %v5502_v10 = vld [vmem:[%s6396_s0 + $0x8] sm:$0xff]  ;;  %v265_v12 = vld [vmem:[%s6395_s2 + $0x20] sm:$0xff] }
  0x12   :  { %4589 = vmatprep.subr.bf16.mxu1 %v4588_v34  ;;  %v4568_v11 = vpack.c.bf16 %v39_v9, %v38_v8  ;;  %v266_v13 = vld [vmem:[%s6395_s2 + $0x68] sm:$0xff]  ;;  %v267_v15 = vld [vmem:[%s6395_s2 + $0xb0] sm:$0xff]  ;;  %v268_v16 = vld [vmem:[%s6395_s2 + $0xf8] sm:$0xff] }
  0x13   :  { %v4604_v14 = vpack.c.bf16 %v266_v13, %v265_v12  ;;  %v4608_v17 = vpack.c.bf16 %v268_v16, %v267_v15  ;;  %v269_v18 = vld [vmem:[%s6395_s2 + $0x140] sm:$0xff]  ;;  %v270_v19 = vld [vmem:[%s6395_s2 + $0x188] sm:$0xff]  ;;  %v271_v21 = vld [vmem:[%s6395_s2 + $0x1d0] sm:$0xff] }
  0x14   :  { %4551 = vmatpush3.bf16.msra.mxu0 %v4548_v43  ;;  %v4612_v20 = vpack.c.bf16 %v270_v19, %v269_v18  ;;  %v272_v22 = vld [vmem:[%s6395_s2 + $0x218] sm:$0xff]  ;;  %v273_v24 = vld [vmem:[%s6395_s2 + $0x260] sm:$0xff]  ;;  %v274_v25 = vld [vmem:[%s6395_s2 + $0x2a8] sm:$0xff] }
  0x15   :  { %4591 = vmatpush1.bf16.msra.mxu1 %v4590_v41  ;;  %4553 = vmatprep.subr.bf16.mxu0 %v4552_v52  ;;  %v4616_v23 = vpack.c.bf16 %v272_v22, %v271_v21  ;;  %v4620_v27 = vpack.c.bf16 %v274_v25, %v273_v24  ;;  %v275_v28 = vld [vmem:[%s6395_s2 + $0x2f0] sm:$0xff]  ;;  %v276_v29 = vld [vmem:[%s6395_s2 + $0x338] sm:$0xff]  ;;  %v277_v31 = vld [vmem:[%s6395_s2 + $0x380] sm:$0xff] }
  0x16   :  { %4593 = vmatprep.subr.bf16.mxu1 %v4592_v44  ;;  %v4624_v30 = vpack.c.bf16 %v276_v29, %v275_v28  ;;  %v278_v32 = vld [vmem:[%s6395_s2 + $0x3c8] sm:$0xff]  ;;  %v279_v34 = vld [vmem:[%s6395_s2 + $0x410] sm:$0xff]  ;;  %v280_v35 = vld [vmem:[%s6395_s2 + $0x458] sm:$0xff] }
  0x17   :  { %v4628_v33 = vpack.c.bf16 %v278_v32, %v277_v31  ;;  %v4632_v36 = vpack.c.bf16 %v280_v35, %v279_v34  ;;  %v249_v37 = vld [vmem:[%s6395_s2 + $0x8] sm:$0xff]  ;;  %v250_v38 = vld [vmem:[%s6395_s2 + $0x50] sm:$0xff]  ;;  %v5563_v40 = vld [vmem:[%s6397_s3] sm:$0xff] }
  0x18   :  { %4555 = vmatpush3.bf16.msra.mxu0 %v4552_v52  ;;  %v4636_v39 = vpack.c.bf16 %v250_v38, %v249_v37  ;;  %v5568_v41 = vld [vmem:[%s6397_s3 + $0x20] sm:$0xff]  ;;  %v23_v47 = vld [vmem:[%s6398_s1 + $0x8] sm:$0xff]  ;;  %v255_v6 = vld [vmem:[%s6395_s2 + $0x1b8] sm:$0xff] }
  0x19   :  { %4595 = vmatpush1.bf16.msra.mxu1 %v4594_v50  ;;  %4557 = vmatprep.subr.bf16.mxu0 %v4556_v61  ;;  %v5573_v42 = vld [vmem:[%s6397_s3 + $0x40] sm:$0xff]  ;;  %v4955_v43 = vpack.i.bf16 %v5568_v41, %v5563_v40  ;;  %v4700_v45 = vpack.c.bf16 %v5568_v41, %v5563_v40  ;;  %v159_v50 = vshrl.u32 %v158_v49, 7  ;;  %v253_v1 = vld [vmem:[%s6395_s2 + $0x128] sm:$0xff]  ;;  %v258_v12 = vld [vmem:[%s6395_s2 + $0x290] sm:$0xff] }
  0x1a   :  { %4597 = vmatprep.subr.bf16.mxu1 %v4596_v53  ;;  %v5580_v44 = vld [vmem:[%s6397_s3 + $0x60] sm:$0xff]  ;;  %v262_v18 = vld [vmem:[%s6395_s2 + $0x3b0] sm:$0xff]  ;;  %v263_v21 = vld [vmem:[%s6395_s2 + $0x3f8] sm:$0xff] }
  0x1b   :  { %4956 = vrot.lane.b32.xlu0 %v4955_v43, %s5306_s10  ;;  %v4960_v46 = vpack.i.bf16 %v5580_v44, %v5573_v42  ;;  %4966 = vrot.lane.b32.xlu1 %v4955_v43, %s5307_s11  ;;  %v22_v48 = vld [vmem:[%s6398_s1] sm:$0xff]  ;;  %v160_v51 = vsub.s32 0, %v159_v50  ;;  %v431_v25 = vld [vmem:[%s6395_s2 + $0x28] sm:$0xff]  ;;  %vm5741_vm1 = vmpackc.low %vm542_vm0, %vm542_vm0 }
  0x1c   :  { %4559 = vmatpush3.bf16.msra.mxu0 %v4556_v61  ;;  %v156_v52 = vld [vmem:[%s6399_s4 + $0x1] sm:$0x3]  ;;  %v435_v34 = vld [vmem:[%s6395_s2 + $0x148] sm:$0xff]  ;;  %v436_v35 = vld [vmem:[%s6395_s2 + $0x190] sm:$0xff] }
  0x1d   :  { %4599 = vmatpush1.bf16.msra.mxu1 %v4598_v59  ;;  %4561 = vmatprep.subr.bf16.mxu0 %v4560_v4  ;;  %v161_v53 = vrot.slane %v156_v52, %v160_v51  ;;  %v251_v59 = vld [vmem:[%s6395_s2 + $0x98] sm:$0xff]  ;;  %v252_v60 = vld [vmem:[%s6395_s2 + $0xe0] sm:$0xff]  ;;  %v439_v43 = vld [vmem:[%s6395_s2 + $0x268] sm:$0xff] }
  0x1e   :  { %4601 = vmatprep.subr.bf16.mxu1 %v4600_v62  ;;  %v4640_v0 = vpack.c.bf16 %v252_v60, %v251_v59  ;;  %v260_v15 = vld [vmem:[%s6395_s2 + $0x320] sm:$0xff]  ;;  %v437_v37 = vld [vmem:[%s6395_s2 + $0x1d8] sm:$0xff]  ;;  %v444_v51 = vld [vmem:[%s6395_s2 + $0x3d0] sm:$0xff]  ;;  %v4704_v59 = vpack.c.bf16 %v5580_v44, %v5573_v42 }
  0x1f   :  { %4961 = vrot.lane.b32.xlu0 %v4960_v46, %s5306_s10  ;;  %4971 = vrot.lane.b32.xlu1 %v4960_v46, %s5307_s11  ;;  %v264_v22 = vld [vmem:[%s6395_s2 + $0x440] sm:$0xff] }
  0x20   :  { %4563 = vmatpush3.bf16.msra.mxu0 %v4560_v4  ;;  %v434_v31 = vld [vmem:[%s6395_s2 + $0x100] sm:$0xff] }
  0x21   :  { %4603 = vmatpush1.bf16.msra.mxu1 %v4602_v2  ;;  %4565 = vmatprep.subr.bf16.mxu0 %v4564_v7  ;;  %v254_v2 = vld [vmem:[%s6395_s2 + $0x170] sm:$0xff]  ;;  %v438_v38 = vld [vmem:[%s6395_s2 + $0x220] sm:$0xff] }
  0x22   :  { %4701 = vmatprep.subr.bf16.mxu1 %v4700_v45  ;;  %v4644_v4 = vpack.c.bf16 %v254_v2, %v253_v1  ;;  %v1234_v1 = vld [vmem:[%s6397_s3 + $0x8] sm:$0xff] }
  0x23   :  { %726 = vrot.lane.b32.xlu1 %v23_v47, %s5308_s16  ;;  %724 = vrot.lane.b32.xlu0 %v22_v48, %s5308_s16  ;;  %v441_v47 = vld [vmem:[%s6395_s2 + $0x2f8] sm:$0xff]  ;;  %v442_v48 = vld [vmem:[%s6395_s2 + $0x340] sm:$0xff] }
  0x24   :  { %233 = vmatmul.mubr.f32.vlgmr.msra.gmra.mrb[0].mxu1 %v5404_v26  ;;  %4567 = vmatpush3.bf16.msra.mxu0 %v4564_v7  ;;  %v256_v7 = vld [vmem:[%s6395_s2 + $0x200] sm:$0xff]  ;;  %v4688_v49 = vpack.c.bf16 %v442_v48, %v441_v47  ;;  %v1236_v2 = vld [vmem:[%s6397_s3 + $0x28] sm:$0xff] }
  0x25   :  { %238 = vmatprep.mubr.f32.mxu1 %v5305_v3  ;;  %4569 = vmatprep.subr.bf16.mxu0 %v4568_v11  ;;  %v4648_v9 = vpack.c.bf16 %v256_v7, %v255_v6  ;;  %v4980_v6 = vpack.i.bf16 %v1236_v2, %v5568_v41  ;;  %v1238_v7 = vld [vmem:[%s6397_s3 + $0x48] sm:$0xff] }
  0x26   :  { %4703 = vmatpush3.bf16.msra.mxu1 %v4700_v45  ;;  %v440_v45 = vld [vmem:[%s6395_s2 + $0x2b0] sm:$0xff] }
  0x27   :  { %v4684_v46 = vpack.c.bf16 %v440_v45, %v439_v43  ;;  %4705 = vmatprep.subr.bf16.mxu1 %v4704_v59 }
  0x28   :  { %239 = vmatmul.mubr.f32.gmra.mrb[2].mxu1 %v5502_v10  ;;  %4571 = vmatpush3.bf16.msra.mxu0 %v4568_v11  ;;  %v257_v11 = vld [vmem:[%s6395_s2 + $0x248] sm:$0xff] }
  0x29   :  { %4605 = vmatprep.subr.bf16.mxu0 %v4604_v14  ;;  %v4652_v13 = vpack.c.bf16 %v258_v12, %v257_v11  ;;  %v4985_v11 = vpack.i.bf16 %v1238_v7, %v5573_v42 }
  0x2a   :  { %4707 = vmatpush3.bf16.msra.mxu1 %v4704_v59 }
  0x2b   :  { %4094 = vmatmul.mubr.f32.vlgmr.msra.gmra.mrb[0].mxu0 %v5502_v10 }
  0x2c   :  { %4607 = vmatpush3.bf16.msra.mxu0 %v4604_v14  ;;  %v259_v14 = vld [vmem:[%s6395_s2 + $0x2d8] sm:$0xff] }
  0x2d   :  { %4609 = vmatprep.subr.bf16.mxu0 %v4608_v17  ;;  %v4656_v16 = vpack.c.bf16 %v260_v15, %v259_v14 }
  0x30   :  { %4611 = vmatpush3.bf16.msra.mxu0 %v4608_v17  ;;  %v261_v17 = vld [vmem:[%s6395_s2 + $0x368] sm:$0xff] }
  0x31   :  { %4613 = vmatprep.subr.bf16.mxu0 %v4612_v20  ;;  %v4660_v19 = vpack.c.bf16 %v262_v18, %v261_v17 }
  0x34   :  { %4615 = vmatpush3.bf16.msra.mxu0 %v4612_v20  ;;  %v164_v20 = vsub.s32 1, %v159_v50  ;;  %v443_v50 = vld [vmem:[%s6395_s2 + $0x388] sm:$0xff] }
  0x35   :  { %4617 = vmatprep.subr.bf16.mxu0 %v4616_v23 }
  0x36   :  { %v165_v24 = vrot.slane %v156_v52, %v164_v20  ;;  %v4692_v52 = vpack.c.bf16 %v444_v51, %v443_v50 }
  0x38   :  { %4619 = vmatpush3.bf16.msra.mxu0 %v4616_v23  ;;  %v4664_v23 = vpack.c.bf16 %v264_v22, %v263_v21 }
  0x39   :  { %4621 = vmatprep.subr.bf16.mxu0 %v4620_v27 }
  0x3c   :  { %4623 = vmatpush3.bf16.msra.mxu0 %v4620_v27  ;;  %v432_v27 = vld [vmem:[%s6395_s2 + $0x70] sm:$0xff] }
  0x3d   :  { %4625 = vmatprep.subr.bf16.mxu0 %v4624_v30  ;;  %v4668_v28 = vpack.c.bf16 %v432_v27, %v431_v25 }
  0x40   :  { %4627 = vmatpush3.bf16.msra.mxu0 %v4624_v30  ;;  %v433_v30 = vld [vmem:[%s6395_s2 + $0xb8] sm:$0xff] }
  0x41   :  { %4629 = vmatprep.subr.bf16.mxu0 %v4628_v33  ;;  %v4672_v32 = vpack.c.bf16 %v434_v31, %v433_v30  ;;  %v1066_v31 = vld [vmem:[%s6395_s2 + $0x308] sm:$0xff] }
  0x44   :  { %4631 = vmatpush3.bf16.msra.mxu0 %v4628_v33 }
  0x45   :  { %4633 = vmatprep.subr.bf16.mxu0 %v4632_v36 }
  0x48   :  { %4635 = vmatpush3.bf16.msra.mxu0 %v4632_v36  ;;  %v4676_v36 = vpack.c.bf16 %v436_v35, %v435_v34 }
  0x49   :  { %4637 = vmatprep.subr.bf16.mxu0 %v4636_v39 }
  0x8d   :  { %v4957_v60 = vpop.permute.xlu0 %4956 }
  0xf7   :  { %v234_v54 = vpop.f32.mrb[0].mxu1 }
  0xf8   :  { %v235_v55 = vadd.f32 %v234_v54, %v161_v53  ;;  %v236_v56 = vpop.f32.mrb[1].mxu1  ;;  %v446_v54 = vld [vmem:[%s6395_s2 + $0x460] sm:$0xff] }
  0xf9   :  { %v237_v29 = vadd.f32 %v236_v56, %v165_v24 }
  0xfa   :  { %v245_v57 = vmax.f32 %v235_v55, 0.0 }
  0xfb   :  { %v240_v58 = vpop.f32.mrb[2].mxu1  ;;  %v246_v33 = vmax.f32 %v237_v29, 0.0 }
  0xfc   :  { %v241_v61 = vadd.f32 %v240_v58, %v161_v53  ;;  %v5607_v62 = vpop.f32.mrb[3].mxu1  ;;  %4128 = vmatprep.mubr.f32.mxu0 %v245_v57  ;;  %v445_v53 = vld [vmem:[%s6395_s2 + $0x418] sm:$0xff]  ;;  %v3755_v58 = vld [vmem:[%s6399_s4 + $0x5] ss:$0 sm:$0xff] }
  0xfd   :  { %v4696_v55 = vpack.c.bf16 %v446_v54, %v445_v53  ;;  %v243_v56 = vadd.f32 %v5607_v62, %v165_v24  ;;  %539 = vrot.lane.b32.xlu0 %v3755_v58, %s5306_s10  ;;  %642 = vrot.lane.b32.xlu1 %v3755_v58, %s5307_s11  ;;  %v5309_v54 = vmov 0.0|0.0  }
  0xfe   :  { %v247_v63 = vmax.f32 %v241_v61, 0.0  ;;  %v5616_v5 = vpop.f32.mrb[0].mxu0  ;;  %v4959_v61 = vunpack.i.h.bf16 %v4957_v60 }
  0xff   :  { %v5624_v8 = vpop.f32.mrb[1].mxu0  ;;  %v248_v57 = vmax.f32 %v243_v56, 0.0 }
 0x100   :  { %4129 = vmatmul.mubr.f32.vlgmr.msra.gmra.mrb[2].mxu0 %v247_v63  ;;  %v4958_v63 = vunpack.i.l.bf16 %v4957_v60 }
 0x101   :  { %4639 = vmatpush3.bf16.msra.mxu0 %v4636_v39  ;;  %4163 = vmatprep.mubr.f32.mxu0 %v5404_v26  ;;  %v4680_v39 = vpack.c.bf16 %v438_v38, %v437_v37 }
 0x102   :  { %4641 = vmatprep.subr.bf16.mxu0 %v4640_v0  ;;  %v4708_v62 = vpack.c.bf16 %v4959_v61, %v4958_v63 }
 0x104   :  { %4709 = vmatprep.subr.bf16.mxu1 %v4708_v62 }
 0x105   :  { %4643 = vmatpush3.bf16.msra.mxu0 %v4640_v0  ;;  %v5710_v0 = vld [vmem:[%s6399_s4 + $0x6] ss:$0 sm:$0xff] }
 0x106   :  { %4645 = vmatprep.subr.bf16.mxu0 %v4644_v4  ;;  %909 = vrot.lane.b32.xlu0 %v5710_v0, %s5306_s10 }
 0x109   :  { %4647 = vmatpush3.bf16.msra.mxu0 %v4644_v4  ;;  %v4975_v4 = vpack.i.bf16 %v1234_v1, %v5563_v40  ;;  %v4962_v40 = vpop.permute.xlu0 %4961 }
 0x10a   :  { %4649 = vmatprep.subr.bf16.mxu0 %v4648_v9  ;;  %4981 = vrot.lane.b32.xlu0 %v4980_v6, %s5308_s16  ;;  %v4963_v17 = vunpack.i.l.bf16 %v4962_v40 }
 0x10b   :  { %4976 = vrot.lane.b32.xlu1 %v4975_v4, %s5308_s16 }
 0x10d   :  { %4651 = vmatpush3.bf16.msra.mxu0 %v4648_v9  ;;  %v1240_v9 = vld [vmem:[%s6397_s3 + $0x68] sm:$0xff] }
 0x10e   :  { %4653 = vmatprep.subr.bf16.mxu0 %v4652_v13  ;;  %v4990_v12 = vpack.i.bf16 %v1240_v9, %v5580_v44 }
 0x10f   :  { %4986 = vrot.lane.b32.xlu1 %v4985_v11, %s5308_s16 }
 0x110   :  { %4991 = vrot.lane.b32.xlu0 %v4990_v12, %s5308_s16  ;;  %v1056_v12 = vld [vmem:[%s6395_s2 + $0x38] sm:$0xff] }
 0x111   :  { %4655 = vmatpush3.bf16.msra.mxu0 %v4652_v13  ;;  %v4967_v13 = vpop.permute.xlu1 %4966 }
 0x112   :  { %4657 = vmatprep.subr.bf16.mxu0 %v4656_v16  ;;  %v4969_v42 = vunpack.i.h.bf16 %v4967_v13  ;;  %v4968_v21 = vunpack.i.l.bf16 %v4967_v13 }
 0x114   :  { %v4716_v25 = vpack.c.bf16 %v4969_v42, %v4968_v21  ;;  %v1059_v42 = vld [vmem:[%s6395_s2 + $0x110] sm:$0xff] }
 0x115   :  { %4659 = vmatpush3.bf16.msra.mxu0 %v4656_v16  ;;  %v4964_v16 = vunpack.i.h.bf16 %v4962_v40  ;;  %v4972_v44 = vpop.permute.xlu1 %4971  ;;  %v1057_v40 = vld [vmem:[%s6395_s2 + $0x80] sm:$0xff] }
 0x116   :  { %4661 = vmatprep.subr.bf16.mxu0 %v4660_v19  ;;  %v4973_v24 = vunpack.i.l.bf16 %v4972_v44 }
 0x117   :  { %v4712_v22 = vpack.c.bf16 %v4964_v16, %v4963_v17  ;;  %v3754_v17 = vld [vmem:[%s6399_s4] ss:$0 sm:$0xff] }
 0x119   :  { %4663 = vmatpush3.bf16.msra.mxu0 %v4660_v19  ;;  %v727_v29 = vpop.permute.xlu1 %726 }
 0x11a   :  { %4665 = vmatprep.subr.bf16.mxu0 %v4664_v23 }
 0x11d   :  { %4667 = vmatpush3.bf16.msra.mxu0 %v4664_v23  ;;  %v4974_v23 = vunpack.i.h.bf16 %v4972_v44 }
 0x11e   :  { %4669 = vmatprep.subr.bf16.mxu0 %v4668_v28 }
 0x11f   :  { %v4720_v27 = vpack.c.bf16 %v4974_v23, %v4973_v24  ;;  %v1060_v23 = vld [vmem:[%s6395_s2 + $0x158] sm:$0xff]  ;;  %v1062_v24 = vld [vmem:[%s6395_s2 + $0x1e8] sm:$0xff] }
 0x120   :  { %4164 = vmatmul.mubr.f32.vlgmr.msra.gmra.mrb[2].mxu0 %v5502_v10 }
 0x121   :  { %4671 = vmatpush3.bf16.msra.mxu0 %v4668_v28  ;;  %4198 = vmatprep.mubr.f32.mxu0 %v246_v33  ;;  %v725_v28 = vpop.permute.xlu0 %724 }
 0x122   :  { %4673 = vmatprep.subr.bf16.mxu0 %v4672_v32  ;;  %v4724_v30 = vpack.c.bf16 %v727_v29, %v725_v28 }
 0x125   :  { %4675 = vmatpush3.bf16.msra.mxu0 %v4672_v32 }
 0x126   :  { %4677 = vmatprep.subr.bf16.mxu0 %v4676_v36 }
 0x129   :  { %4679 = vmatpush3.bf16.msra.mxu0 %v4676_v36 }
 0x12a   :  { %4681 = vmatprep.subr.bf16.mxu0 %v4680_v39 }
 0x12d   :  { %4683 = vmatpush3.bf16.msra.mxu0 %v4680_v39 }
 0x12e   :  { %4685 = vmatprep.subr.bf16.mxu0 %v4684_v46 }
 0x131   :  { %4687 = vmatpush3.bf16.msra.mxu0 %v4684_v46 }
 0x132   :  { %4689 = vmatprep.subr.bf16.mxu0 %v4688_v49 }
 0x135   :  { %4691 = vmatpush3.bf16.msra.mxu0 %v4688_v49 }
 0x136   :  { %4693 = vmatprep.subr.bf16.mxu0 %v4692_v52 }
 0x139   :  { %4695 = vmatpush3.bf16.msra.mxu0 %v4692_v52 }
 0x13a   :  { %4697 = vmatprep.subr.bf16.mxu0 %v4696_v55 }
 0x13d   :  { %4699 = vmatpush3.bf16.msra.mxu0 %v4696_v55 }
 0x13e   :  { %4800 = vmatprep.subr.bf16.mxu0 %v5309_v54 }
 0x140   :  { %4199 = vmatmul.mubr.f32.vlgmr.msra.gmra.mrb[2].mxu0 %v248_v57 }
 0x141   :  { %4326 = vmatprep.mubr.msk.f32.mxu0 %vm5310_vm2, %v5305_v3 }
 0x16f   :  { %v540_v32 = vpop.permute.xlu0 %539  ;;  %v643_v33 = vpop.permute.xlu1 %642 }
 0x178   :  { %v5750_v34 = vpop.permute.xlu0 %909 }
 0x17c   :  { %v4982_v36 = vpop.permute.xlu0 %4981 }
 0x17d   :  { %v4977_v35 = vpop.permute.xlu1 %4976  ;;  %v4984_v39 = vunpack.i.h.bf16 %v4982_v36  ;;  %v4983_v43 = vunpack.i.l.bf16 %v4982_v36 }
 0x17e   :  { %v4979_v37 = vunpack.i.h.bf16 %v4977_v35  ;;  %v4978_v38 = vunpack.i.l.bf16 %v4977_v35  ;;  %v1069_v35 = vld [vmem:[%s6395_s2 + $0x3e0] sm:$0xff] }
 0x17f   :  { %v1266_v46 = vsel %vm542_vm0, %v4983_v43, %v4984_v39  ;;  %v1040_v43 = vld [vmem:[%s6395_s2 + $0x30] sm:$0xff] }
 0x180   :  { %v1265_v45 = vsel %vm542_vm0, %v4978_v38, %v4979_v37  ;;  %v1070_v37 = vld [vmem:[%s6395_s2 + $0x428] sm:$0xff]  ;;  %v1071_v38 = vld [vmem:[%s6395_s2 + $0x470] sm:$0xff] }
 0x181   :  { %v5754_v47 = vpack.c.bf16 %v1266_v46, %v1265_v45  ;;  %v4987_v48 = vpop.permute.xlu1 %4986  ;;  %v4764_v39 = vpack.c.bf16 %v1071_v38, %v1070_v37  ;;  %v1041_v45 = vld [vmem:[%s6395_s2 + $0x78] sm:$0xff]  ;;  %v119_v46 = vadd.f32 %v5616_v5, %v3754_v17 }
 0x182   :  { %v4992_v49 = vpop.permute.xlu0 %4991  ;;  %v4989_v50 = vunpack.i.h.bf16 %v4987_v48  ;;  %v4988_v51 = vunpack.i.l.bf16 %v4987_v48  ;;  %v4768_v48 = vpack.c.bf16 %v1041_v45, %v1040_v43  ;;  %v1045_v5 = vld [vmem:[%s6395_s2 + $0x198] sm:$0xff] }
 0x183   :  { %v4994_v52 = vunpack.i.h.bf16 %v4992_v49  ;;  %v4993_v53 = vunpack.i.l.bf16 %v4992_v49  ;;  %4802 = vmatpush3.bf16.msra.mxu0 %v5754_v47  ;;  %v1042_v49 = vld [vmem:[%s6395_s2 + $0xc0] sm:$0xff] }
 0x184   :  { %v1267_v55 = vsel %vm542_vm0, %v4988_v51, %v4989_v50  ;;  %4803 = vmatprep.subr.bf16.mxu0 %v5309_v54  ;;  %v1043_v50 = vld [vmem:[%s6395_s2 + $0x108] sm:$0xff]  ;;  %v123_v51 = vmax.f32 %v119_v46, 0.0 }
 0x185   :  { %v1268_v56 = vsel %vm542_vm0, %v4993_v53, %v4994_v52  ;;  %v4772_v52 = vpack.c.bf16 %v1043_v50, %v1042_v49  ;;  %v1044_v53 = vld [vmem:[%s6395_s2 + $0x150] sm:$0xff] }
 0x186   :  { %v5761_v57 = vpack.c.bf16 %v1268_v56, %v1267_v55  ;;  %v4776_v55 = vpack.c.bf16 %v1045_v5, %v1044_v53  ;;  %v1046_v56 = vld [vmem:[%s6395_s2 + $0x1e0] sm:$0xff] }
 0x188   :  { %4805 = vmatpush3.bf16.msra.mxu0 %v5761_v57 }
 0x189   :  { %4806 = vmatprep.subr.bf16.mxu0 %v5309_v54 }
 0x18b   :  { %4327 = vmatmul.mubr.f32.vlgmr.msra.gmra.mrb[4].mxu0 %v5305_v3 }
 0x18c   :  { %4808 = vmatpush3.bf16.msra.mxu0 %v5754_v47  ;;  %4337 = vmatprep.mubr.msk.f32.mxu0 %vm5310_vm2, %v5305_v3 }
 0x18d   :  { %4809 = vmatprep.subr.bf16.mxu0 %v5309_v54 }
 0x190   :  { %4811 = vmatpush3.bf16.msra.mxu0 %v5761_v57 }
 0x191   :  { %4818 = vmatprep.subr.bf16.mxu0 %v5309_v54 }
 0x213   :  { %v4200_v41 = vpop.f32.mrb[2].mxu0 }
 0x214   :  { %v532_v14 = vadd.f32 %v4200_v41, %v3755_v58  ;;  %v513_v15 = vpop.f32.mrb[3].mxu0 }
 0x215   :  { %v531_v18 = vadd.f32 %v3755_v58, %v513_v15  ;;  %v4736_v15 = vpack.c.bf16 %v1057_v40, %v1056_v12  ;;  %v1054_v12 = vld [vmem:[%s6395_s2 + $0x420] sm:$0xff]  ;;  %v1055_v40 = vld [vmem:[%s6395_s2 + $0x468] sm:$0xff] }
 0x216   :  { %v534_v20 = vmax.f32 %v532_v14, 0.0 }
 0x217   :  { %v533_v19 = vmax.f32 %v531_v18, 0.0 }
 0x219   :  { %4209 = vmatprep.mubr.msk.f32.mxu1 %vm542_vm0, %v533_v19 }
 0x21a   :  { %4210 = vmatmul.mubr.msk.f32.vlgmr.msra.gmra.mrb[4].mxu1 %vm542_vm0, %v534_v20 }
 0x21b   :  { %4711 = vmatpush3.bf16.msra.mxu1 %v4708_v62  ;;  %4220 = vmatprep.mubr.msk.f32.mxu1 %vm542_vm0, %v533_v19  ;;  %v114_v19 = vadd.f32 %v3754_v17, %v5624_v8  ;;  %v1061_v8 = vld [vmem:[%s6395_s2 + $0x1a0] sm:$0xff] }
 0x21c   :  { %4713 = vmatprep.subr.bf16.mxu1 %v4712_v22 }
 0x21d   :  { %v122_v44 = vmax.f32 %v114_v19, 0.0  ;;  %v3773_v19 = vld [vmem:[%s6399_s4 + $0x3] ss:$0 sm:$0xff] }
 0x21f   :  { %4715 = vmatpush3.bf16.msra.mxu1 %v4712_v22 }
 0x220   :  { %4717 = vmatprep.subr.bf16.mxu1 %v4716_v25 }
 0x222   :  { %4221 = vmatmul.mubr.msk.f32.vlgmr.msra.gmra.mrb[6].mxu1 %vm542_vm0, %v534_v20  ;;  %v1058_v20 = vld [vmem:[%s6395_s2 + $0xc8] sm:$0xff] }
 0x223   :  { %4719 = vmatpush3.bf16.msra.mxu1 %v4716_v25  ;;  %4231 = vmatprep.mubr.msk.f32.mxu1 %vm542_vm0, %v725_v28  ;;  %v4740_v22 = vpack.c.bf16 %v1059_v42, %v1058_v20  ;;  %v1063_v25 = vld [vmem:[%s6395_s2 + $0x230] sm:$0xff]  ;;  %v1064_v28 = vld [vmem:[%s6395_s2 + $0x278] sm:$0xff] }
 0x224   :  { %4721 = vmatprep.subr.bf16.mxu1 %v4720_v27 }
 0x227   :  { %4723 = vmatpush3.bf16.msra.mxu1 %v4720_v27  ;;  %v4748_v27 = vpack.c.bf16 %v1063_v25, %v1062_v24 }
 0x228   :  { %4726 = vmatprep.subr.msk.bf16.mxu1 %vm5741_vm1, %v4724_v30 }
 0x22a   :  { %4232 = vmatmul.mubr.msk.f32.vlgmr.msra.gmra.mrb[8].mxu1 %vm542_vm0, %v727_v29  ;;  %v1065_v29 = vld [vmem:[%s6395_s2 + $0x2c0] sm:$0xff] }
 0x230   :  { %4729 = vmatpush3.bf16.xpose.msk.msra.mxu1 %vm5741_vm1, %v4724_v30  ;;  %v4752_v30 = vpack.c.bf16 %v1065_v29, %v1064_v28 }
 0x2ed   :  { %v4211_v58 = vpop.f32.mrb[4].mxu1 }
 0x2ee   :  { %v621_v59 = vadd.f32 %v4211_v58, %v540_v32  ;;  %v615_v60 = vpop.f32.mrb[5].mxu1  ;;  %v1047_v58 = vld [vmem:[%s6395_s2 + $0x228] sm:$0xff] }
 0x2ef   :  { %v616_v61 = vadd.f32 %v615_v60, %v540_v32  ;;  %v1067_v32 = vld [vmem:[%s6395_s2 + $0x350] sm:$0xff] }
 0x2f0   :  { %v625_v63 = vmax.f32 %v621_v59, 0.0  ;;  %v4780_v59 = vpack.c.bf16 %v1047_v58, %v1046_v56  ;;  %v1048_v60 = vld [vmem:[%s6395_s2 + $0x270] sm:$0xff] }
 0x2f1   :  { %v624_v62 = vmax.f32 %v616_v61, 0.0 }
 0x2f3   :  { %v4730_v1 = vpack.c.bf16 %v625_v63, %v624_v62  ;;  %v1050_v63 = vld [vmem:[%s6395_s2 + $0x300] sm:$0xff]  ;;  %v1051_v62 = vld [vmem:[%s6395_s2 + $0x348] sm:$0xff] }
 0x2f5   :  { %v4222_v2 = vpop.f32.mrb[6].mxu1  ;;  %4732 = vmatprep.subr.msk.bf16.mxu1 %vm5741_vm1, %v4730_v1 }
 0x2f6   :  { %v711_v4 = vpop.f32.mrb[7].mxu1  ;;  %v5779_v9 = vadd.f32 %v4222_v2, %v643_v33  ;;  %v1052_v2 = vld [vmem:[%s6395_s2 + $0x390] sm:$0xff] }
 0x2f7   :  { %v5776_v6 = vadd.f32 %v711_v4, %v643_v33  ;;  %v4756_v33 = vpack.c.bf16 %v1067_v32, %v1066_v31  ;;  %v1053_v4 = vld [vmem:[%s6395_s2 + $0x3d8] sm:$0xff] }
 0x2f8   :  { %v721_v13 = vmax.f32 %v5779_v9, 0.0 }
 0x2f9   :  { %v720_v7 = vmax.f32 %v5776_v6, 0.0 }
 0x2fa   :  { %v908_v18 = vmul.f32 %v5710_v0, %v721_v13 }
 0x2fb   :  { %v907_v11 = vmul.f32 %v5710_v0, %v720_v7  ;;  %v4744_v0 = vpack.c.bf16 %v1061_v8, %v1060_v23 }
 0x2fc   :  { %v913_v21 = vadd.f32 %v5750_v34, %v908_v18 }
 0x2fd   :  { %v4233_v41 = vpop.f32.mrb[8].mxu1  ;;  %v912_v16 = vadd.f32 %v5750_v34, %v907_v11  ;;  %v1068_v34 = vld [vmem:[%s6395_s2 + $0x398] sm:$0xff]  ;;  %v4792_v11 = vpack.c.bf16 %v1053_v4, %v1052_v2 }
 0x2fe   :  { %v810_v14 = vpop.f32.mrb[9].mxu1  ;;  %v4760_v36 = vpack.c.bf16 %v1069_v35, %v1068_v34 }
 0x2ff   :  { %4238 = vmatprep.mubr.msk.f32.mxu1 %vm542_vm0, %v810_v14  ;;  %v1342_v14 = vpop.f32.mrb[4].mxu0 }
 0x300   :  { %4239 = vmatmul.mubr.msk.f32.vlgmr.msra.gmra.mrb[10].mxu1 %vm542_vm0, %v4233_v41  ;;  %v4796_v41 = vpack.c.bf16 %v1055_v40, %v1054_v12 }
 0x301   :  { %4735 = vmatpush3.bf16.xpose.msk.msra.mxu1 %vm5741_vm1, %v4730_v1  ;;  %4245 = vmatprep.mubr.msk.f32.mxu1 %vm542_vm0, %v912_v16  ;;  %v4788_v1 = vpack.c.bf16 %v1051_v62, %v1050_v63 }
 0x302   :  { %4737 = vmatprep.subr.bf16.mxu1 %v4736_v15 }
 0x308   :  { %4246 = vmatmul.mubr.msk.f32.vlgmr.msra.gmra.mrb[12].mxu1 %vm542_vm0, %v913_v21 }
 0x309   :  { %4739 = vmatpush3.bf16.msra.mxu1 %v4736_v15  ;;  %4280 = vmatprep.mubr.f32.mxu1 %v122_v44  ;;  %v4328_v15 = vpop.f32.mrb[5].mxu0 }
 0x30a   :  { %4741 = vmatprep.subr.bf16.mxu1 %v4740_v22 }
 0x30d   :  { %4743 = vmatpush3.bf16.msra.mxu1 %v4740_v22 }
 0x30e   :  { %4745 = vmatprep.subr.bf16.mxu1 %v4744_v0 }
 0x311   :  { %4747 = vmatpush3.bf16.msra.mxu1 %v4744_v0 }
 0x312   :  { %4749 = vmatprep.subr.bf16.mxu1 %v4748_v27 }
 0x315   :  { %4751 = vmatpush3.bf16.msra.mxu1 %v4748_v27 }
 0x316   :  { %4753 = vmatprep.subr.bf16.mxu1 %v4752_v30 }
 0x319   :  { %4755 = vmatpush3.bf16.msra.mxu1 %v4752_v30 }
 0x31a   :  { %4757 = vmatprep.subr.bf16.mxu1 %v4756_v33 }
 0x31d   :  { %4759 = vmatpush3.bf16.msra.mxu1 %v4756_v33 }
 0x31e   :  { %4761 = vmatprep.subr.bf16.mxu1 %v4760_v36 }
 0x321   :  { %4763 = vmatpush3.bf16.msra.mxu1 %v4760_v36 }
 0x322   :  { %4765 = vmatprep.subr.bf16.mxu1 %v4764_v39 }
 0x325   :  { %4767 = vmatpush3.bf16.msra.mxu1 %v4764_v39 }
 0x326   :  { %4769 = vmatprep.subr.bf16.mxu1 %v4768_v48 }
 0x328   :  { %4281 = vmatmul.mubr.f32.vlgmr.msra.gmra.mrb[14].mxu1 %v123_v51 }
 0x329   :  { %4771 = vmatpush3.bf16.msra.mxu1 %v4768_v48  ;;  %4315 = vmatprep.mubr.f32.mxu1 %v5404_v26  ;;  %v1049_v26 = vld [vmem:[%s6395_s2 + $0x2b8] sm:$0xff] }
 0x32a   :  { %4773 = vmatprep.subr.bf16.mxu1 %v4772_v52  ;;  %v4784_v61 = vpack.c.bf16 %v1049_v26, %v1048_v60 }
 0x32d   :  { %4775 = vmatpush3.bf16.msra.mxu1 %v4772_v52 }
 0x32e   :  { %4777 = vmatprep.subr.bf16.mxu1 %v4776_v55 }
 0x331   :  { %4779 = vmatpush3.bf16.msra.mxu1 %v4776_v55 }
 0x332   :  { %4781 = vmatprep.subr.bf16.mxu1 %v4780_v59 }
 0x335   :  { %4783 = vmatpush3.bf16.msra.mxu1 %v4780_v59 }
 0x336   :  { %4785 = vmatprep.subr.bf16.mxu1 %v4784_v61 }
 0x339   :  { %4787 = vmatpush3.bf16.msra.mxu1 %v4784_v61 }
 0x33a   :  { %4789 = vmatprep.subr.bf16.mxu1 %v4788_v1 }
 0x33d   :  { %4791 = vmatpush3.bf16.msra.mxu1 %v4788_v1 }
 0x33e   :  { %4793 = vmatprep.subr.bf16.mxu1 %v4792_v11 }
 0x341   :  { %4795 = vmatpush3.bf16.msra.mxu1 %v4792_v11 }
 0x342   :  { %4797 = vmatprep.subr.bf16.mxu1 %v4796_v41 }
 0x345   :  { %4799 = vmatpush3.bf16.msra.mxu1 %v4796_v41 }
 0x346   :  { %4812 = vmatprep.subr.bf16.mxu1 %v5309_v54 }
 0x348   :  { %4316 = vmatmul.mubr.f32.vlgmr.msra.gmra.mrb[14].mxu1 %v5502_v10 }
 0x349   :  { %4814 = vmatpush3.bf16.msra.mxu1 %v5754_v47  ;;  %4348 = vmatprep.mubr.msk.f32.mxu1 %vm5310_vm2, %v5305_v3 }
 0x34a   :  { %4815 = vmatprep.subr.bf16.mxu1 %v5309_v54 }
 0x34d   :  { %4817 = vmatpush3.bf16.msra.mxu1 %v5761_v57 }
 0x34e   :  { %4824 = vmatprep.subr.bf16.mxu1 %v5309_v54 }
 0x3d3   :  { %v5906_v16 = vpop.f32.mrb[10].mxu1 }
 0x3d4   :  { %v5908_v17 = vpop.f32.mrb[11].mxu1 }
 0x3db   :  { %v5910_v18 = vpop.f32.mrb[12].mxu1 }
 0x3dc   :  { %v5912_v10 = vpop.f32.mrb[13].mxu1 }
 0x41b   :  { %v4317_v20 = vpop.f32.mrb[14].mxu1 }
 0x41c   :  { %v1230_v42 = vadd.f32 %v4317_v20, %v3773_v19  ;;  %v1213_v21 = vpop.f32.mrb[15].mxu1 }
 0x41d   :  { %v1229_v22 = vadd.f32 %v3773_v19, %v1213_v21 }
 0x41e   :  { %1232 = vst [vmem:[#allocation2 + $0x8] sm:$0xff] %v1230_v42 }
 0x41f   :  { %1231 = vst [vmem:[#allocation2] sm:$0xff] %v1229_v22 }
 0x425   :  { %v1348_v44 = vld [vmem:[#allocation2 + $0xe] sm:$0x3]  ;;  %v1487_v61 = vld [vmem:[#allocation2 + $0xc] sm:$0x3] }
 0x426   :  { %v1346_v23 = vld [vmem:[#allocation2] sm:$0x3]  ;;  %v1349_v8 = vadd.f32 %v1348_v44, %v1342_v14  ;;  %v1485_v26 = vld [vmem:[#allocation2 + $0x2] sm:$0x3] }
 0x427   :  { %v1347_v0 = vadd.f32 %v1346_v23, %v1342_v14 }
 0x428   :  { %5038 = vtanh.f32 %v1349_v8  ;;  %v3775_v27 = vmul.f32 -1.442695, %v1349_v8 }
 0x429   :  { %5040 = vtanh.f32 %v1347_v0  ;;  %v3774_v28 = vmul.f32 -1.442695, %v1347_v0 }
 0x42a   :  { %5042 = vpow2.f32 %v3775_v27 }
 0x42b   :  { %5044 = vpow2.f32 %v3774_v28 }
 0x432   :  { %v5039_v24 = vpop.eup %5038 }
 0x433   :  { %v5041_v25 = vpop.eup %5040  ;;  %1377 = vrot.lane.b32.xlu0 %v5039_v24, %s5311_s21 }
 0x434   :  { %1366 = vrot.lane.b32.xlu1 %v5041_v25, %s5311_s21  ;;  %v5043_v29 = vpop.eup %5042 }
 0x435   :  { %v5045_v30 = vpop.eup %5044  ;;  %v1360_v31 = vadd.f32 1.0, %v5043_v29 }
 0x436   :  { %v1353_v32 = vadd.f32 1.0, %v5045_v30 }
 0x437   :  { %5046 = vrcp.f32 %v1360_v31 }
 0x438   :  { %5048 = vrcp.f32 %v1353_v32 }
 0x441   :  { %v5047_v33 = vpop.eup %5046 }
 0x442   :  { %v5049_v35 = vpop.eup %5048  ;;  %v1375_v39 = vmul.f32 0.0, %v5047_v33 }
 0x443   :  { %v1364_v45 = vmul.f32 0.0, %v5049_v35 }
 0x4a5   :  { %v1378_v34 = vpop.permute.xlu0 %1377 }
 0x4a6   :  { %v1380_v36 = vmul.f32 %v5047_v33, %v1378_v34  ;;  %v1367_v37 = vpop.permute.xlu1 %1366 }
 0x4a7   :  { %v1369_v38 = vmul.f32 %v5049_v35, %v1367_v37 }
 0x4a8   :  { %1382 = vrot.lane.b32.xlu0 %v1380_v36, %s5312_s22 }
 0x4a9   :  { %1371 = vrot.lane.b32.xlu1 %v1369_v38, %s5312_s22  ;;  %v1621_v38 = vld [vmem:[#allocation2 + $0x4] sm:$0x3] }
 0x51a   :  { %v1383_v43 = vpop.permute.xlu0 %1382 }
 0x51b   :  { %v1385_v46 = vadd.f32 %v1383_v43, %v1375_v39  ;;  %v1372_v48 = vpop.permute.xlu1 %1371  ;;  %v1623_v39 = vld [vmem:[#allocation2 + $0xa] sm:$0x3] }
 0x51c   :  { %v1374_v49 = vadd.f32 %v1372_v48, %v1364_v45 }
 0x51d   :  { %5050 = vtanh.f32 %v1385_v46 }
 0x51e   :  { %5052 = vtanh.f32 %v1374_v49 }
 0x527   :  { %v5051_v50 = vpop.eup %5050 }
 0x528   :  { %v5053_v51 = vpop.eup %5052  ;;  %1394 = vrot.lane.b32.xlu0 %v5051_v50, %s5312_s22 }
 0x529   :  { %1388 = vrot.lane.b32.xlu1 %v5053_v51, %s5312_s22 }
 0x59a   :  { %v1395_v52 = vpop.permute.xlu0 %1394 }
 0x59b   :  { %v1397_v53 = vmul.f32 %v5047_v33, %v1395_v52  ;;  %v1389_v5 = vpop.permute.xlu1 %1388 }
 0x59c   :  { %v1391_v55 = vmul.f32 %v5049_v35, %v1389_v5 }
 0x59d   :  { %1405 = vrot.lane.b32.xlu0 %v1397_v53, %s5313_s23 }
 0x59e   :  { %1399 = vrot.lane.b32.xlu1 %v1391_v55, %s5306_s10 }
 0x60f   :  { %v1406_v56 = vpop.permute.xlu0 %1405 }
 0x610   :  { %1409 = vst.msk [vmem:[#allocation3 + $0xe] sm:$0x3] %vm1408_vm3, %v1406_v56  ;;  %v1400_v58 = vpop.permute.xlu1 %1399 }
 0x611   :  { %1403 = vst.msk [vmem:[#allocation3] sm:$0x3] %vm1402_vm4, %v1400_v58  ;;  %v1411_v59 = vsel %vm1410_vm5, %v1400_v58, %v1406_v56 }
 0x612   :  { %4338 = vmatmul.mubr.msk.f32.vlgmr.msra.gmra.mrb[6].mxu0 %vm542_vm0, %v1411_v59 }
 0x613   :  { %4820 = vmatpush3.bf16.msra.mxu0 %v5754_v47  ;;  %4359 = vmatprep.mubr.msk.f32.mxu0 %vm5310_vm2, %v5305_v3 }
 0x614   :  { %4821 = vmatprep.subr.bf16.mxu0 %v5309_v54 }
 0x617   :  { %4823 = vmatpush3.bf16.msra.mxu0 %v5761_v57 }
 0x618   :  { %4830 = vmatprep.subr.bf16.mxu0 %v5309_v54 }
 0x6e5   :  { %v1481_v60 = vpop.f32.mrb[6].mxu0 }
 0x6e6   :  { %v1486_v63 = vadd.f32 %v1485_v26, %v1481_v60  ;;  %v1488_v62 = vadd.f32 %v1487_v61, %v1481_v60  ;;  %v4339_v1 = vpop.f32.mrb[7].mxu0 }
 0x6e8   :  { %5054 = vtanh.f32 %v1486_v63  ;;  %v3777_v11 = vmul.f32 -1.442695, %v1486_v63  ;;  %v3778_v12 = vmul.f32 -1.442695, %v1488_v62 }
 0x6e9   :  { %5056 = vtanh.f32 %v1488_v62 }
 0x6ea   :  { %5058 = vpow2.f32 %v3777_v11 }
 0x6eb   :  { %5060 = vpow2.f32 %v3778_v12 }
 0x6f2   :  { %v5055_v2 = vpop.eup %5054 }
 0x6f3   :  { %v5057_v4 = vpop.eup %5056  ;;  %1505 = vrot.lane.b32.xlu1 %v5055_v2, %s5311_s21 }
 0x6f4   :  { %1516 = vrot.lane.b32.xlu0 %v5057_v4, %s5311_s21  ;;  %v5059_v40 = vpop.eup %5058 }
 0x6f5   :  { %v5061_v41 = vpop.eup %5060  ;;  %v1492_v14 = vadd.f32 1.0, %v5059_v40 }
 0x6f6   :  { %v1499_v15 = vadd.f32 1.0, %v5061_v41 }
 0x6f7   :  { %5062 = vrcp.f32 %v1492_v14 }
 0x6f8   :  { %5064 = vrcp.f32 %v1499_v15 }
 0x701   :  { %v5063_v19 = vpop.eup %5062 }
 0x702   :  { %v5065_v42 = vpop.eup %5064  ;;  %v1503_v23 = vmul.f32 %v5063_v19, %v1374_v49 }
 0x703   :  { %v1514_v8 = vmul.f32 %v5065_v42, %v1385_v46 }
 0x765   :  { %v1506_v20 = vpop.permute.xlu1 %1505 }
 0x766   :  { %v1517_v21 = vpop.permute.xlu0 %1516  ;;  %v1508_v22 = vmul.f32 %v5063_v19, %v1506_v20 }
 0x767   :  { %v1519_v44 = vmul.f32 %v5065_v42, %v1517_v21 }
 0x768   :  { %1510 = vrot.lane.b32.xlu1 %v1508_v22, %s5312_s22 }
 0x769   :  { %1521 = vrot.lane.b32.xlu0 %v1519_v44, %s5312_s22  ;;  %v1757_v44 = vld [vmem:[#allocation2 + $0x6] sm:$0x3] }
 0x7da   :  { %v1511_v0 = vpop.permute.xlu1 %1510 }
 0x7db   :  { %v1522_v24 = vpop.permute.xlu0 %1521  ;;  %v1513_v25 = vadd.f32 %v1511_v0, %v1503_v23  ;;  %v1759_v23 = vld [vmem:[#allocation2 + $0x8] sm:$0x3] }
 0x7dc   :  { %v1524_v27 = vadd.f32 %v1522_v24, %v1514_v8 }
 0x7dd   :  { %5066 = vtanh.f32 %v1513_v25 }
 0x7de   :  { %5068 = vtanh.f32 %v1524_v27 }
 0x7e7   :  { %v5067_v28 = vpop.eup %5066 }
 0x7e8   :  { %v5069_v29 = vpop.eup %5068  ;;  %1527 = vrot.lane.b32.xlu1 %v5067_v28, %s5312_s22 }
 0x7e9   :  { %1533 = vrot.lane.b32.xlu0 %v5069_v29, %s5312_s22 }
 0x85a   :  { %v1528_v30 = vpop.permute.xlu1 %1527 }
 0x85b   :  { %v1534_v31 = vpop.permute.xlu0 %1533  ;;  %v1530_v32 = vmul.f32 %v5063_v19, %v1528_v30 }
 0x85c   :  { %v1536_v33 = vmul.f32 %v5065_v42, %v1534_v31 }
 0x85d   :  { %1538 = vrot.lane.b32.xlu1 %v1530_v32, %s5306_s10 }
 0x85e   :  { %1543 = vrot.lane.b32.xlu0 %v1536_v33, %s5313_s23 }
 0x8cf   :  { %v1539_v34 = vpop.permute.xlu1 %1538 }
 0x8d0   :  { %v1544_v35 = vpop.permute.xlu0 %1543  ;;  %1541 = vst.msk [vmem:[#allocation3 + $0x2] sm:$0x3] %vm1402_vm4, %v1539_v34 }
 0x8d1   :  { %1546 = vst.msk [vmem:[#allocation3 + $0xc] sm:$0x3] %vm1408_vm3, %v1544_v35  ;;  %v1547_v36 = vsel %vm1410_vm5, %v1539_v34, %v1544_v35 }
 0x8d2   :  { %4349 = vmatmul.mubr.msk.f32.vlgmr.msra.gmra.mrb[16].mxu1 %vm542_vm0, %v1547_v36 }
 0x8d3   :  { %4826 = vmatpush3.bf16.msra.mxu1 %v5754_v47  ;;  %4370 = vmatprep.mubr.msk.f32.mxu1 %vm5310_vm2, %v5305_v3 }
 0x8d4   :  { %4827 = vmatprep.subr.bf16.mxu1 %v5309_v54 }
 0x8d7   :  { %4829 = vmatpush3.bf16.msra.mxu1 %v5761_v57 }
 0x8d8   :  { %4836 = vmatprep.subr.bf16.mxu1 %v5309_v54 }
 0x9a5   :  { %v1617_v37 = vpop.f32.mrb[16].mxu1 }
 0x9a6   :  { %v1622_v43 = vadd.f32 %v1621_v38, %v1617_v37  ;;  %v1624_v45 = vadd.f32 %v1623_v39, %v1617_v37  ;;  %v4350_v46 = vpop.f32.mrb[17].mxu1 }
 0x9a8   :  { %5070 = vtanh.f32 %v1622_v43  ;;  %v3780_v50 = vmul.f32 -1.442695, %v1622_v43  ;;  %v3781_v51 = vmul.f32 -1.442695, %v1624_v45 }
 0x9a9   :  { %5072 = vtanh.f32 %v1624_v45 }
 0x9aa   :  { %5074 = vpow2.f32 %v3780_v50 }
 0x9ab   :  { %5076 = vpow2.f32 %v3781_v51 }
 0x9b2   :  { %v5071_v48 = vpop.eup %5070 }
 0x9b3   :  { %v5073_v49 = vpop.eup %5072  ;;  %1641 = vrot.lane.b32.xlu1 %v5071_v48, %s5311_s21 }
 0x9b4   :  { %1652 = vrot.lane.b32.xlu0 %v5073_v49, %s5311_s21  ;;  %v5075_v52 = vpop.eup %5074 }
 0x9b5   :  { %v5077_v53 = vpop.eup %5076  ;;  %v1628_v5 = vadd.f32 1.0, %v5075_v52 }
 0x9b6   :  { %v1635_v55 = vadd.f32 1.0, %v5077_v53 }
 0x9b7   :  { %5078 = vrcp.f32 %v1628_v5 }
 0x9b8   :  { %5080 = vrcp.f32 %v1635_v55 }
 0x9c1   :  { %v5079_v56 = vpop.eup %5078 }
 0x9c2   :  { %v5081_v59 = vpop.eup %5080  ;;  %v1639_v63 = vmul.f32 %v5079_v56, %v1513_v25 }
 0x9c3   :  { %v1650_v62 = vmul.f32 %v5081_v59, %v1524_v27 }
 0xa25   :  { %v1642_v58 = vpop.permute.xlu1 %1641 }
 0xa26   :  { %v1653_v60 = vpop.permute.xlu0 %1652  ;;  %v1644_v26 = vmul.f32 %v5079_v56, %v1642_v58 }
 0xa27   :  { %v1655_v61 = vmul.f32 %v5081_v59, %v1653_v60 }
 0xa28   :  { %1646 = vrot.lane.b32.xlu1 %v1644_v26, %s5312_s22 }
 0xa29   :  { %1657 = vrot.lane.b32.xlu0 %v1655_v61, %s5312_s22  ;;  %v1893_v61 = vld [vmem:[#allocation2 + $0x8] sm:$0x3] }
 0xa9a   :  { %v1647_v1 = vpop.permute.xlu1 %1646 }
 0xa9b   :  { %v1658_v2 = vpop.permute.xlu0 %1657  ;;  %v1649_v4 = vadd.f32 %v1647_v1, %v1639_v63  ;;  %v1895_v63 = vld [vmem:[#allocation2 + $0x6] sm:$0x3] }
 0xa9c   :  { %v1660_v11 = vadd.f32 %v1658_v2, %v1650_v62 }
 0xa9d   :  { %5082 = vtanh.f32 %v1649_v4 }
 0xa9e   :  { %5084 = vtanh.f32 %v1660_v11 }
 0xaa7   :  { %v5083_v12 = vpop.eup %5082 }
 0xaa8   :  { %v5085_v40 = vpop.eup %5084  ;;  %1663 = vrot.lane.b32.xlu1 %v5083_v12, %s5312_s22 }
 0xaa9   :  { %1669 = vrot.lane.b32.xlu0 %v5085_v40, %s5312_s22 }
 0xb1a   :  { %v1664_v41 = vpop.permute.xlu1 %1663 }
 0xb1b   :  { %v1670_v14 = vpop.permute.xlu0 %1669  ;;  %v1666_v15 = vmul.f32 %v5079_v56, %v1664_v41 }
 0xb1c   :  { %v1672_v19 = vmul.f32 %v5081_v59, %v1670_v14 }
 0xb1d   :  { %1674 = vrot.lane.b32.xlu1 %v1666_v15, %s5306_s10 }
 0xb1e   :  { %1679 = vrot.lane.b32.xlu0 %v1672_v19, %s5313_s23 }
 0xb8f   :  { %v1675_v20 = vpop.permute.xlu1 %1674 }
 0xb90   :  { %v1680_v42 = vpop.permute.xlu0 %1679  ;;  %1677 = vst.msk [vmem:[#allocation3 + $0x4] sm:$0x3] %vm1402_vm4, %v1675_v20 }
 0xb91   :  { %1682 = vst.msk [vmem:[#allocation3 + $0xa] sm:$0x3] %vm1408_vm3, %v1680_v42  ;;  %v1683_v21 = vsel %vm1410_vm5, %v1675_v20, %v1680_v42 }
 0xb92   :  { %4360 = vmatmul.mubr.msk.f32.vlgmr.msra.gmra.mrb[8].mxu0 %vm542_vm0, %v1683_v21 }
 0xb93   :  { %4832 = vmatpush3.bf16.msra.mxu0 %v5754_v47  ;;  %4381 = vmatprep.mubr.msk.f32.mxu0 %vm5310_vm2, %v5305_v3 }
 0xb94   :  { %4833 = vmatprep.subr.bf16.mxu0 %v5309_v54 }
 0xb97   :  { %4835 = vmatpush3.bf16.msra.mxu0 %v5761_v57 }
 0xb98   :  { %4842 = vmatprep.subr.bf16.mxu0 %v5309_v54 }
 0xc65   :  { %v1753_v22 = vpop.f32.mrb[8].mxu0 }
 0xc66   :  { %v1758_v8 = vadd.f32 %v1757_v44, %v1753_v22  ;;  %v1760_v0 = vadd.f32 %v1759_v23, %v1753_v22  ;;  %v4361_v24 = vpop.f32.mrb[9].mxu0 }
 0xc68   :  { %5086 = vtanh.f32 %v1758_v8  ;;  %v3783_v28 = vmul.f32 -1.442695, %v1758_v8  ;;  %v3784_v29 = vmul.f32 -1.442695, %v1760_v0 }
 0xc69   :  { %5088 = vtanh.f32 %v1760_v0 }
 0xc6a   :  { %5090 = vpow2.f32 %v3783_v28 }
 0xc6b   :  { %5092 = vpow2.f32 %v3784_v29 }
 0xc72   :  { %v5087_v25 = vpop.eup %5086 }
 0xc73   :  { %v5089_v27 = vpop.eup %5088  ;;  %1777 = vrot.lane.b32.xlu1 %v5087_v25, %s5311_s21 }
 0xc74   :  { %1788 = vrot.lane.b32.xlu0 %v5089_v27, %s5311_s21  ;;  %v5091_v30 = vpop.eup %5090 }
 0xc75   :  { %v5093_v31 = vpop.eup %5092  ;;  %v1764_v32 = vadd.f32 1.0, %v5091_v30 }
 0xc76   :  { %v1771_v33 = vadd.f32 1.0, %v5093_v31 }
 0xc77   :  { %5094 = vrcp.f32 %v1764_v32 }
 0xc78   :  { %5096 = vrcp.f32 %v1771_v33 }
 0xc81   :  { %v5095_v34 = vpop.eup %5094 }
 0xc82   :  { %v5097_v36 = vpop.eup %5096  ;;  %v1775_v43 = vmul.f32 %v5095_v34, %v1649_v4 }
 0xc83   :  { %v1786_v45 = vmul.f32 %v5097_v36, %v1660_v11 }
 0xce5   :  { %v1778_v35 = vpop.permute.xlu1 %1777 }
 0xce6   :  { %v1789_v37 = vpop.permute.xlu0 %1788  ;;  %v1780_v38 = vmul.f32 %v5095_v34, %v1778_v35 }
 0xce7   :  { %v1791_v39 = vmul.f32 %v5097_v36, %v1789_v37 }
 0xce8   :  { %1782 = vrot.lane.b32.xlu1 %v1780_v38, %s5312_s22 }
 0xce9   :  { %1793 = vrot.lane.b32.xlu0 %v1791_v39, %s5312_s22  ;;  %v2029_v39 = vld [vmem:[#allocation2 + $0xa] sm:$0x3] }
 0xd5a   :  { %v1783_v46 = vpop.permute.xlu1 %1782 }
 0xd5b   :  { %v1794_v48 = vpop.permute.xlu0 %1793  ;;  %v1785_v49 = vadd.f32 %v1783_v46, %v1775_v43  ;;  %v2031_v43 = vld [vmem:[#allocation2 + $0x4] sm:$0x3] }
 0xd5c   :  { %v1796_v50 = vadd.f32 %v1794_v48, %v1786_v45 }
 0xd5d   :  { %5098 = vtanh.f32 %v1785_v49 }
 0xd5e   :  { %5100 = vtanh.f32 %v1796_v50 }
 0xd67   :  { %v5099_v51 = vpop.eup %5098 }
 0xd68   :  { %v5101_v52 = vpop.eup %5100  ;;  %1799 = vrot.lane.b32.xlu1 %v5099_v51, %s5312_s22 }
 0xd69   :  { %1805 = vrot.lane.b32.xlu0 %v5101_v52, %s5312_s22 }
 0xdda   :  { %v1800_v53 = vpop.permute.xlu1 %1799 }
 0xddb   :  { %v1806_v5 = vpop.permute.xlu0 %1805  ;;  %v1802_v55 = vmul.f32 %v5095_v34, %v1800_v53 }
 0xddc   :  { %v1808_v56 = vmul.f32 %v5097_v36, %v1806_v5 }
 0xddd   :  { %1810 = vrot.lane.b32.xlu1 %v1802_v55, %s5306_s10 }
 0xdde   :  { %1815 = vrot.lane.b32.xlu0 %v1808_v56, %s5313_s23 }
 0xe4f   :  { %v1811_v58 = vpop.permute.xlu1 %1810 }
 0xe50   :  { %v1816_v59 = vpop.permute.xlu0 %1815  ;;  %1813 = vst.msk [vmem:[#allocation3 + $0x6] sm:$0x3] %vm1402_vm4, %v1811_v58 }
 0xe51   :  { %1818 = vst.msk [vmem:[#allocation3 + $0x8] sm:$0x3] %vm1408_vm3, %v1816_v59  ;;  %v1819_v60 = vsel %vm1410_vm5, %v1811_v58, %v1816_v59 }
 0xe52   :  { %4371 = vmatmul.mubr.msk.f32.vlgmr.msra.gmra.mrb[18].mxu1 %vm542_vm0, %v1819_v60 }
 0xe53   :  { %4838 = vmatpush3.bf16.msra.mxu1 %v5754_v47  ;;  %4392 = vmatprep.mubr.msk.f32.mxu1 %vm5310_vm2, %v5305_v3 }
 0xe54   :  { %4839 = vmatprep.subr.bf16.mxu1 %v5309_v54 }
 0xe57   :  { %4841 = vmatpush3.bf16.msra.mxu1 %v5761_v57 }
 0xf25   :  { %v1889_v26 = vpop.f32.mrb[18].mxu1 }
 0xf26   :  { %v1894_v62 = vadd.f32 %v1893_v61, %v1889_v26  ;;  %v1896_v1 = vadd.f32 %v1895_v63, %v1889_v26  ;;  %v4372_v2 = vpop.f32.mrb[19].mxu1 }
 0xf28   :  { %5102 = vtanh.f32 %v1894_v62  ;;  %v3786_v12 = vmul.f32 -1.442695, %v1894_v62  ;;  %v3787_v40 = vmul.f32 -1.442695, %v1896_v1 }
 0xf29   :  { %5104 = vtanh.f32 %v1896_v1 }
 0xf2a   :  { %5106 = vpow2.f32 %v3786_v12 }
 0xf2b   :  { %5108 = vpow2.f32 %v3787_v40 }
 0xf32   :  { %v5103_v4 = vpop.eup %5102 }
 0xf33   :  { %v5105_v11 = vpop.eup %5104  ;;  %1913 = vrot.lane.b32.xlu1 %v5103_v4, %s5311_s21 }
 0xf34   :  { %1924 = vrot.lane.b32.xlu0 %v5105_v11, %s5311_s21  ;;  %v5107_v41 = vpop.eup %5106 }
 0xf35   :  { %v5109_v14 = vpop.eup %5108  ;;  %v1900_v15 = vadd.f32 1.0, %v5107_v41 }
 0xf36   :  { %v1907_v19 = vadd.f32 1.0, %v5109_v14 }
 0xf37   :  { %5110 = vrcp.f32 %v1900_v15 }
 0xf38   :  { %5112 = vrcp.f32 %v1907_v19 }
 0xf41   :  { %v5111_v20 = vpop.eup %5110 }
 0xf42   :  { %v5113_v21 = vpop.eup %5112  ;;  %v1911_v8 = vmul.f32 %v5111_v20, %v1785_v49 }
 0xf43   :  { %v1922_v0 = vmul.f32 %v5113_v21, %v1796_v50 }
 0xfa5   :  { %v1914_v42 = vpop.permute.xlu1 %1913 }
 0xfa6   :  { %v1925_v22 = vpop.permute.xlu0 %1924  ;;  %v1916_v44 = vmul.f32 %v5111_v20, %v1914_v42 }
 0xfa7   :  { %v1927_v23 = vmul.f32 %v5113_v21, %v1925_v22  ;;  %v2165_v22 = vld [vmem:[#allocation2 + $0xc] sm:$0x3] }
 0xfa8   :  { %1918 = vrot.lane.b32.xlu1 %v1916_v44, %s5312_s22  ;;  %v2167_v44 = vld [vmem:[#allocation2 + $0x2] sm:$0x3] }
 0xfa9   :  { %1929 = vrot.lane.b32.xlu0 %v1927_v23, %s5312_s22 }
0x101a   :  { %v1919_v24 = vpop.permute.xlu1 %1918 }
0x101b   :  { %v1930_v25 = vpop.permute.xlu0 %1929  ;;  %v1921_v27 = vadd.f32 %v1919_v24, %v1911_v8 }
0x101c   :  { %v1932_v28 = vadd.f32 %v1930_v25, %v1922_v0 }
0x101d   :  { %5114 = vtanh.f32 %v1921_v27 }
0x101e   :  { %5116 = vtanh.f32 %v1932_v28 }
0x1027   :  { %v5115_v29 = vpop.eup %5114 }
0x1028   :  { %v5117_v30 = vpop.eup %5116  ;;  %1935 = vrot.lane.b32.xlu1 %v5115_v29, %s5312_s22 }
0x1029   :  { %1941 = vrot.lane.b32.xlu0 %v5117_v30, %s5312_s22 }
0x109a   :  { %v1936_v31 = vpop.permute.xlu1 %1935 }
0x109b   :  { %v1942_v32 = vpop.permute.xlu0 %1941  ;;  %v1938_v33 = vmul.f32 %v5111_v20, %v1936_v31 }
0x109c   :  { %v1944_v34 = vmul.f32 %v5113_v21, %v1942_v32 }
0x109d   :  { %1946 = vrot.lane.b32.xlu1 %v1938_v33, %s5306_s10 }
0x109e   :  { %1951 = vrot.lane.b32.xlu0 %v1944_v34, %s5313_s23 }
0x110f   :  { %v1947_v35 = vpop.permute.xlu1 %1946 }
0x1110   :  { %v1952_v36 = vpop.permute.xlu0 %1951  ;;  %1949 = vst.msk [vmem:[#allocation3 + $0x8] sm:$0x3] %vm1402_vm4, %v1947_v35 }
0x1111   :  { %1954 = vst.msk [vmem:[#allocation3 + $0x6] sm:$0x3] %vm1408_vm3, %v1952_v36  ;;  %v1955_v37 = vsel %vm1410_vm5, %v1947_v35, %v1952_v36 }
0x1112   :  { %4382 = vmatmul.mubr.msk.f32.vlgmr.msra.gmra.mrb[10].mxu0 %vm542_vm0, %v1955_v37 }
0x1113   :  { %4844 = vmatpush3.bf16.msra.mxu0 %v5754_v47  ;;  %4403 = vmatprep.mubr.msk.f32.mxu0 %vm5310_vm2, %v5305_v3 }
0x1114   :  { %4845 = vmatprep.subr.bf16.mxu0 %v5309_v54 }
0x1117   :  { %4847 = vmatpush3.bf16.msra.mxu0 %v5761_v57 }
0x1118   :  { %4888 = vmatprep.subr.bf16.mxu0 %v5309_v54 }
0x11e5   :  { %v2025_v38 = vpop.f32.mrb[10].mxu0 }
0x11e6   :  { %v2030_v45 = vadd.f32 %v2029_v39, %v2025_v38  ;;  %v2032_v46 = vadd.f32 %v2031_v43, %v2025_v38  ;;  %v4383_v48 = vpop.f32.mrb[11].mxu0 }
0x11e8   :  { %5118 = vtanh.f32 %v2030_v45  ;;  %v3789_v47 = vmul.f32 -1.442695, %v2030_v45  ;;  %v3790_v51 = vmul.f32 -1.442695, %v2032_v46 }
0x11e9   :  { %5120 = vtanh.f32 %v2032_v46 }
0x11ea   :  { %5122 = vpow2.f32 %v3789_v47 }
0x11eb   :  { %5124 = vpow2.f32 %v3790_v51 }
0x11f2   :  { %v5119_v49 = vpop.eup %5118 }
0x11f3   :  { %v5121_v50 = vpop.eup %5120  ;;  %2049 = vrot.lane.b32.xlu1 %v5119_v49, %s5311_s21 }
0x11f4   :  { %2060 = vrot.lane.b32.xlu0 %v5121_v50, %s5311_s21  ;;  %v5123_v57 = vpop.eup %5122 }
0x11f5   :  { %v5125_v52 = vpop.eup %5124  ;;  %v2036_v53 = vadd.f32 1.0, %v5123_v57 }
0x11f6   :  { %v2043_v5 = vadd.f32 1.0, %v5125_v52 }
0x11f7   :  { %5126 = vrcp.f32 %v2036_v53 }
0x11f8   :  { %5128 = vrcp.f32 %v2043_v5 }
0x1201   :  { %v5127_v55 = vpop.eup %5126 }
0x1202   :  { %v5129_v58 = vpop.eup %5128  ;;  %v2047_v61 = vmul.f32 %v5127_v55, %v1921_v27 }
0x1203   :  { %v2058_v63 = vmul.f32 %v5129_v58, %v1932_v28 }
0x1265   :  { %v2050_v56 = vpop.permute.xlu1 %2049 }
0x1266   :  { %v2061_v59 = vpop.permute.xlu0 %2060  ;;  %v2052_v60 = vmul.f32 %v5127_v55, %v2050_v56 }
0x1267   :  { %v2063_v26 = vmul.f32 %v5129_v58, %v2061_v59  ;;  %v2301_v59 = vld [vmem:[#allocation2 + $0xe] sm:$0x3] }
0x1268   :  { %2054 = vrot.lane.b32.xlu1 %v2052_v60, %s5312_s22  ;;  %v2303_v60 = vld [vmem:[#allocation2] sm:$0x3] }
0x1269   :  { %2065 = vrot.lane.b32.xlu0 %v2063_v26, %s5312_s22 }
0x12da   :  { %v2055_v62 = vpop.permute.xlu1 %2054 }
0x12db   :  { %v2066_v1 = vpop.permute.xlu0 %2065  ;;  %v2057_v2 = vadd.f32 %v2055_v62, %v2047_v61 }
0x12dc   :  { %v2068_v4 = vadd.f32 %v2066_v1, %v2058_v63 }
0x12dd   :  { %5130 = vtanh.f32 %v2057_v2 }
0x12de   :  { %5132 = vtanh.f32 %v2068_v4 }
0x12e7   :  { %v5131_v11 = vpop.eup %5130 }
0x12e8   :  { %v5133_v12 = vpop.eup %5132  ;;  %2071 = vrot.lane.b32.xlu1 %v5131_v11, %s5312_s22 }
0x12e9   :  { %2077 = vrot.lane.b32.xlu0 %v5133_v12, %s5312_s22 }
0x135a   :  { %v2072_v40 = vpop.permute.xlu1 %2071 }
0x135b   :  { %v2078_v41 = vpop.permute.xlu0 %2077  ;;  %v2074_v14 = vmul.f32 %v5127_v55, %v2072_v40 }
0x135c   :  { %v2080_v15 = vmul.f32 %v5129_v58, %v2078_v41 }
0x135d   :  { %2082 = vrot.lane.b32.xlu1 %v2074_v14, %s5306_s10 }
0x135e   :  { %2087 = vrot.lane.b32.xlu0 %v2080_v15, %s5313_s23 }
0x13cf   :  { %v2083_v19 = vpop.permute.xlu1 %2082 }
0x13d0   :  { %v2088_v20 = vpop.permute.xlu0 %2087  ;;  %2085 = vst.msk [vmem:[#allocation3 + $0xa] sm:$0x3] %vm1402_vm4, %v2083_v19 }
0x13d1   :  { %2090 = vst.msk [vmem:[#allocation3 + $0x4] sm:$0x3] %vm1408_vm3, %v2088_v20  ;;  %v2091_v42 = vsel %vm1410_vm5, %v2083_v19, %v2088_v20 }
0x13d2   :  { %4393 = vmatmul.mubr.msk.f32.vlgmr.msra.gmra.mrb[20].mxu1 %vm542_vm0, %v2091_v42 }
0x14a5   :  { %v2161_v21 = vpop.f32.mrb[20].mxu1 }
0x14a6   :  { %v2166_v23 = vadd.f32 %v2165_v22, %v2161_v21  ;;  %v2168_v8 = vadd.f32 %v2167_v44, %v2161_v21  ;;  %v4394_v0 = vpop.f32.mrb[21].mxu1 }
0x14a8   :  { %5134 = vtanh.f32 %v2166_v23  ;;  %v3792_v27 = vmul.f32 -1.442695, %v2166_v23  ;;  %v3793_v28 = vmul.f32 -1.442695, %v2168_v8 }
0x14a9   :  { %5136 = vtanh.f32 %v2168_v8 }
0x14aa   :  { %5138 = vpow2.f32 %v3792_v27  ;;  %v2384_v27 = vld [vmem:[%s6397_s3 + $0x38] sm:$0xff] }
0x14ab   :  { %5140 = vpow2.f32 %v3793_v28  ;;  %v2381_v28 = vld [vmem:[%s6397_s3 + $0x10] sm:$0xff] }
0x14b2   :  { %v5135_v24 = vpop.eup %5134 }
0x14b3   :  { %v5137_v25 = vpop.eup %5136  ;;  %2185 = vrot.lane.b32.xlu1 %v5135_v24, %s5311_s21 }
0x14b4   :  { %2196 = vrot.lane.b32.xlu0 %v5137_v25, %s5311_s21  ;;  %v5139_v29 = vpop.eup %5138  ;;  %v2383_v25 = vld [vmem:[%s6397_s3 + $0x30] sm:$0xff] }
0x14b5   :  { %v5141_v30 = vpop.eup %5140  ;;  %v2172_v31 = vadd.f32 1.0, %v5139_v29  ;;  %v2382_v29 = vld [vmem:[%s6397_s3 + $0x18] sm:$0xff] }
0x14b6   :  { %v2179_v32 = vadd.f32 1.0, %v5141_v30 }
0x14b7   :  { %5142 = vrcp.f32 %v2172_v31 }
0x14b8   :  { %5144 = vrcp.f32 %v2179_v32  ;;  %v5000_v32 = vpack.i.bf16 %v2384_v27, %v2383_v25  ;;  %v2366_v27 = vld [vmem:[%s6395_s2 + $0x118] sm:$0xff] }
0x14c1   :  { %v5143_v33 = vpop.eup %5142 }
0x14c2   :  { %v5145_v35 = vpop.eup %5144  ;;  %v2183_v39 = vmul.f32 %v5143_v33, %v2057_v2 }
0x14c3   :  { %v2194_v43 = vmul.f32 %v5145_v35, %v2068_v4 }
0x1525   :  { %v2186_v34 = vpop.permute.xlu1 %2185 }
0x1526   :  { %v2197_v36 = vpop.permute.xlu0 %2196  ;;  %v2188_v37 = vmul.f32 %v5143_v33, %v2186_v34 }
0x1527   :  { %v2199_v38 = vmul.f32 %v5145_v35, %v2197_v36  ;;  %v2388_v36 = vld [vmem:[%s6397_s3 + $0x78] sm:$0xff] }
0x1528   :  { %2190 = vrot.lane.b32.xlu1 %v2188_v37, %s5312_s22 }
0x1529   :  { %2201 = vrot.lane.b32.xlu0 %v2199_v38, %s5312_s22 }
0x159a   :  { %v2191_v45 = vpop.permute.xlu1 %2190 }
0x159b   :  { %v2202_v46 = vpop.permute.xlu0 %2201  ;;  %v2193_v48 = vadd.f32 %v2191_v45, %v2183_v39  ;;  %v2385_v39 = vld [vmem:[%s6397_s3 + $0x50] sm:$0xff] }
0x159c   :  { %v2204_v49 = vadd.f32 %v2202_v46, %v2194_v43  ;;  %v2386_v43 = vld [vmem:[%s6397_s3 + $0x58] sm:$0xff] }
0x159d   :  { %5146 = vtanh.f32 %v2193_v48 }
0x159e   :  { %5148 = vtanh.f32 %v2204_v49 }
0x15a7   :  { %v5147_v50 = vpop.eup %5146 }
0x15a8   :  { %v5149_v47 = vpop.eup %5148  ;;  %2207 = vrot.lane.b32.xlu1 %v5147_v50, %s5312_s22 }
0x15a9   :  { %2213 = vrot.lane.b32.xlu0 %v5149_v47, %s5312_s22  ;;  %v2588_v47 = vld [vmem:[%s6397_s3 + $0x8] sm:$0xff] }
0x161a   :  { %v2208_v51 = vpop.permute.xlu1 %2207 }
0x161b   :  { %v2214_v57 = vpop.permute.xlu0 %2213  ;;  %v2210_v52 = vmul.f32 %v5143_v33, %v2208_v51  ;;  %v4995_v33 = vpack.i.bf16 %v2382_v29, %v2381_v28 }
0x161c   :  { %v2216_v53 = vmul.f32 %v5145_v35, %v2214_v57  ;;  %v2387_v35 = vld [vmem:[%s6397_s3 + $0x70] sm:$0xff] }
0x161d   :  { %2218 = vrot.lane.b32.xlu1 %v2210_v52, %s5306_s10  ;;  %v5010_v46 = vpack.i.bf16 %v2388_v36, %v2387_v35 }
0x161e   :  { %2223 = vrot.lane.b32.xlu0 %v2216_v53, %s5313_s23 }
0x168f   :  { %v2219_v5 = vpop.permute.xlu1 %2218 }
0x1690   :  { %v2224_v55 = vpop.permute.xlu0 %2223  ;;  %2221 = vst.msk [vmem:[#allocation3 + $0xc] sm:$0x3] %vm1402_vm4, %v2219_v5 }
0x1691   :  { %2226 = vst.msk [vmem:[#allocation3 + $0x2] sm:$0x3] %vm1408_vm3, %v2224_v55  ;;  %v2227_v56 = vsel %vm1410_vm5, %v2219_v5, %v2224_v55 }
0x1692   :  { %4404 = vmatmul.mubr.msk.f32.vlgmr.msra.gmra.mrb[12].mxu0 %vm542_vm0, %v2227_v56 }
0x1693   :  { %4460 = vmatprep.mubr.msk.f32.mxu0 %vm5310_vm2, %v5305_v3 }
0x1765   :  { %v2297_v58 = vpop.f32.mrb[12].mxu0 }
0x1766   :  { %v2302_v26 = vadd.f32 %v2301_v59, %v2297_v58  ;;  %v2304_v61 = vadd.f32 %v2303_v60, %v2297_v58  ;;  %v4405_v63 = vpop.f32.mrb[13].mxu0  ;;  %v5015_v58 = vpack.i.bf16 %v2381_v28, %v2588_v47  ;;  %v2594_v59 = vld [vmem:[%s6397_s3 + $0x68] sm:$0xff] }
0x1767   :  { %v5030_v63 = vpack.i.bf16 %v2387_v35, %v2594_v59  ;;  %v2374_v59 = vld [vmem:[%s6395_s2 + $0x358] sm:$0xff] }
0x1768   :  { %5150 = vtanh.f32 %v2302_v26  ;;  %v3795_v2 = vmul.f32 -1.442695, %v2302_v26  ;;  %v3796_v4 = vmul.f32 -1.442695, %v2304_v61  ;;  %v2592_v26 = vld [vmem:[%s6397_s3 + $0x48] sm:$0xff] }
0x1769   :  { %5152 = vtanh.f32 %v2304_v61 }
0x176a   :  { %5154 = vpow2.f32 %v3795_v2 }
0x176b   :  { %5156 = vpow2.f32 %v3796_v4 }
0x1772   :  { %v5151_v62 = vpop.eup %5150 }
0x1773   :  { %v5153_v1 = vpop.eup %5152  ;;  %2321 = vrot.lane.b32.xlu0 %v5151_v62, %s5311_s21  ;;  %v5025_v62 = vpack.i.bf16 %v2385_v39, %v2592_v26  ;;  %v2375_v26 = vld [vmem:[%s6395_s2 + $0x3a0] sm:$0xff] }
0x1774   :  { %2332 = vrot.lane.b32.xlu1 %v5153_v1, %s5311_s21  ;;  %v5155_v11 = vpop.eup %5154 }
0x1775   :  { %v5157_v12 = vpop.eup %5156  ;;  %v2308_v40 = vadd.f32 1.0, %v5155_v11 }
0x1776   :  { %v2315_v41 = vadd.f32 1.0, %v5157_v12 }
0x1777   :  { %5158 = vrcp.f32 %v2308_v40 }
0x1778   :  { %5160 = vrcp.f32 %v2315_v41 }
0x1781   :  { %v5159_v14 = vpop.eup %5158 }
0x1782   :  { %v5161_v19 = vpop.eup %5160  ;;  %v2319_v22 = vmul.f32 %v5159_v14, %v2193_v48  ;;  %v5005_v48 = vpack.i.bf16 %v2386_v43, %v2385_v39  ;;  %v2367_v39 = vld [vmem:[%s6395_s2 + $0x160] sm:$0xff]  ;;  %v2368_v43 = vld [vmem:[%s6395_s2 + $0x1a8] sm:$0xff] }
0x1783   :  { %v2330_v44 = vmul.f32 %v5161_v19, %v2204_v49  ;;  %v2590_v49 = vld [vmem:[%s6397_s3 + $0x28] sm:$0xff]  ;;  %v4864_v47 = vpack.c.bf16 %v2368_v43, %v2367_v39 }
0x1784   :  { %v5020_v55 = vpack.i.bf16 %v2383_v25, %v2590_v49  ;;  %v2365_v25 = vld [vmem:[%s6395_s2 + $0xd0] sm:$0xff] }
0x17e5   :  { %v2322_v15 = vpop.permute.xlu0 %2321 }
0x17e6   :  { %v2333_v20 = vpop.permute.xlu1 %2332  ;;  %v2324_v42 = vmul.f32 %v5159_v14, %v2322_v15  ;;  %v2363_v15 = vld [vmem:[%s6395_s2 + $0x40] sm:$0xff] }
0x17e7   :  { %v2335_v21 = vmul.f32 %v5161_v19, %v2333_v20 }
0x17e8   :  { %2326 = vrot.lane.b32.xlu0 %v2324_v42, %s5312_s22 }
0x17e9   :  { %2337 = vrot.lane.b32.xlu1 %v2335_v21, %s5312_s22 }
0x185a   :  { %v2327_v23 = vpop.permute.xlu0 %2326 }
0x185b   :  { %v2338_v8 = vpop.permute.xlu1 %2337  ;;  %v2329_v0 = vadd.f32 %v2327_v23, %v2319_v22 }
0x185c   :  { %v2340_v24 = vadd.f32 %v2338_v8, %v2330_v44 }
0x185d   :  { %5162 = vtanh.f32 %v2329_v0 }
0x185e   :  { %5164 = vtanh.f32 %v2340_v24 }
0x1867   :  { %v5163_v30 = vpop.eup %5162 }
0x1868   :  { %v5165_v31 = vpop.eup %5164  ;;  %2343 = vrot.lane.b32.xlu0 %v5163_v30, %s5312_s22 }
0x1869   :  { %2349 = vrot.lane.b32.xlu1 %v5165_v31, %s5312_s22 }
0x186c   :  { %5001 = vrot.lane.b32.xlu0 %v5000_v32, %s5308_s16 }
0x186d   :  { %4996 = vrot.lane.b32.xlu1 %v4995_v33, %s5308_s16  ;;  %v4860_v33 = vpack.c.bf16 %v2366_v27, %v2365_v25 }
0x18da   :  { %v2344_v34 = vpop.permute.xlu0 %2343 }
0x18db   :  { %v2350_v37 = vpop.permute.xlu1 %2349  ;;  %v2346_v38 = vmul.f32 %v5159_v14, %v2344_v34 }
0x18dc   :  { %v2352_v45 = vmul.f32 %v5161_v19, %v2350_v37  ;;  %v2364_v19 = vld [vmem:[%s6395_s2 + $0x88] sm:$0xff] }
0x18dd   :  { %2354 = vrot.lane.b32.xlu0 %v2346_v38, %s5306_s10  ;;  %v4856_v23 = vpack.c.bf16 %v2364_v19, %v2363_v15 }
0x18de   :  { %2359 = vrot.lane.b32.xlu1 %v2352_v45, %s5313_s23  ;;  %v5002_v50 = vpop.permute.xlu0 %5001 }
0x18df   :  { %v4997_v51 = vpop.permute.xlu1 %4996  ;;  %v5004_v57 = vunpack.i.h.bf16 %v5002_v50  ;;  %v5003_v52 = vunpack.i.l.bf16 %v5002_v50  ;;  %v5302_v50 = vld [vmem:[%s6398_s1] sm:$0xff] }
0x18e0   :  { %v4999_v53 = vunpack.i.h.bf16 %v4997_v51  ;;  %v4998_v5 = vunpack.i.l.bf16 %v4997_v51 }
0x18e1   :  { %5011 = vrot.lane.b32.xlu0 %v5010_v46, %s5308_s16  ;;  %v2414_v56 = vsel %vm542_vm0, %v5003_v52, %v5004_v57  ;;  %v2369_v57 = vld [vmem:[%s6395_s2 + $0x1f0] sm:$0xff]  ;;  %v2370_v52 = vld [vmem:[%s6395_s2 + $0x238] sm:$0xff] }
0x18e2   :  { %5006 = vrot.lane.b32.xlu1 %v5005_v48, %s5308_s16  ;;  %v2413_v60 = vsel %vm542_vm0, %v4998_v5, %v4999_v53  ;;  %v4868_v53 = vpack.c.bf16 %v2370_v52, %v2369_v57  ;;  %v2371_v5 = vld [vmem:[%s6395_s2 + $0x280] sm:$0xff] }
0x18e3   :  { %v4848_v61 = vpack.c.bf16 %v2414_v56, %v2413_v60 }
0x18e5   :  { %5021 = vrot.lane.b32.xlu0 %v5020_v55, %s5308_s16  ;;  %4849 = vmatprep.subr.bf16.mxu1 %v4848_v61  ;;  %v2372_v55 = vld [vmem:[%s6395_s2 + $0x2c8] sm:$0xff] }
0x18e6   :  { %5016 = vrot.lane.b32.xlu1 %v5015_v58, %s5308_s16  ;;  %4851 = vmatpush3.bf16.msra.mxu1 %v4848_v61  ;;  %v4872_v56 = vpack.c.bf16 %v2372_v55, %v2371_v5  ;;  %v2373_v58 = vld [vmem:[%s6395_s2 + $0x310] sm:$0xff]  ;;  %v2376_v61 = vld [vmem:[%s6395_s2 + $0x3e8] sm:$0xff] }
0x18e7   :  { %v4876_v60 = vpack.c.bf16 %v2374_v59, %v2373_v58 }
0x18e9   :  { %5031 = vrot.lane.b32.xlu0 %v5030_v63, %s5308_s16  ;;  %v4880_v63 = vpack.c.bf16 %v2376_v61, %v2375_v26 }
0x18ea   :  { %5026 = vrot.lane.b32.xlu1 %v5025_v62, %s5308_s16  ;;  %v2377_v62 = vld [vmem:[%s6395_s2 + $0x430] sm:$0xff] }
0x194f   :  { %v2355_v1 = vpop.permute.xlu0 %2354 }
0x1950   :  { %v2360_v2 = vpop.permute.xlu1 %2359  ;;  %2357 = vst.msk [vmem:[#allocation3 + $0xe] sm:$0x3] %vm1402_vm4, %v2355_v1  ;;  %v2378_v1 = vld [vmem:[%s6395_s2 + $0x478] sm:$0xff] }
0x1951   :  { %2362 = vst.msk [vmem:[#allocation3] sm:$0x3] %vm1408_vm3, %v2360_v2  ;;  %v4884_v2 = vpack.c.bf16 %v2378_v1, %v2377_v62 }
0x1953   :  { %v5012_v4 = vpop.permute.xlu0 %5011 }
0x1954   :  { %v5007_v11 = vpop.permute.xlu1 %5006  ;;  %v5014_v12 = vunpack.i.h.bf16 %v5012_v4  ;;  %v5013_v40 = vunpack.i.l.bf16 %v5012_v4  ;;  %v5303_v4 = vld [vmem:[%s6398_s1 + $0x8] sm:$0xff] }
0x1955   :  { %v5009_v41 = vunpack.i.h.bf16 %v5007_v11  ;;  %v5008_v14 = vunpack.i.l.bf16 %v5007_v11 }
0x1956   :  { %v2416_v20 = vsel %vm542_vm0, %v5013_v40, %v5014_v12  ;;  %v3799_v40 = vld [vmem:[%s6399_s4 + $0x4] ss:$0 sm:$0xff] }
0x1957   :  { %v2415_v42 = vsel %vm542_vm0, %v5008_v14, %v5009_v41  ;;  %v5022_v21 = vpop.permute.xlu0 %5021  ;;  %v2380_v38 = vld [vmem:[#allocation3 + $0x8] sm:$0xff] }
0x1958   :  { %v2379_v22 = vld [vmem:[#allocation3] sm:$0xff]  ;;  %v4852_v44 = vpack.c.bf16 %v2416_v20, %v2415_v42  ;;  %v5017_v8 = vpop.permute.xlu1 %5016  ;;  %v5024_v0 = vunpack.i.h.bf16 %v5022_v21  ;;  %v5023_v24 = vunpack.i.l.bf16 %v5022_v21 }
0x1959   :  { %4414 = vmatprep.mubr.msk.f32.mxu1 %vm542_vm0, %v2379_v22  ;;  %v5019_v28 = vunpack.i.h.bf16 %v5017_v8  ;;  %v5018_v29 = vunpack.i.l.bf16 %v5017_v8 }
0x195a   :  { %4853 = vmatprep.subr.bf16.mxu1 %v4852_v44  ;;  %v2621_v30 = vsel %vm542_vm0, %v5023_v24, %v5024_v0 }
0x195b   :  { %4855 = vmatpush3.bf16.msra.mxu1 %v4852_v44  ;;  %v2620_v31 = vsel %vm542_vm0, %v5018_v29, %v5019_v28  ;;  %v5032_v32 = vpop.permute.xlu0 %5031 }
0x195c   :  { %4857 = vmatprep.subr.bf16.mxu1 %v4856_v23  ;;  %v6105_v34 = vpack.c.bf16 %v2621_v30, %v2620_v31  ;;  %v5027_v35 = vpop.permute.xlu1 %5026  ;;  %v5034_v36 = vunpack.i.h.bf16 %v5032_v32  ;;  %v5033_v37 = vunpack.i.l.bf16 %v5032_v32 }
0x195d   :  { %v5029_v45 = vunpack.i.h.bf16 %v5027_v35  ;;  %v5028_v46 = vunpack.i.l.bf16 %v5027_v35 }
0x195e   :  { %4415 = vmatmul.mubr.msk.f32.vlgmr.msra.gmra.mrb[22].mxu1 %vm542_vm0, %v2380_v38  ;;  %v2623_v48 = vsel %vm542_vm0, %v5033_v37, %v5034_v36  ;;  %4890 = vmatpush3.bf16.msra.mxu0 %v6105_v34 }
0x195f   :  { %4859 = vmatpush3.bf16.msra.mxu1 %v4856_v23  ;;  %v2622_v49 = vsel %vm542_vm0, %v5028_v46, %v5029_v45  ;;  %4449 = vmatprep.mubr.f32.mxu1 %v5302_v50 }
0x1960   :  { %4861 = vmatprep.subr.bf16.mxu1 %v4860_v33  ;;  %v6120_v51 = vpack.c.bf16 %v2623_v48, %v2622_v49  ;;  %4891 = vmatprep.subr.bf16.mxu0 %v5309_v54 }
0x1962   :  { %4893 = vmatpush3.bf16.msra.mxu0 %v6120_v51 }
0x1963   :  { %4863 = vmatpush3.bf16.msra.mxu1 %v4860_v33  ;;  %4894 = vmatprep.subr.bf16.mxu0 %v5309_v54 }
0x1964   :  { %4865 = vmatprep.subr.bf16.mxu1 %v4864_v47 }
0x1965   :  { %4461 = vmatmul.mubr.f32.vlgmr.msra.gmra.mrb[14].mxu0 %v5305_v3 }
0x1966   :  { %4896 = vmatpush3.bf16.msra.mxu0 %v6105_v34  ;;  %4471 = vmatprep.mubr.msk.f32.mxu0 %vm5310_vm2, %v5305_v3 }
0x1967   :  { %4867 = vmatpush3.bf16.msra.mxu1 %v4864_v47  ;;  %4897 = vmatprep.subr.bf16.mxu0 %v5309_v54 }
0x1968   :  { %4869 = vmatprep.subr.bf16.mxu1 %v4868_v53 }
0x196a   :  { %4899 = vmatpush3.bf16.msra.mxu0 %v6120_v51 }
0x196b   :  { %4871 = vmatpush3.bf16.msra.mxu1 %v4868_v53  ;;  %4900 = vmatprep.subr.bf16.mxu0 %v5309_v54 }
0x196c   :  { %4873 = vmatprep.subr.bf16.mxu1 %v4872_v56 }
0x196f   :  { %4875 = vmatpush3.bf16.msra.mxu1 %v4872_v56 }
0x1970   :  { %4877 = vmatprep.subr.bf16.mxu1 %v4876_v60 }
0x1973   :  { %4879 = vmatpush3.bf16.msra.mxu1 %v4876_v60 }
0x1974   :  { %4881 = vmatprep.subr.bf16.mxu1 %v4880_v63 }
0x1977   :  { %4883 = vmatpush3.bf16.msra.mxu1 %v4880_v63 }
0x1978   :  { %4885 = vmatprep.subr.bf16.mxu1 %v4884_v2 }
0x197b   :  { %4887 = vmatpush3.bf16.msra.mxu1 %v4884_v2 }
0x197c   :  { %4918 = vmatprep.subr.bf16.mxu1 %v5309_v54 }
0x197e   :  { %4450 = vmatmul.mubr.f32.vlgmr.msra.gmra.mrb[22].mxu1 %v5303_v4 }
0x197f   :  { %4920 = vmatpush3.bf16.msra.mxu1 %v6105_v34  ;;  %4515 = vmatprep.mubr.msk.f32.mxu1 %vm5310_vm2, %v5305_v3 }
0x1980   :  { %4921 = vmatprep.subr.bf16.mxu1 %v5309_v54 }
0x1983   :  { %4923 = vmatpush3.bf16.msra.mxu1 %v6120_v51 }
0x1984   :  { %4930 = vmatprep.subr.bf16.mxu1 %v5309_v54 }
0x1a38   :  { %v2694_v11 = vpop.f32.mrb[14].mxu0 }
0x1a39   :  { %v4462_v12 = vpop.f32.mrb[15].mxu0 }
0x1a51   :  { %v4451_v41 = vpop.f32.mrb[22].mxu1 }
0x1a52   :  { %v2585_v14 = vadd.f32 %v4451_v41, %v3799_v40  ;;  %v2568_v15 = vpop.f32.mrb[23].mxu1 }
0x1a53   :  { %v2584_v19 = vadd.f32 %v3799_v40, %v2568_v15 }
0x1a54   :  { %2587 = vst [vmem:[#allocation2 + $0x8] sm:$0xff] %v2585_v14 }
0x1a55   :  { %2586 = vst [vmem:[#allocation2] sm:$0xff] %v2584_v19 }
0x1a5b   :  { %v2700_v20 = vld [vmem:[#allocation2 + $0xe] sm:$0x3]  ;;  %v2841_v58 = vld [vmem:[#allocation2 + $0xc] sm:$0x3] }
0x1a5c   :  { %v2698_v42 = vld [vmem:[#allocation2] sm:$0x3]  ;;  %v2701_v21 = vadd.f32 %v2700_v20, %v2694_v11  ;;  %v2839_v56 = vld [vmem:[#allocation2 + $0x2] sm:$0x3] }
0x1a5d   :  { %v2699_v22 = vadd.f32 %v2698_v42, %v2694_v11 }
0x1a5e   :  { %5166 = vtanh.f32 %v2701_v21  ;;  %v3801_v8 = vmul.f32 -1.442695, %v2701_v21 }
0x1a5f   :  { %5168 = vtanh.f32 %v2699_v22  ;;  %v3800_v0 = vmul.f32 -1.442695, %v2699_v22 }
0x1a60   :  { %5170 = vpow2.f32 %v3801_v8 }
0x1a61   :  { %5172 = vpow2.f32 %v3800_v0 }
0x1a68   :  { %v5167_v44 = vpop.eup %5166 }
0x1a69   :  { %v5169_v23 = vpop.eup %5168  ;;  %2729 = vrot.lane.b32.xlu0 %v5167_v44, %s5311_s21 }
0x1a6a   :  { %2718 = vrot.lane.b32.xlu1 %v5169_v23, %s5311_s21  ;;  %v5171_v24 = vpop.eup %5170 }
0x1a6b   :  { %v5173_v25 = vpop.eup %5172  ;;  %v2712_v27 = vadd.f32 1.0, %v5171_v24 }
0x1a6c   :  { %v2705_v28 = vadd.f32 1.0, %v5173_v25 }
0x1a6d   :  { %5174 = vrcp.f32 %v2712_v27 }
0x1a6e   :  { %5176 = vrcp.f32 %v2705_v28 }
0x1a77   :  { %v5175_v29 = vpop.eup %5174 }
0x1a78   :  { %v5177_v31 = vpop.eup %5176  ;;  %v2727_v36 = vmul.f32 0.0, %v5175_v29 }
0x1a79   :  { %v2716_v38 = vmul.f32 0.0, %v5177_v31 }
0x1adb   :  { %v2730_v30 = vpop.permute.xlu0 %2729 }
0x1adc   :  { %v2732_v32 = vmul.f32 %v5175_v29, %v2730_v30  ;;  %v2719_v33 = vpop.permute.xlu1 %2718 }
0x1add   :  { %v2721_v35 = vmul.f32 %v5177_v31, %v2719_v33 }
0x1ade   :  { %2734 = vrot.lane.b32.xlu0 %v2732_v32, %s5312_s22 }
0x1adf   :  { %2723 = vrot.lane.b32.xlu1 %v2721_v35, %s5312_s22  ;;  %v2978_v35 = vld [vmem:[#allocation2 + $0x4] sm:$0x3] }
0x1b50   :  { %v2735_v37 = vpop.permute.xlu0 %2734 }
0x1b51   :  { %v2737_v39 = vadd.f32 %v2735_v37, %v2727_v36  ;;  %v2724_v43 = vpop.permute.xlu1 %2723  ;;  %v2980_v36 = vld [vmem:[#allocation2 + $0xa] sm:$0x3] }
0x1b52   :  { %v2726_v45 = vadd.f32 %v2724_v43, %v2716_v38 }
0x1b53   :  { %5178 = vtanh.f32 %v2737_v39 }
0x1b54   :  { %5180 = vtanh.f32 %v2726_v45 }
0x1b5d   :  { %v5179_v46 = vpop.eup %5178 }
0x1b5e   :  { %v5181_v48 = vpop.eup %5180  ;;  %2746 = vrot.lane.b32.xlu0 %v5179_v46, %s5312_s22 }
0x1b5f   :  { %2740 = vrot.lane.b32.xlu1 %v5181_v48, %s5312_s22 }
0x1bd0   :  { %v2747_v49 = vpop.permute.xlu0 %2746 }
0x1bd1   :  { %v6181_v50 = vmul.f32 %v5175_v29, %v2747_v49  ;;  %v2741_v47 = vpop.permute.xlu1 %2740 }
0x1bd2   :  { %v2743_v57 = vmul.f32 %v5177_v31, %v2741_v47 }
0x1bd3   :  { %2762 = vrot.lane.b32.xlu0 %v6181_v50, %s5313_s23 }
0x1bd4   :  { %2759 = vrot.lane.b32.xlu1 %v2743_v57, %s5306_s10  ;;  %2751 = vst.msk [vmem:[#allocation3] sm:$0x3] %vm2750_vm6, %v2743_v57 }
0x1c45   :  { %v2763_v52 = vpop.permute.xlu0 %2762 }
0x1c46   :  { %v2760_v53 = vpop.permute.xlu1 %2759 }
0x1c47   :  { %v2765_v5 = vsel %vm1410_vm5, %v2760_v53, %v2763_v52 }
0x1c48   :  { %4472 = vmatmul.mubr.msk.f32.vlgmr.msra.gmra.mrb[16].mxu0 %vm542_vm0, %v2765_v5 }
0x1c49   :  { %4902 = vmatpush3.bf16.msra.mxu0 %v6105_v34  ;;  %4482 = vmatprep.mubr.msk.f32.mxu0 %vm5310_vm2, %v5305_v3 }
0x1c4a   :  { %4903 = vmatprep.subr.bf16.mxu0 %v5309_v54 }
0x1c4d   :  { %4905 = vmatpush3.bf16.msra.mxu0 %v6120_v51 }
0x1c4e   :  { %4906 = vmatprep.subr.bf16.mxu0 %v5309_v54 }
0x1d1b   :  { %v2835_v55 = vpop.f32.mrb[16].mxu0 }
0x1d1c   :  { %v2840_v59 = vadd.f32 %v2839_v56, %v2835_v55  ;;  %v2842_v60 = vadd.f32 %v2841_v58, %v2835_v55  ;;  %v4473_v26 = vpop.f32.mrb[17].mxu0 }
0x1d1e   :  { %5182 = vtanh.f32 %v2840_v59  ;;  %v3803_v62 = vmul.f32 -1.442695, %v2840_v59  ;;  %v3804_v1 = vmul.f32 -1.442695, %v2842_v60 }
0x1d1f   :  { %5184 = vtanh.f32 %v2842_v60 }
0x1d20   :  { %5186 = vpow2.f32 %v3803_v62 }
0x1d21   :  { %5188 = vpow2.f32 %v3804_v1 }
0x1d28   :  { %v5183_v61 = vpop.eup %5182 }
0x1d29   :  { %v5185_v63 = vpop.eup %5184  ;;  %2859 = vrot.lane.b32.xlu1 %v5183_v61, %s5311_s21 }
0x1d2a   :  { %2870 = vrot.lane.b32.xlu0 %v5185_v63, %s5311_s21  ;;  %v5187_v2 = vpop.eup %5186 }
0x1d2b   :  { %v5189_v4 = vpop.eup %5188  ;;  %v2846_v11 = vadd.f32 1.0, %v5187_v2 }
0x1d2c   :  { %v2853_v12 = vadd.f32 1.0, %v5189_v4 }
0x1d2d   :  { %5190 = vrcp.f32 %v2846_v11 }
0x1d2e   :  { %5192 = vrcp.f32 %v2853_v12 }
0x1d37   :  { %v5191_v40 = vpop.eup %5190 }
0x1d38   :  { %v5193_v14 = vpop.eup %5192  ;;  %v2857_v42 = vmul.f32 %v5191_v40, %v2726_v45 }
0x1d39   :  { %v2868_v21 = vmul.f32 %v5193_v14, %v2737_v39 }
0x1d9b   :  { %v2860_v41 = vpop.permute.xlu1 %2859 }
0x1d9c   :  { %v2871_v15 = vpop.permute.xlu0 %2870  ;;  %v2862_v19 = vmul.f32 %v5191_v40, %v2860_v41 }
0x1d9d   :  { %v2873_v20 = vmul.f32 %v5193_v14, %v2871_v15 }
0x1d9e   :  { %2864 = vrot.lane.b32.xlu1 %v2862_v19, %s5312_s22 }
0x1d9f   :  { %2875 = vrot.lane.b32.xlu0 %v2873_v20, %s5312_s22 }
0x1e10   :  { %v2865_v22 = vpop.permute.xlu1 %2864 }
0x1e11   :  { %v2876_v44 = vpop.permute.xlu0 %2875  ;;  %v2867_v23 = vadd.f32 %v2865_v22, %v2857_v42  ;;  %v3117_v42 = vld [vmem:[#allocation2 + $0x6] sm:$0x3] }
0x1e12   :  { %v2878_v8 = vadd.f32 %v2876_v44, %v2868_v21  ;;  %v3119_v21 = vld [vmem:[#allocation2 + $0x8] sm:$0x3] }
0x1e13   :  { %5194 = vtanh.f32 %v2867_v23 }
0x1e14   :  { %5196 = vtanh.f32 %v2878_v8 }
0x1e1d   :  { %v5195_v0 = vpop.eup %5194 }
0x1e1e   :  { %v5197_v24 = vpop.eup %5196  ;;  %2881 = vrot.lane.b32.xlu1 %v5195_v0, %s5312_s22 }
0x1e1f   :  { %2887 = vrot.lane.b32.xlu0 %v5197_v24, %s5312_s22 }
0x1e90   :  { %v2882_v25 = vpop.permute.xlu1 %2881 }
0x1e91   :  { %v2888_v27 = vpop.permute.xlu0 %2887  ;;  %v2884_v28 = vmul.f32 %v5191_v40, %v2882_v25 }
0x1e92   :  { %v6201_v29 = vmul.f32 %v5193_v14, %v2888_v27 }
0x1e93   :  { %2898 = vrot.lane.b32.xlu1 %v2884_v28, %s5306_s10  ;;  %2891 = vst.msk [vmem:[#allocation3 + $0x2] sm:$0x3] %vm2750_vm6, %v2884_v28 }
0x1e94   :  { %2901 = vrot.lane.b32.xlu0 %v6201_v29, %s5313_s23 }
0x1f05   :  { %v2899_v30 = vpop.permute.xlu1 %2898 }
0x1f06   :  { %v2902_v31 = vpop.permute.xlu0 %2901 }
0x1f07   :  { %v2904_v32 = vsel %vm1410_vm5, %v2899_v30, %v2902_v31 }
0x1f08   :  { %4483 = vmatmul.mubr.msk.f32.vlgmr.msra.gmra.mrb[18].mxu0 %vm542_vm0, %v2904_v32 }
0x1f09   :  { %4908 = vmatpush3.bf16.msra.mxu0 %v6105_v34  ;;  %4493 = vmatprep.mubr.msk.f32.mxu0 %vm5310_vm2, %v5305_v3 }
0x1f0a   :  { %4909 = vmatprep.subr.bf16.mxu0 %v5309_v54 }
0x1f0d   :  { %4911 = vmatpush3.bf16.msra.mxu0 %v6120_v51 }
0x1f0e   :  { %4912 = vmatprep.subr.bf16.mxu0 %v5309_v54 }
0x1fdb   :  { %v2974_v33 = vpop.f32.mrb[18].mxu0 }
0x1fdc   :  { %v2979_v37 = vadd.f32 %v2978_v35, %v2974_v33  ;;  %v2981_v38 = vadd.f32 %v2980_v36, %v2974_v33  ;;  %v4484_v39 = vpop.f32.mrb[19].mxu0 }
0x1fde   :  { %5198 = vtanh.f32 %v2979_v37  ;;  %v3806_v46 = vmul.f32 -1.442695, %v2979_v37  ;;  %v3807_v48 = vmul.f32 -1.442695, %v2981_v38 }
0x1fdf   :  { %5200 = vtanh.f32 %v2981_v38 }
0x1fe0   :  { %5202 = vpow2.f32 %v3806_v46 }
0x1fe1   :  { %5204 = vpow2.f32 %v3807_v48 }
0x1fe8   :  { %v5199_v43 = vpop.eup %5198 }
0x1fe9   :  { %v5201_v45 = vpop.eup %5200  ;;  %2998 = vrot.lane.b32.xlu1 %v5199_v43, %s5311_s21 }
0x1fea   :  { %3009 = vrot.lane.b32.xlu0 %v5201_v45, %s5311_s21  ;;  %v5203_v49 = vpop.eup %5202 }
0x1feb   :  { %v5205_v47 = vpop.eup %5204  ;;  %v2985_v57 = vadd.f32 1.0, %v5203_v49 }
0x1fec   :  { %v2992_v52 = vadd.f32 1.0, %v5205_v47 }
0x1fed   :  { %5206 = vrcp.f32 %v2985_v57 }
0x1fee   :  { %5208 = vrcp.f32 %v2992_v52 }
0x1ff7   :  { %v5207_v53 = vpop.eup %5206 }
0x1ff8   :  { %v5209_v55 = vpop.eup %5208  ;;  %v2996_v60 = vmul.f32 %v5207_v53, %v2867_v23 }
0x1ff9   :  { %v3007_v26 = vmul.f32 %v5209_v55, %v2878_v8 }
0x205b   :  { %v2999_v5 = vpop.permute.xlu1 %2998 }
0x205c   :  { %v3010_v56 = vpop.permute.xlu0 %3009  ;;  %v3001_v58 = vmul.f32 %v5207_v53, %v2999_v5 }
0x205d   :  { %v3012_v59 = vmul.f32 %v5209_v55, %v3010_v56 }
0x205e   :  { %3003 = vrot.lane.b32.xlu1 %v3001_v58, %s5312_s22 }
0x205f   :  { %3014 = vrot.lane.b32.xlu0 %v3012_v59, %s5312_s22 }
0x20d0   :  { %v3004_v61 = vpop.permute.xlu1 %3003 }
0x20d1   :  { %v3015_v63 = vpop.permute.xlu0 %3014  ;;  %v3006_v62 = vadd.f32 %v3004_v61, %v2996_v60  ;;  %v3258_v61 = vld [vmem:[#allocation2 + $0x6] sm:$0x3] }
0x20d2   :  { %v3017_v1 = vadd.f32 %v3015_v63, %v3007_v26  ;;  %v3256_v26 = vld [vmem:[#allocation2 + $0x8] sm:$0x3] }
0x20d3   :  { %5210 = vtanh.f32 %v3006_v62 }
0x20d4   :  { %5212 = vtanh.f32 %v3017_v1 }
0x20dd   :  { %v5211_v2 = vpop.eup %5210 }
0x20de   :  { %v5213_v4 = vpop.eup %5212  ;;  %3020 = vrot.lane.b32.xlu1 %v5211_v2, %s5312_s22 }
0x20df   :  { %3026 = vrot.lane.b32.xlu0 %v5213_v4, %s5312_s22 }
0x2150   :  { %v3021_v11 = vpop.permute.xlu1 %3020 }
0x2151   :  { %v3027_v12 = vpop.permute.xlu0 %3026  ;;  %v3023_v40 = vmul.f32 %v5207_v53, %v3021_v11 }
0x2152   :  { %v6221_v41 = vmul.f32 %v5209_v55, %v3027_v12 }
0x2153   :  { %3037 = vrot.lane.b32.xlu1 %v3023_v40, %s5306_s10  ;;  %3030 = vst.msk [vmem:[#allocation3 + $0x4] sm:$0x3] %vm2750_vm6, %v3023_v40 }
0x2154   :  { %3040 = vrot.lane.b32.xlu0 %v6221_v41, %s5313_s23 }
0x21c5   :  { %v3038_v14 = vpop.permute.xlu1 %3037 }
0x21c6   :  { %v3041_v15 = vpop.permute.xlu0 %3040 }
0x21c7   :  { %v3043_v19 = vsel %vm1410_vm5, %v3038_v14, %v3041_v15 }
0x21c8   :  { %4494 = vmatmul.mubr.msk.f32.vlgmr.msra.gmra.mrb[20].mxu0 %vm542_vm0, %v3043_v19 }
0x21c9   :  { %4914 = vmatpush3.bf16.msra.mxu0 %v6105_v34  ;;  %4504 = vmatprep.mubr.msk.f32.mxu0 %vm5310_vm2, %v5305_v3 }
0x21ca   :  { %4915 = vmatprep.subr.bf16.mxu0 %v5309_v54 }
0x21cd   :  { %4917 = vmatpush3.bf16.msra.mxu0 %v6120_v51 }
0x21ce   :  { %4924 = vmatprep.subr.bf16.mxu0 %v5309_v54 }
0x229b   :  { %v3113_v20 = vpop.f32.mrb[20].mxu0 }
0x229c   :  { %v3118_v22 = vadd.f32 %v3117_v42, %v3113_v20  ;;  %v3120_v44 = vadd.f32 %v3119_v21, %v3113_v20  ;;  %v4495_v23 = vpop.f32.mrb[21].mxu0 }
0x229e   :  { %5214 = vtanh.f32 %v3118_v22  ;;  %v3809_v24 = vmul.f32 -1.442695, %v3118_v22  ;;  %v3810_v25 = vmul.f32 -1.442695, %v3120_v44 }
0x229f   :  { %5216 = vtanh.f32 %v3120_v44 }
0x22a0   :  { %5218 = vpow2.f32 %v3809_v24 }
0x22a1   :  { %5220 = vpow2.f32 %v3810_v25 }
0x22a8   :  { %v5215_v8 = vpop.eup %5214 }
0x22a9   :  { %v5217_v0 = vpop.eup %5216  ;;  %3137 = vrot.lane.b32.xlu1 %v5215_v8, %s5311_s21 }
0x22aa   :  { %3148 = vrot.lane.b32.xlu0 %v5217_v0, %s5311_s21  ;;  %v5219_v27 = vpop.eup %5218 }
0x22ab   :  { %v5221_v28 = vpop.eup %5220  ;;  %v3124_v30 = vadd.f32 1.0, %v5219_v27 }
0x22ac   :  { %v3131_v31 = vadd.f32 1.0, %v5221_v28 }
0x22ad   :  { %5222 = vrcp.f32 %v3124_v30 }
0x22ae   :  { %5224 = vrcp.f32 %v3131_v31 }
0x22b7   :  { %v5223_v32 = vpop.eup %5222 }
0x22b8   :  { %v5225_v35 = vpop.eup %5224  ;;  %v3135_v39 = vmul.f32 %v5223_v32, %v3006_v62 }
0x22b9   :  { %v3146_v43 = vmul.f32 %v5225_v35, %v3017_v1 }
0x231b   :  { %v3138_v33 = vpop.permute.xlu1 %3137 }
0x231c   :  { %v3149_v36 = vpop.permute.xlu0 %3148  ;;  %v3140_v37 = vmul.f32 %v5223_v32, %v3138_v33 }
0x231d   :  { %v3151_v38 = vmul.f32 %v5225_v35, %v3149_v36 }
0x231e   :  { %3142 = vrot.lane.b32.xlu1 %v3140_v37, %s5312_s22 }
0x231f   :  { %3153 = vrot.lane.b32.xlu0 %v3151_v38, %s5312_s22 }
0x2390   :  { %v3143_v45 = vpop.permute.xlu1 %3142 }
0x2391   :  { %v3154_v46 = vpop.permute.xlu0 %3153  ;;  %v3145_v48 = vadd.f32 %v3143_v45, %v3135_v39  ;;  %v3395_v45 = vld [vmem:[#allocation2 + $0xa] sm:$0x3] }
0x2392   :  { %v3156_v49 = vadd.f32 %v3154_v46, %v3146_v43  ;;  %v3397_v46 = vld [vmem:[#allocation2 + $0x4] sm:$0x3] }
0x2393   :  { %5226 = vtanh.f32 %v3145_v48 }
0x2394   :  { %5228 = vtanh.f32 %v3156_v49 }
0x239d   :  { %v5227_v47 = vpop.eup %5226 }
0x239e   :  { %v5229_v57 = vpop.eup %5228  ;;  %3159 = vrot.lane.b32.xlu1 %v5227_v47, %s5312_s22 }
0x239f   :  { %3165 = vrot.lane.b32.xlu0 %v5229_v57, %s5312_s22 }
0x2410   :  { %v3160_v52 = vpop.permute.xlu1 %3159 }
0x2411   :  { %v3166_v53 = vpop.permute.xlu0 %3165  ;;  %v3162_v5 = vmul.f32 %v5223_v32, %v3160_v52 }
0x2412   :  { %v6241_v55 = vmul.f32 %v5225_v35, %v3166_v53 }
0x2413   :  { %3176 = vrot.lane.b32.xlu1 %v3162_v5, %s5306_s10  ;;  %3169 = vst.msk [vmem:[#allocation3 + $0x6] sm:$0x3] %vm2750_vm6, %v3162_v5 }
0x2414   :  { %3179 = vrot.lane.b32.xlu0 %v6241_v55, %s5313_s23 }
0x2485   :  { %v3177_v56 = vpop.permute.xlu1 %3176 }
0x2486   :  { %v3180_v58 = vpop.permute.xlu0 %3179 }
0x2487   :  { %v3182_v59 = vsel %vm1410_vm5, %v3177_v56, %v3180_v58 }
0x2488   :  { %4505 = vmatmul.mubr.msk.f32.vlgmr.msra.gmra.mrb[22].mxu0 %vm542_vm0, %v3182_v59 }
0x2489   :  { %4926 = vmatpush3.bf16.msra.mxu0 %v6105_v34  ;;  %4526 = vmatprep.mubr.msk.f32.mxu0 %vm5310_vm2, %v5305_v3 }
0x248a   :  { %4927 = vmatprep.subr.bf16.mxu0 %v5309_v54 }
0x248d   :  { %4929 = vmatpush3.bf16.msra.mxu0 %v6120_v51 }
0x255b   :  { %v3252_v60 = vpop.f32.mrb[22].mxu0 }
0x255c   :  { %v3257_v63 = vadd.f32 %v3256_v26, %v3252_v60  ;;  %v3259_v62 = vadd.f32 %v3258_v61, %v3252_v60  ;;  %v4506_v1 = vpop.f32.mrb[23].mxu0 }
0x255e   :  { %5230 = vtanh.f32 %v3257_v63  ;;  %v3812_v11 = vmul.f32 -1.442695, %v3257_v63  ;;  %v3813_v12 = vmul.f32 -1.442695, %v3259_v62 }
0x255f   :  { %5232 = vtanh.f32 %v3259_v62 }
0x2560   :  { %5234 = vpow2.f32 %v3812_v11 }
0x2561   :  { %5236 = vpow2.f32 %v3813_v12 }
0x2568   :  { %v5231_v2 = vpop.eup %5230 }
0x2569   :  { %v5233_v4 = vpop.eup %5232  ;;  %3276 = vrot.lane.b32.xlu1 %v5231_v2, %s5311_s21 }
0x256a   :  { %3287 = vrot.lane.b32.xlu0 %v5233_v4, %s5311_s21  ;;  %v5235_v40 = vpop.eup %5234 }
0x256b   :  { %v5237_v14 = vpop.eup %5236  ;;  %v3263_v15 = vadd.f32 1.0, %v5235_v40 }
0x256c   :  { %v3270_v19 = vadd.f32 1.0, %v5237_v14 }
0x256d   :  { %5238 = vrcp.f32 %v3263_v15 }
0x256e   :  { %5240 = vrcp.f32 %v3270_v19 }
0x2577   :  { %v5239_v20 = vpop.eup %5238 }
0x2578   :  { %v5241_v21 = vpop.eup %5240  ;;  %v3274_v8 = vmul.f32 %v5239_v20, %v3145_v48 }
0x2579   :  { %v3285_v0 = vmul.f32 %v5241_v21, %v3156_v49 }
0x25db   :  { %v3277_v42 = vpop.permute.xlu1 %3276 }
0x25dc   :  { %v3288_v22 = vpop.permute.xlu0 %3287  ;;  %v3279_v44 = vmul.f32 %v5239_v20, %v3277_v42 }
0x25dd   :  { %v3290_v23 = vmul.f32 %v5241_v21, %v3288_v22 }
0x25de   :  { %3281 = vrot.lane.b32.xlu1 %v3279_v44, %s5312_s22 }
0x25df   :  { %3292 = vrot.lane.b32.xlu0 %v3290_v23, %s5312_s22 }
0x2650   :  { %v3282_v24 = vpop.permute.xlu1 %3281 }
0x2651   :  { %v3293_v25 = vpop.permute.xlu0 %3292  ;;  %v3284_v27 = vadd.f32 %v3282_v24, %v3274_v8  ;;  %v3534_v8 = vld [vmem:[#allocation2 + $0xc] sm:$0x3] }
0x2652   :  { %v3295_v28 = vadd.f32 %v3293_v25, %v3285_v0  ;;  %v3536_v0 = vld [vmem:[#allocation2 + $0x2] sm:$0x3] }
0x2653   :  { %5242 = vtanh.f32 %v3284_v27 }
0x2654   :  { %5244 = vtanh.f32 %v3295_v28 }
0x265d   :  { %v5243_v30 = vpop.eup %5242 }
0x265e   :  { %v5245_v31 = vpop.eup %5244  ;;  %3298 = vrot.lane.b32.xlu1 %v5243_v30, %s5312_s22 }
0x265f   :  { %3304 = vrot.lane.b32.xlu0 %v5245_v31, %s5312_s22 }
0x26d0   :  { %v3299_v32 = vpop.permute.xlu1 %3298 }
0x26d1   :  { %v3305_v33 = vpop.permute.xlu0 %3304  ;;  %v6260_v35 = vmul.f32 %v5239_v20, %v3299_v32 }
0x26d2   :  { %v6262_v36 = vmul.f32 %v5241_v21, %v3305_v33 }
0x26d3   :  { %3315 = vrot.lane.b32.xlu1 %v6260_v35, %s5306_s10 }
0x26d4   :  { %3318 = vrot.lane.b32.xlu0 %v6262_v36, %s5313_s23 }
0x2745   :  { %v3316_v37 = vpop.permute.xlu1 %3315 }
0x2746   :  { %v3319_v38 = vpop.permute.xlu0 %3318 }
0x2747   :  { %v3321_v39 = vsel %vm1410_vm5, %v3316_v37, %v3319_v38 }
0x2748   :  { %4516 = vmatmul.mubr.msk.f32.vlgmr.msra.gmra.mrb[24].mxu1 %vm542_vm0, %v3321_v39 }
0x2749   :  { %4932 = vmatpush3.bf16.msra.mxu1 %v6105_v34  ;;  %4537 = vmatprep.mubr.msk.f32.mxu1 %vm5310_vm2, %v5305_v3 }
0x274a   :  { %4933 = vmatprep.subr.bf16.mxu1 %v5309_v54 }
0x274d   :  { %4935 = vmatpush3.bf16.msra.mxu1 %v6120_v51 }
0x281b   :  { %v3391_v43 = vpop.f32.mrb[24].mxu1 }
0x281c   :  { %v3396_v48 = vadd.f32 %v3395_v45, %v3391_v43  ;;  %v3398_v49 = vadd.f32 %v3397_v46, %v3391_v43  ;;  %v4517_v47 = vpop.f32.mrb[25].mxu1 }
0x281e   :  { %5246 = vtanh.f32 %v3396_v48  ;;  %v3815_v34 = vmul.f32 -1.442695, %v3396_v48  ;;  %v3816_v53 = vmul.f32 -1.442695, %v3398_v49 }
0x281f   :  { %5248 = vtanh.f32 %v3398_v49 }
0x2820   :  { %5250 = vpow2.f32 %v3815_v34 }
0x2821   :  { %5252 = vpow2.f32 %v3816_v53 }
0x2828   :  { %v5247_v57 = vpop.eup %5246 }
0x2829   :  { %v5249_v52 = vpop.eup %5248  ;;  %3415 = vrot.lane.b32.xlu1 %v5247_v57, %s5311_s21 }
0x282a   :  { %3426 = vrot.lane.b32.xlu0 %v5249_v52, %s5311_s21  ;;  %v5251_v54 = vpop.eup %5250 }
0x282b   :  { %v5253_v51 = vpop.eup %5252  ;;  %v3402_v5 = vadd.f32 1.0, %v5251_v54 }
0x282c   :  { %v3409_v56 = vadd.f32 1.0, %v5253_v51 }
0x282d   :  { %5254 = vrcp.f32 %v3402_v5 }
0x282e   :  { %5256 = vrcp.f32 %v3409_v56 }
0x2837   :  { %v5255_v58 = vpop.eup %5254 }
0x2838   :  { %v5257_v60 = vpop.eup %5256  ;;  %v3413_v62 = vmul.f32 %v5255_v58, %v3284_v27 }
0x2839   :  { %v3424_v1 = vmul.f32 %v5257_v60, %v3295_v28 }
0x289b   :  { %v3416_v59 = vpop.permute.xlu1 %3415 }
0x289c   :  { %v3427_v26 = vpop.permute.xlu0 %3426  ;;  %v3418_v61 = vmul.f32 %v5255_v58, %v3416_v59 }
0x289d   :  { %v3429_v63 = vmul.f32 %v5257_v60, %v3427_v26 }
0x289e   :  { %3420 = vrot.lane.b32.xlu1 %v3418_v61, %s5312_s22  ;;  %v5304_v61 = vld [vmem:[%s6399_s4 + $0x6] ss:$0 sm:$0xff] }
0x289f   :  { %3431 = vrot.lane.b32.xlu0 %v3429_v63, %s5312_s22 }
0x2910   :  { %v3421_v2 = vpop.permute.xlu1 %3420 }
0x2911   :  { %v3432_v4 = vpop.permute.xlu0 %3431  ;;  %v3423_v11 = vadd.f32 %v3421_v2, %v3413_v62  ;;  %v5314_v2 = vmov 97  }
0x2912   :  { %v3434_v12 = vadd.f32 %v3432_v4, %v3424_v1  ;;  %5036 = vset.pattern.permute.xlu1 %v5314_v2 }
0x2913   :  { %5258 = vtanh.f32 %v3423_v11 }
0x2914   :  { %5260 = vtanh.f32 %v3434_v12 }
0x291d   :  { %v5259_v40 = vpop.eup %5258 }
0x291e   :  { %v5261_v14 = vpop.eup %5260  ;;  %3437 = vrot.lane.b32.xlu1 %v5259_v40, %s5312_s22 }
0x291f   :  { %3443 = vrot.lane.b32.xlu0 %v5261_v14, %s5312_s22  ;;  %v3673_v14 = vld [vmem:[#allocation2 + $0xe] sm:$0x3] }
0x2990   :  { %v3438_v15 = vpop.permute.xlu1 %3437 }
0x2991   :  { %v3444_v19 = vpop.permute.xlu0 %3443  ;;  %v6281_v20 = vmul.f32 %v5255_v58, %v3438_v15 }
0x2992   :  { %v6283_v42 = vmul.f32 %v5257_v60, %v3444_v19 }
0x2993   :  { %3454 = vrot.lane.b32.xlu1 %v6281_v20, %s5306_s10 }
0x2994   :  { %3457 = vrot.lane.b32.xlu0 %v6283_v42, %s5313_s23 }
0x2a05   :  { %v3455_v21 = vpop.permute.xlu1 %3454 }
0x2a06   :  { %v3458_v22 = vpop.permute.xlu0 %3457 }
0x2a07   :  { %v3460_v44 = vsel %vm1410_vm5, %v3455_v21, %v3458_v22  ;;  %v5315_v22 = vmov 96  }
0x2a08   :  { %4527 = vmatmul.mubr.msk.f32.vlgmr.msra.gmra.mrb[24].mxu0 %vm542_vm0, %v3460_v44  ;;  %5035 = vset.pattern.permute.xlu0 %v5315_v22 }
0x2adb   :  { %v3530_v23 = vpop.f32.mrb[24].mxu0 }
0x2adc   :  { %v3535_v24 = vadd.f32 %v3534_v8, %v3530_v23  ;;  %v3537_v25 = vadd.f32 %v3536_v0, %v3530_v23  ;;  %v4528_v27 = vpop.f32.mrb[25].mxu0 }
0x2ade   :  { %5262 = vtanh.f32 %v3535_v24  ;;  %v3818_v31 = vmul.f32 -1.442695, %v3535_v24  ;;  %v3819_v32 = vmul.f32 -1.442695, %v3537_v25 }
0x2adf   :  { %5264 = vtanh.f32 %v3537_v25 }
0x2ae0   :  { %5266 = vpow2.f32 %v3818_v31 }
0x2ae1   :  { %5268 = vpow2.f32 %v3819_v32 }
0x2ae8   :  { %v5263_v28 = vpop.eup %5262 }
0x2ae9   :  { %v5265_v30 = vpop.eup %5264  ;;  %3554 = vrot.lane.b32.xlu1 %v5263_v28, %s5311_s21 }
0x2aea   :  { %3565 = vrot.lane.b32.xlu0 %v5265_v30, %s5311_s21  ;;  %v5267_v33 = vpop.eup %5266 }
0x2aeb   :  { %v5269_v37 = vpop.eup %5268  ;;  %v3541_v38 = vadd.f32 1.0, %v5267_v33 }
0x2aec   :  { %v3548_v39 = vadd.f32 1.0, %v5269_v37 }
0x2aed   :  { %5270 = vrcp.f32 %v3541_v38 }
0x2aee   :  { %5272 = vrcp.f32 %v3548_v39 }
0x2af7   :  { %v5271_v43 = vpop.eup %5270 }
0x2af8   :  { %v5273_v46 = vpop.eup %5272  ;;  %v3552_v57 = vmul.f32 %v5271_v43, %v3423_v11  ;;  %v3675_v11 = vld [vmem:[#allocation2] sm:$0x3] }
0x2af9   :  { %v3563_v52 = vmul.f32 %v5273_v46, %v3434_v12 }
0x2b5b   :  { %v3555_v45 = vpop.permute.xlu1 %3554 }
0x2b5c   :  { %v3566_v48 = vpop.permute.xlu0 %3565  ;;  %v3557_v49 = vmul.f32 %v5271_v43, %v3555_v45 }
0x2b5d   :  { %v3568_v47 = vmul.f32 %v5273_v46, %v3566_v48 }
0x2b5e   :  { %3559 = vrot.lane.b32.xlu1 %v3557_v49, %s5312_s22 }
0x2b5f   :  { %3570 = vrot.lane.b32.xlu0 %v3568_v47, %s5312_s22 }
0x2bd0   :  { %v3560_v34 = vpop.permute.xlu1 %3559 }
0x2bd1   :  { %v3571_v53 = vpop.permute.xlu0 %3570  ;;  %v6295_v54 = vadd.f32 %v3560_v34, %v3552_v57 }
0x2bd2   :  { %v6297_v51 = vadd.f32 %v3571_v53, %v3563_v52 }
0x2bd3   :  { %5274 = vtanh.f32 %v6295_v54 }
0x2bd4   :  { %5276 = vtanh.f32 %v6297_v51 }
0x2bdd   :  { %v5275_v5 = vpop.eup %5274 }
0x2bde   :  { %v5277_v56 = vpop.eup %5276  ;;  %3576 = vrot.lane.b32.xlu1 %v5275_v5, %s5312_s22 }
0x2bdf   :  { %3582 = vrot.lane.b32.xlu0 %v5277_v56, %s5312_s22 }
0x2c50   :  { %v3577_v58 = vpop.permute.xlu1 %3576 }
0x2c51   :  { %v3583_v59 = vpop.permute.xlu0 %3582  ;;  %v6303_v60 = vmul.f32 %v5271_v43, %v3577_v58 }
0x2c52   :  { %v3585_v26 = vmul.f32 %v5273_v46, %v3583_v59 }
0x2c53   :  { %3593 = vrot.lane.b32.xlu1 %v6303_v60, %s5306_s10 }
0x2c54   :  { %3596 = vrot.lane.b32.xlu0 %v3585_v26, %s5313_s23 }
0x2c58   :  { %914 = vrot.lane.b32.xlu0 %v5304_v61, %s5307_s11 }
0x2cc5   :  { %v3594_v63 = vpop.permute.xlu1 %3593 }
0x2cc6   :  { %v3597_v62 = vpop.permute.xlu0 %3596 }
0x2cc7   :  { %v3599_v1 = vsel %vm1410_vm5, %v3594_v63, %v3597_v62 }
0x2cc8   :  { %4538 = vmatmul.mubr.msk.f32.vlgmr.msra.gmra.mrb[26].mxu1 %vm542_vm0, %v3599_v1 }
0x2cca   :  { %v915_v44 = vpop.permute.xlu0 %914 }
0x2ccb   :  { %v917_v23 = vmul.f32 %v915_v44, %v720_v7  ;;  %v918_v38 = vmul.f32 %v915_v44, %v721_v13 }
0x2ccd   :  { %v919_v8 = vsel %vm542_vm0, %v917_v23, 0.0  ;;  %v922_v39 = vsel %vm542_vm0, %v918_v38, 0.0 }
0x2d9b   :  { %v3669_v4 = vpop.f32.mrb[26].mxu1 }
0x2d9c   :  { %v3676_v12 = vadd.f32 %v3675_v11, %v3669_v4  ;;  %v4539_v40 = vpop.f32.mrb[27].mxu1  ;;  %v3674_v15 = vadd.f32 %v3673_v14, %v3669_v4 }
0x2d9e   :  { %5278 = vtanh.f32 %v3676_v12  ;;  %v3822_v0 = vmul.f32 -1.442695, %v3676_v12  ;;  %v3821_v24 = vmul.f32 -1.442695, %v3674_v15 }
0x2d9f   :  { %5280 = vtanh.f32 %v3674_v15 }
0x2da0   :  { %5282 = vpow2.f32 %v3822_v0 }
0x2da1   :  { %5284 = vpow2.f32 %v3821_v24 }
0x2da8   :  { %v5279_v19 = vpop.eup %5278 }
0x2da9   :  { %3704 = vrot.lane.b32.xlu1 %v5279_v19, %s5311_s21  ;;  %v5281_v21 = vpop.eup %5280 }
0x2daa   :  { %v5283_v25 = vpop.eup %5282 }
0x2dab   :  { %v3687_v27 = vadd.f32 1.0, %v5283_v25  ;;  %v5285_v28 = vpop.eup %5284 }
0x2dac   :  { %v3680_v30 = vadd.f32 1.0, %v5285_v28 }
0x2dad   :  { %3693 = vrot.lane.b32.xlu1 %v5281_v21, %s5311_s21  ;;  %5286 = vrcp.f32 %v3687_v27 }
0x2dae   :  { %5288 = vrcp.f32 %v3680_v30 }
0x2db7   :  { %v6319_v31 = vpop.eup %5286 }
0x2db8   :  { %v6323_v7 = vpop.eup %5288  ;;  %v3702_v43 = vmul.f32 %v6319_v31, %v6297_v51 }
0x2dd1   :  { %920 = vadd.xlane.f32.xlu1 %v919_v8 }
0x2de2   :  { %1021 = vperm.xlu1 %5036, %v5304_v61  }
0x2e1b   :  { %v3705_v32 = vpop.permute.xlu1 %3704 }
0x2e1c   :  { %v3707_v6 = vmul.f32 %v6319_v31, %v3705_v32 }
0x2e1e   :  { %3709 = vrot.lane.b32.xlu0 %v3707_v6, %s5312_s22 }
0x2e1f   :  { %v3694_v33 = vpop.permute.xlu1 %3693 }
0x2e20   :  { %v3696_v37 = vmul.f32 %v6323_v7, %v3694_v33 }
0x2e22   :  { %3698 = vrot.lane.b32.xlu1 %v3696_v37, %s5312_s22 }
0x2e3d   :  { %923 = vadd.xlane.f32.xlu0 %v922_v39 }
0x2e53   :  { %1013 = vperm.xlu0 %5035, %v5304_v61  }
0x2e57   :  { %3310 = vrot.lane.b32.xlu0 %v6262_v36, %s5311_s21  ;;  %v3691_v36 = vmul.f32 %v6323_v7, %v6295_v54 }
0x2e58   :  { %5037 = vset.pattern.permute.xlu0 %v5314_v2 }
0x2e5b   :  { %3588 = vrot.lane.b32.xlu0 %v3585_v26, %s5311_s21 }
0x2e5e   :  { %v921_v48 = vpop.xlane.xlu1 %920 }
0x2e5f   :  { %v1004_v34 = vadd.f32 %v5912_v10, %v921_v48 }
0x2e62   :  { %v1022_v9 = vpop.permute.xlu1 %1021 }
0x2e90   :  { %v3710_v45 = vpop.permute.xlu0 %3709 }
0x2e91   :  { %v3712_v46 = vadd.f32 %v3710_v45, %v3702_v43 }
0x2e93   :  { %5290 = vtanh.f32 %v3712_v46 }
0x2e94   :  { %v3699_v13 = vpop.permute.xlu1 %3698 }
0x2e95   :  { %v3701_v47 = vadd.f32 %v3699_v13, %v3691_v36 }
0x2e97   :  { %5292 = vtanh.f32 %v3701_v47 }
0x2e9d   :  { %v5291_v49 = vpop.eup %5290 }
0x2e9e   :  { %3721 = vrot.lane.b32.xlu1 %v5291_v49, %s5312_s22 }
0x2ea1   :  { %v5293_v57 = vpop.eup %5292 }
0x2ea2   :  { %2753 = vrot.lane.b32.xlu1 %v6181_v50, %s5311_s21 }
0x2ea6   :  { %2893 = vrot.lane.b32.xlu1 %v6201_v29, %s5311_s21 }
0x2eaa   :  { %3032 = vrot.lane.b32.xlu1 %v6221_v41, %s5311_s21 }
0x2eae   :  { %3171 = vrot.lane.b32.xlu1 %v6241_v55, %s5311_s21 }
0x2eb2   :  { %3449 = vrot.lane.b32.xlu1 %v6283_v42, %s5311_s21 }
0x2eb6   :  { %3715 = vrot.lane.b32.xlu1 %v5293_v57, %s5312_s22 }
0x2eca   :  { %v924_v50 = vpop.xlane.xlu0 %923 }
0x2ecb   :  { %v1009_v29 = vadd.f32 %v5910_v18, %v924_v50 }
0x2ed2   :  { %v1014_v52 = vpop.permute.xlu0 %1013 }
0x2ed3   :  { %v1016_v53 = vmul.f32 %v1014_v52, %v5908_v17  ;;  %v1017_v41 = vmul.f32 %v5906_v16, %v1014_v52 }
0x2ed5   :  { %v1018_v54 = vadd.f32 %v1016_v53, %v1004_v34  ;;  %v1019_v51 = vadd.f32 %v1017_v41, %v1009_v29 }
0x2ed6   :  { %v3311_v55 = vpop.permute.xlu0 %3310 }
0x2ed7   :  { %v1024_v5 = vadd.f32 %v1022_v9, %v1018_v54  ;;  %v1025_v56 = vadd.f32 %v1022_v9, %v1019_v51  ;;  %3313 = vst.msk [vmem:[#allocation3 + $0x6] sm:$0x3] %vm2756_vm7, %v3311_v55 }
0x2ed9   :  { %v3771_v42 = vmul.f32 -1.442695, %v1024_v5  ;;  %v3772_v58 = vmul.f32 -1.442695, %v1025_v56 }
0x2eda   :  { %v3589_v59 = vpop.permute.xlu0 %3588 }
0x2edb   :  { %5294 = vpow2.f32 %v3771_v42  ;;  %3591 = vst.msk [vmem:[#allocation3 + $0x2] sm:$0x3] %vm2756_vm7, %v3589_v59 }
0x2edc   :  { %5296 = vpow2.f32 %v3772_v58 }
0x2ee5   :  { %v5295_v18 = vpop.eup %5294 }
0x2ee6   :  { %v5297_v10 = vpop.eup %5296  ;;  %v1032_v26 = vadd.f32 1.0, %v5295_v18 }
0x2ee7   :  { %v1033_v61 = vadd.f32 1.0, %v5297_v10 }
0x2ee8   :  { %5298 = vrcp.f32 %v1032_v26 }
0x2ee9   :  { %5300 = vrcp.f32 %v1033_v61 }
0x2ef2   :  { %v5299_v63 = vpop.eup %5298 }
0x2ef3   :  { %v5301_v62 = vpop.eup %5300  ;;  %v1038_v1 = vmul.f32 %v5299_v63, %v5908_v17 }
0x2ef4   :  { %v1039_v2 = vmul.f32 %v5301_v62, %v5906_v16 }
0x2ef5   :  { %3738 = vrot.lane.b32.xlu0 %v1038_v1, %s5307_s11 }
0x2f10   :  { %v3722_v4 = vpop.permute.xlu1 %3721 }
0x2f11   :  { %v3724_v11 = vmul.f32 %v6319_v31, %v3722_v4 }
0x2f13   :  { %3727 = vrot.lane.b32.xlu1 %v3724_v11, %s5311_s21 }
0x2f14   :  { %v2754_v12 = vpop.permute.xlu1 %2753 }
0x2f15   :  { %2757 = vst.msk [vmem:[#allocation3 + $0xe] sm:$0x3] %vm2756_vm7, %v2754_v12 }
0x2f17   :  { %3740 = vrot.lane.b32.xlu1 %v1039_v2, %s5307_s11 }
0x2f18   :  { %v2894_v40 = vpop.permute.xlu1 %2893 }
0x2f19   :  { %2896 = vst.msk [vmem:[#allocation3 + $0xc] sm:$0x3] %vm2756_vm7, %v2894_v40 }
0x2f1a   :  { %3586 = vst.msk [vmem:[#allocation3 + $0xc] sm:$0x3] %vm2750_vm6, %v6303_v60 }
0x2f1c   :  { %v3033_v17 = vpop.permute.xlu1 %3032 }
0x2f1d   :  { %3035 = vst.msk [vmem:[#allocation3 + $0xa] sm:$0x3] %vm2756_vm7, %v3033_v17 }
0x2f1e   :  { %3447 = vst.msk [vmem:[#allocation3 + $0xa] sm:$0x3] %vm2750_vm6, %v6281_v20 }
0x2f20   :  { %v3172_v16 = vpop.permute.xlu1 %3171 }
0x2f21   :  { %3174 = vst.msk [vmem:[#allocation3 + $0x8] sm:$0x3] %vm2756_vm7, %v3172_v16 }
0x2f22   :  { %3308 = vst.msk [vmem:[#allocation3 + $0x8] sm:$0x3] %vm2750_vm6, %v6260_v35 }
0x2f24   :  { %v3450_v14 = vpop.permute.xlu1 %3449 }
0x2f25   :  { %3452 = vst.msk [vmem:[#allocation3 + $0x4] sm:$0x3] %vm2756_vm7, %v3450_v14 }
0x2f28   :  { %v3716_v15 = vpop.permute.xlu1 %3715 }
0x2f29   :  { %v3718_v19 = vmul.f32 %v6323_v7, %v3716_v15 }
0x2f2b   :  { %3725 = vst.msk [vmem:[#allocation3 + $0xe] sm:$0x3] %vm2750_vm6, %v3718_v19 }
0x2f32   :  { %v3732_v60 = vld [vmem:[#allocation3 + $0x8] sm:$0xff] }
0x2f33   :  { %3735 = vst.msk [vmem:[%s6400_s5 + $0x8] sm:$0xff] %vm3733_vm8, %v3732_v60 }
0x2f67   :  { %v3739_v22 = vpop.permute.xlu0 %3738 }
0x2f85   :  { %v3728_v20 = vpop.permute.xlu1 %3727 }
0x2f86   :  { %3730 = vst.msk [vmem:[#allocation3] sm:$0x3] %vm2756_vm7, %v3728_v20 }
0x2f89   :  { %v3741_v35 = vpop.permute.xlu1 %3740 }
0x2f8a   :  { %3746 = vst.msk [vmem:[%s6400_s5 + $0x8] sm:$0xff] %vm3744_vm9, %v3741_v35 }
0x2f8b   :  { %3749 = vst.msk [vmem:[%s6400_s5 + $0x8] sm:$0xff] %vm3747_vm10, %v5305_v3 }
0x2f8d   :  { %v3731_v21 = vld [vmem:[#allocation3] sm:$0xff] }
0x2f8e   :  { %3734 = vst.msk [vmem:[%s6400_s5] sm:$0xff] %vm3733_vm8, %v3731_v21 }
0x2f8f   :  { %3745 = vst.msk [vmem:[%s6400_s5] sm:$0xff] %vm3744_vm9, %v3739_v22 }
0x2f90   :  { %3748 = vst.msk [vmem:[%s6400_s5] sm:$0xff] %vm3747_vm10, %v5305_v3 }

</bundles_post_ra>
